<compile_context>
chip_gen: v5e
topology: v5e:2x2
jax: 0.10.0
libtpu: 0.0.40
codegen_flags: <defaults>
</compile_context>

<pallas_src>
import functools

import jax
import jax.numpy as jnp
from jax import lax
from jax.experimental import pallas as pl
from jax.experimental.pallas import tpu as pltpu


_ARB = pltpu.CompilerParams(dimension_semantics=("arbitrary",))

# Lane-dense padded sizes (all zero-padding; results are bit-identical to the
# unpadded math because padded weight rows/cols, biases and vars are zero).
K0_PAD = 256   # patch dim C*p*p = 192 -> 2 full 128-lane tiles
E_PAD = 128    # backbone hidden dim 64 -> 128
D_PAD = 128    # latent / feature dim 64 -> 128


# ----------------------------------------------------------------------------
# Kernel 1: fused backbone (patch-embed -> head -> denorm -> center -> scatter)
# ----------------------------------------------------------------------------
def _backbone_kernel(x_ref, we_ref, wh_ref, vec_ref, xc_ref, scat_ref):
    # one stacked [8, 128] vector-param slab: rows 0..3 = b_embed, b_head,
    # feature_means, feature_vars (padded cols are zero), rows 4..7 unused.
    vec = vec_ref[...]
    b_embed = vec[0:1, :]
    b_head = vec[1:2, :]
    mean = vec[2:3, :]
    var = vec[3:4, :]

    # patch embed + GELU (bf16 operands, f32 accumulation on the MXU)
    tok = jnp.dot(x_ref[...], we_ref[...], preferred_element_type=jnp.float32)
    tok = tok + b_embed
    # TODO(synk): real module uses a pretrained Theia/DINOv2 ViT; this synthetic
    # stand-in uses tanh-approx GELU (PyTorch nn.GELU default is exact erf).
    # Kept in f32 for v5e compatibility (no bf16 VPU/EUP path there).
    tok = jax.nn.gelu(tok, approximate=True)

    # projection head (bf16 feed, f32 accumulate)
    feats = jnp.dot(tok.astype(jnp.bfloat16), wh_ref[...],
                    preferred_element_type=jnp.float32)
    feats = feats + b_head

    # denormalize_feature: x * feature_vars + feature_means
    # (padded cols: 0 * 0 + 0 = 0, so the padding stays exact zeros)
    feats = feats * var + mean

    # PCA prep: center rows, emit scatter matrix Xc^T @ Xc.
    inv_n = 1.0 / feats.shape[0]
    mu = jnp.sum(feats, axis=0, keepdims=True) * inv_n
    xc = feats - mu
    xc_ref[...] = xc                       # lane-dense [M, 128] store
    # Precision choice (deliberate): keep the scatter matmul in f32 (costs a
    # few extra MXU passes on a tiny matrix) because eigh consumes it and the
    # eigenvectors feed the visualization directly.
    scat_ref[...] = lax.dot_general(
        xc, xc,
        dimension_numbers=(((0,), (0,)), ((), ())),
        preferred_element_type=jnp.float32,
    )                                      # lane-dense [128, 128] store


def pallas_backbone(patches_pad, w_embed_pad, w_head_pad, vec_pad):
    """patches_pad:[M, 256] bf16 -> (xc:[M,128] centered feats, scat:[128,128])."""
    M, K0p = patches_pad.shape
    Ep = w_embed_pad.shape[1]
    Dp = w_head_pad.shape[1]

    return pl.pallas_call(
        _backbone_kernel,
        out_shape=(
            jax.ShapeDtypeStruct((M, Dp), jnp.float32),
            jax.ShapeDtypeStruct((Dp, Dp), jnp.float32),
        ),
        grid=(1,),
        in_specs=[
            pl.BlockSpec((M, K0p), lambda i: (0, 0)),
            pl.BlockSpec((K0p, Ep), lambda i: (0, 0)),
            pl.BlockSpec((Ep, Dp), lambda i: (0, 0)),
            pl.BlockSpec((8, Dp), lambda i: (0, 0)),     # fused vector params
        ],
        out_specs=(
            pl.BlockSpec((M, Dp), lambda i: (0, 0)),
            pl.BlockSpec((Dp, Dp), lambda i: (0, 0)),
        ),
        compiler_params=_ARB,
    )(patches_pad, w_embed_pad, w_head_pad, vec_pad)


# ----------------------------------------------------------------------------
# Kernel 2: fused top-3 selection + sign flip + PCA projection + fg/bg decode
# ----------------------------------------------------------------------------
def _pca_decode_kernel(xc_ref, ev_ref, o_ref, *, threshold, d):
    n_out = o_ref.shape[1]                 # 128 (lane-dense output width)
    xc = xc_ref[:, 0:d]                    # drop padded (all-zero) feature cols
    ev = ev_ref[...]                       # [d, d] eigh eigenvectors, ascending

    # Build the lane-dense [d, 128] projection slab with a tiny selection
    # matmul (col j of the slab = eigenvector d-1-j for j < 3, else 0).
    # Avoids in-kernel concat/pad; cols 3..127 come out exactly zero.
    row = lax.broadcasted_iota(jnp.int32, (d, n_out), 0)
    col = lax.broadcasted_iota(jnp.int32, (d, n_out), 1)
    sel = jnp.where(jnp.logical_and(row + col == d - 1, col < 3), 1.0, 0.0)
    comps = jnp.dot(ev, sel, preferred_element_type=jnp.float32)   # [d, 128]

    # deterministic sign convention (stand-in for sklearn svd_flip): flip each
    # component so its largest-|coefficient| entry is positive.
    absc = jnp.abs(comps)
    amax = jnp.max(absc, axis=0, keepdims=True)
    rows = lax.broadcasted_iota(jnp.int32, comps.shape, 0)
    first = jnp.min(jnp.where(absc >= amax, rows, d), axis=0, keepdims=True)
    picked = jnp.sum(jnp.where(rows == first, comps, 0.0), axis=0, keepdims=True)
    comps = comps * jnp.where(picked < 0.0, -1.0, 1.0)

    # PCA projection (lane-dense: padded channels are exactly 0).
    p = jnp.dot(xc, comps, preferred_element_type=jnp.float32)     # [M, 128]

    bg = p[:, 0:1] < threshold             # background mask on PCA channel 0
    fg = jnp.logical_not(bg)
    pmin = jnp.min(jnp.where(fg, p, 1e30), axis=0, keepdims=True)
    pmax = jnp.max(jnp.where(fg, p, -1e30), axis=0, keepdims=True)
    rng = pmax - pmin
    rng = jnp.where(rng <= 0.0, 1.0, rng)   # also guards padded/no-fg channels
    # minmax_scale per channel on fg rows; EUP reciprocal instead of a divide.
    scaled = (p - pmin) * pl.reciprocal(rng, approx=True)
    o_ref[...] = jnp.where(bg, 0.0, scaled)


def pallas_pca_decode(xc, evecs, threshold):
    M, Dp = xc.shape
    d = evecs.shape[0]
    kern = functools.partial(_pca_decode_kernel, threshold=float(threshold), d=d)
    return pl.pallas_call(
        kern,
        out_shape=jax.ShapeDtypeStruct((M, Dp), jnp.float32),
        grid=(1,),
        in_specs=[
            pl.BlockSpec((M, Dp), lambda i: (0, 0)),
            pl.BlockSpec((d, d), lambda i: (0, 0)),
        ],
        out_specs=pl.BlockSpec((M, Dp), lambda i: (0, 0)),
        compiler_params=_ARB,
    )(xc, evecs)


# ----------------------------------------------------------------------------
# Parameter preparation (one-time, outside the jitted forward)
# ----------------------------------------------------------------------------
def prepare_params(params):
    """Zero-pad weights to lane-dense shapes and stack the vector params."""
    K0, E = params["w_embed"].shape
    _, D = params["w_head"].shape
    we = (jnp.zeros((K0_PAD, E_PAD), jnp.float32)
          .at[:K0, :E].set(params["w_embed"]).astype(jnp.bfloat16))
    wh = (jnp.zeros((E_PAD, D_PAD), jnp.float32)
          .at[:E, :D].set(params["w_head"]).astype(jnp.bfloat16))
    vec = jnp.zeros((8, D_PAD), jnp.float32)
    vec = vec.at[0, :E].set(params["b_embed"].astype(jnp.float32))
    vec = vec.at[1, :D].set(params["b_head"].astype(jnp.float32))
    vec = vec.at[2, :D].set(params["feature_means"].astype(jnp.float32))
    vec = vec.at[3, :D].set(params["feature_vars"].astype(jnp.float32))
    return we, wh, vec


# ----------------------------------------------------------------------------
# Forward pass (glue around the Pallas kernels)
# ----------------------------------------------------------------------------
def _patchify(images, patch):
    B, C, H, W = images.shape
    gh, gw = H // patch, W // patch
    x = images.reshape(B, C, gh, patch, gw, patch)
    x = jnp.transpose(x, (0, 2, 4, 1, 3, 5))          # B, gh, gw, C, p, p
    x = x.reshape(B * gh * gw, C * patch * patch)
    x = jnp.pad(x, ((0, 0), (0, K0_PAD - C * patch * patch)))
    return x.astype(jnp.bfloat16), (B, gh, gw)


def theia_dinov2_forward(images, w_embed_pad, w_head_pad, vec_pad, *,
                         patch=8, threshold=-100.0, latent_dim=64):
    """images: [B, C, H, W] float32 -> [B, 128, 128, 3] float32 in [0, 1]."""
    patches, (B, gh, gw) = _patchify(images, patch)

    # --- fused backbone + denorm + PCA prep (one Pallas launch) -------------
    xc, scat = pallas_backbone(patches, w_embed_pad, w_head_pad, vec_pad)

    # --- PCA(3) fit: eigendecomposition of the (unpadded) scatter matrix ----
    # TODO(synk): pretrained Theia/DINOv2 ViT backbone and the eigensolve have
    # no Pallas equivalent; eigh stays in XLA, everything else is in-kernel.
    _, evecs = jnp.linalg.eigh(scat[:latent_dim, :latent_dim])   # ascending

    # --- fused top-3 select + sign flip + projection + min-max decode -------
    rgb = pallas_pca_decode(xc, evecs, threshold)[:, :3]          # [M, 3]

    # --- reshape to [B, h, w, 3] and nearest-neighbor upsample to 128x128 ---
    scale = 128 // gh
    rgb = rgb.reshape(B, gh, 1, gw, 1, 3)
    img = jnp.broadcast_to(rgb, (B, gh, scale, gw, scale, 3))
    return img.reshape(B, gh * scale, gw * scale, 3)


# ----------------------------------------------------------------------------
# Main
# ----------------------------------------------------------------------------
if __name__ == "__main__":
    key = jax.random.PRNGKey(0)
    kimg, k1, k2, k3, k4, k5, k6 = jax.random.split(key, 7)

    B, C, H, W = 2, 3, 32, 32      # small NCHW images
    patch = 8                      # -> 4x4 = 16 tokens (perfect square, 128 % 4 == 0)
    E = 64                         # backbone hidden dim
    D = 64                         # latent / feature dim

    images = jax.random.normal(kimg, (B, C, H, W), jnp.float32)

    params = {
        "w_embed": jax.random.normal(k1, (C * patch * patch, E), jnp.float32) * 0.02,
        "b_embed": jax.random.normal(k2, (E,), jnp.float32) * 0.01,
        "w_head": jax.random.normal(k3, (E, D), jnp.float32) * 0.02,
        "b_head": jax.random.normal(k4, (D,), jnp.float32) * 0.01,
        "feature_means": jax.random.normal(k5, (D,), jnp.float32) * 0.1,
        "feature_vars": jax.random.uniform(k6, (D,), jnp.float32, 0.5, 1.5),
    }

    # one-time lane-dense padding / stacking of the parameters (outside jit)
    w_embed_pad, w_head_pad, vec_pad = prepare_params(params)

    fwd = jax.jit(functools.partial(theia_dinov2_forward, patch=patch,
                                    threshold=-100.0, latent_dim=D))
    out = fwd(images, w_embed_pad, w_head_pad, vec_pad)
    out = jax.block_until_ready(out)

    assert out.shape == (B, 128, 128, 3), out.shape
    assert out.dtype == jnp.float32
    print("KERNEL_OK")
</pallas_src>

<mosaic_0001>
module attributes {stable_mosaic.version = 11 : i64} {
  func.func @_backbone_kernel(%arg0: i32, %arg1: memref<32x256xbf16, #tpu.memory_space<vmem>>, %arg2: memref<256x128xbf16, #tpu.memory_space<vmem>>, %arg3: memref<128x128xbf16, #tpu.memory_space<vmem>>, %arg4: memref<8x128xf32, #tpu.memory_space<vmem>>, %arg5: memref<32x128xf32, #tpu.memory_space<vmem>>, %arg6: memref<128x128xf32, #tpu.memory_space<vmem>>) attributes {dimension_semantics = [#tpu.dimension_semantics<arbitrary>], iteration_bounds = array<i64: 1>, scalar_prefetch = 0 : i64, scratch_operands = 0 : i64, tpu.core_type = #tpu.core_type<tc>, window_params = [{pipeline_mode = #tpu.pipeline_mode<synchronous>, transform_indices = @transform_0, window_bounds = array<i64: 32, 256>}, {pipeline_mode = #tpu.pipeline_mode<synchronous>, transform_indices = @transform_1, window_bounds = array<i64: 256, 128>}, {pipeline_mode = #tpu.pipeline_mode<synchronous>, transform_indices = @transform_2, window_bounds = array<i64: 128, 128>}, {pipeline_mode = #tpu.pipeline_mode<synchronous>, transform_indices = @transform_3, window_bounds = array<i64: 8, 128>}, {pipeline_mode = #tpu.pipeline_mode<synchronous>, transform_indices = @transform_4, window_bounds = array<i64: 32, 128>}, {pipeline_mode = #tpu.pipeline_mode<synchronous>, transform_indices = @transform_5, window_bounds = array<i64: 128, 128>}]} {
    %c0 = arith.constant 0 : index
    %c0_0 = arith.constant 0 : index
    %0 = vector.load %arg4[%c0, %c0_0] : memref<8x128xf32, #tpu.memory_space<vmem>>, vector<8x128xf32>
    %1 = vector.extract_strided_slice %0 {offsets = [0, 0], sizes = [1, 128], strides = [1, 1]} : vector<8x128xf32> to vector<1x128xf32>
    %2 = vector.extract_strided_slice %0 {offsets = [1, 0], sizes = [1, 128], strides = [1, 1]} : vector<8x128xf32> to vector<1x128xf32>
    %3 = vector.extract_strided_slice %0 {offsets = [2, 0], sizes = [1, 128], strides = [1, 1]} : vector<8x128xf32> to vector<1x128xf32>
    %4 = vector.extract_strided_slice %0 {offsets = [3, 0], sizes = [1, 128], strides = [1, 1]} : vector<8x128xf32> to vector<1x128xf32>
    %c0_1 = arith.constant 0 : index
    %c0_2 = arith.constant 0 : index
    %5 = vector.load %arg1[%c0_1, %c0_2] : memref<32x256xbf16, #tpu.memory_space<vmem>>, vector<32x256xbf16>
    %c0_3 = arith.constant 0 : index
    %c0_4 = arith.constant 0 : index
    %6 = vector.load %arg2[%c0_3, %c0_4] : memref<256x128xbf16, #tpu.memory_space<vmem>>, vector<256x128xbf16>
    %cst = arith.constant dense<0.000000e+00> : vector<32x128xf32>
    %7 = tpu.matmul %5, %6, %cst {dimension_numbers = #tpu.dot_dimension_numbers<[1], [0], [0], [1], [0, 0, 1, 1], [], []>} : vector<32x256xbf16>, vector<256x128xbf16>, vector<32x128xf32> -> vector<32x128xf32>
    %8 = vector.broadcast %1 : vector<1x128xf32> to vector<32x128xf32>
    %9 = arith.addf %7, %8 : vector<32x128xf32>
    %10 = arith.mulf %9, %9 : vector<32x128xf32>
    %11 = arith.mulf %9, %10 : vector<32x128xf32>
    %cst_5 = arith.constant 4.471500e-02 : f32
    %12 = vector.broadcast %cst_5 : f32 to vector<32x128xf32>
    %13 = arith.mulf %12, %11 : vector<32x128xf32>
    %14 = arith.addf %9, %13 : vector<32x128xf32>
    %cst_6 = arith.constant 0.797884583 : f32
    %15 = vector.broadcast %cst_6 : f32 to vector<32x128xf32>
    %16 = arith.mulf %15, %14 : vector<32x128xf32>
    %17 = math.tanh %16 : vector<32x128xf32>
    %cst_7 = arith.constant 1.000000e+00 : f32
    %18 = vector.broadcast %cst_7 : f32 to vector<32x128xf32>
    %19 = arith.addf %18, %17 : vector<32x128xf32>
    %cst_8 = arith.constant 5.000000e-01 : f32
    %20 = vector.broadcast %cst_8 : f32 to vector<32x128xf32>
    %21 = arith.mulf %20, %19 : vector<32x128xf32>
    %22 = arith.mulf %9, %21 : vector<32x128xf32>
    %23 = arith.truncf %22 : vector<32x128xf32> to vector<32x128xbf16>
    %c0_9 = arith.constant 0 : index
    %c0_10 = arith.constant 0 : index
    %24 = vector.load %arg3[%c0_9, %c0_10] : memref<128x128xbf16, #tpu.memory_space<vmem>>, vector<128x128xbf16>
    %cst_11 = arith.constant dense<0.000000e+00> : vector<32x128xf32>
    %25 = tpu.matmul %23, %24, %cst_11 {dimension_numbers = #tpu.dot_dimension_numbers<[1], [0], [0], [1], [0, 0, 1, 1], [], []>} : vector<32x128xbf16>, vector<128x128xbf16>, vector<32x128xf32> -> vector<32x128xf32>
    %26 = vector.broadcast %2 : vector<1x128xf32> to vector<32x128xf32>
    %27 = arith.addf %25, %26 : vector<32x128xf32>
    %28 = vector.broadcast %4 : vector<1x128xf32> to vector<32x128xf32>
    %29 = arith.mulf %27, %28 : vector<32x128xf32>
    %30 = vector.broadcast %3 : vector<1x128xf32> to vector<32x128xf32>
    %31 = arith.addf %29, %30 : vector<32x128xf32>
    %cst_12 = arith.constant dense<0.000000e+00> : vector<128xf32>
    %32 = vector.multi_reduction <add>, %31, %cst_12 [0] : vector<32x128xf32> to vector<128xf32>
    %33 = vector.shape_cast %32 : vector<128xf32> to vector<1x128xf32>
    %cst_13 = arith.constant 3.125000e-02 : f32
    %34 = vector.broadcast %cst_13 : f32 to vector<1x128xf32>
    %35 = arith.mulf %33, %34 : vector<1x128xf32>
    %36 = vector.broadcast %35 : vector<1x128xf32> to vector<32x128xf32>
    %37 = arith.subf %31, %36 : vector<32x128xf32>
    %c0_14 = arith.constant 0 : index
    %c0_15 = arith.constant 0 : index
    %38 = vector.load %arg5[%c0_14, %c0_15] : memref<32x128xf32, #tpu.memory_space<vmem>>, vector<32x128xf32>
    tpu.vector_store %arg5[%c0_14, %c0_15], %37 {strides = array<i32>} : memref<32x128xf32, #tpu.memory_space<vmem>>, vector<32x128xf32>,
    %cst_16 = arith.constant dense<0.000000e+00> : vector<128x128xf32>
    %39 = tpu.matmul %37, %37, %cst_16 {dimension_numbers = #tpu.dot_dimension_numbers<[0], [0], [1], [1], [0, 1, 1, 1], [], []>} : vector<32x128xf32>, vector<32x128xf32>, vector<128x128xf32> -> vector<128x128xf32>
    %c0_17 = arith.constant 0 : index
    %c0_18 = arith.constant 0 : index
    %40 = vector.load %arg6[%c0_17, %c0_18] : memref<128x128xf32, #tpu.memory_space<vmem>>, vector<128x128xf32>
    tpu.vector_store %arg6[%c0_17, %c0_18], %39 {strides = array<i32>} : memref<128x128xf32, #tpu.memory_space<vmem>>, vector<128x128xf32>,
    return
  }
  func.func @transform_0(%arg0: i32) -> (i32, i32) {
    %c0_i32 = arith.constant 0 : i32
    %c0_i32_0 = arith.constant 0 : i32
    %c0_i32_1 = arith.constant 0 : i32
    return %c0_i32, %c0_i32_0 : i32, i32
  }
  func.func @transform_1(%arg0: i32) -> (i32, i32) {
    %c0_i32 = arith.constant 0 : i32
    %c0_i32_0 = arith.constant 0 : i32
    %c0_i32_1 = arith.constant 0 : i32
    return %c0_i32, %c0_i32_0 : i32, i32
  }
  func.func @transform_2(%arg0: i32) -> (i32, i32) {
    %c0_i32 = arith.constant 0 : i32
    %c0_i32_0 = arith.constant 0 : i32
    %c0_i32_1 = arith.constant 0 : i32
    return %c0_i32, %c0_i32_0 : i32, i32
  }
  func.func @transform_3(%arg0: i32) -> (i32, i32) {
    %c0_i32 = arith.constant 0 : i32
    %c0_i32_0 = arith.constant 0 : i32
    %c0_i32_1 = arith.constant 0 : i32
    return %c0_i32, %c0_i32_0 : i32, i32
  }
  func.func @transform_4(%arg0: i32) -> (i32, i32) {
    %c0_i32 = arith.constant 0 : i32
    %c0_i32_0 = arith.constant 0 : i32
    %c0_i32_1 = arith.constant 0 : i32
    return %c0_i32, %c0_i32_0 : i32, i32
  }
  func.func @transform_5(%arg0: i32) -> (i32, i32) {
    %c0_i32 = arith.constant 0 : i32
    %c0_i32_0 = arith.constant 0 : i32
    %c0_i32_1 = arith.constant 0 : i32
    return %c0_i32, %c0_i32_0 : i32, i32
  }
}

module attributes {stable_mosaic.version = 11 : i64} {
  func.func @_pca_decode_kernel(%arg0: i32, %arg1: memref<32x128xf32, #tpu.memory_space<vmem>>, %arg2: memref<64x64xf32, #tpu.memory_space<vmem>>, %arg3: memref<32x128xf32, #tpu.memory_space<vmem>>) attributes {dimension_semantics = [#tpu.dimension_semantics<arbitrary>], iteration_bounds = array<i64: 1>, scalar_prefetch = 0 : i64, scratch_operands = 0 : i64, tpu.core_type = #tpu.core_type<tc>, window_params = [{pipeline_mode = #tpu.pipeline_mode<synchronous>, transform_indices = @transform_0, window_bounds = array<i64: 32, 128>}, {pipeline_mode = #tpu.pipeline_mode<synchronous>, transform_indices = @transform_1, window_bounds = array<i64: 64, 64>}, {pipeline_mode = #tpu.pipeline_mode<synchronous>, transform_indices = @transform_2, window_bounds = array<i64: 32, 128>}]} {
    %c0 = arith.constant 0 : index
    %c0_0 = arith.constant 0 : index
    %0 = vector.load %arg1[%c0, %c0_0] : memref<32x128xf32, #tpu.memory_space<vmem>>, vector<32x64xf32>
    %c0_1 = arith.constant 0 : index
    %c0_2 = arith.constant 0 : index
    %1 = vector.load %arg2[%c0_1, %c0_2] : memref<64x64xf32, #tpu.memory_space<vmem>>, vector<64x64xf32>
    %2 = tpu.iota {dimensions = array<i32: 0>} : vector<64x128xi32>
    %3 = tpu.iota {dimensions = array<i32: 1>} : vector<64x128xi32>
    %4 = arith.addi %2, %3 : vector<64x128xi32>
    %c63_i32 = arith.constant 63 : i32
    %5 = vector.broadcast %c63_i32 : i32 to vector<64x128xi32>
    %6 = arith.cmpi eq, %4, %5 : vector<64x128xi32>
    %c3_i32 = arith.constant 3 : i32
    %7 = vector.broadcast %c3_i32 : i32 to vector<64x128xi32>
    %8 = arith.cmpi slt, %3, %7 : vector<64x128xi32>
    %9 = arith.andi %6, %8 : vector<64x128xi1>
    %cst = arith.constant 1.000000e+00 : f32
    %cst_3 = arith.constant 0.000000e+00 : f32
    %10 = vector.broadcast %cst : f32 to vector<64x128xf32>
    %11 = vector.broadcast %cst_3 : f32 to vector<64x128xf32>
    %12 = arith.select %9, %10, %11 : vector<64x128xi1>, vector<64x128xf32>
    %cst_4 = arith.constant dense<0.000000e+00> : vector<64x128xf32>
    %13 = tpu.matmul %1, %12, %cst_4 {dimension_numbers = #tpu.dot_dimension_numbers<[1], [0], [0], [1], [0, 0, 1, 1], [], []>} : vector<64x64xf32>, vector<64x128xf32>, vector<64x128xf32> -> vector<64x128xf32>
    %14 = math.absf %13 : vector<64x128xf32>
    %cst_5 = arith.constant dense<0xFF800000> : vector<128xf32>
    %15 = vector.multi_reduction <maximumf>, %14, %cst_5 [0] : vector<64x128xf32> to vector<128xf32>
    %16 = vector.shape_cast %15 : vector<128xf32> to vector<1x128xf32>
    %17 = tpu.iota {dimensions = array<i32: 0>} : vector<64x128xi32>
    %18 = vector.broadcast %16 : vector<1x128xf32> to vector<64x128xf32>
    %19 = arith.cmpf oge, %14, %18 : vector<64x128xf32>
    %c64_i32 = arith.constant 64 : i32
    %20 = vector.broadcast %c64_i32 : i32 to vector<64x128xi32>
    %21 = arith.select %19, %17, %20 : vector<64x128xi1>, vector<64x128xi32>
    %cst_6 = arith.constant dense<2147483647> : vector<128xi32>
    %22 = vector.multi_reduction <minsi>, %21, %cst_6 [0] : vector<64x128xi32> to vector<128xi32>
    %23 = vector.shape_cast %22 : vector<128xi32> to vector<1x128xi32>
    %24 = vector.broadcast %23 : vector<1x128xi32> to vector<64x128xi32>
    %25 = arith.cmpi eq, %17, %24 : vector<64x128xi32>
    %cst_7 = arith.constant 0.000000e+00 : f32
    %26 = vector.broadcast %cst_7 : f32 to vector<64x128xf32>
    %27 = arith.select %25, %13, %26 : vector<64x128xi1>, vector<64x128xf32>
    %cst_8 = arith.constant dense<0.000000e+00> : vector<128xf32>
    %28 = vector.multi_reduction <add>, %27, %cst_8 [0] : vector<64x128xf32> to vector<128xf32>
    %29 = vector.shape_cast %28 : vector<128xf32> to vector<1x128xf32>
    %cst_9 = arith.constant 0.000000e+00 : f32
    %30 = vector.broadcast %cst_9 : f32 to vector<1x128xf32>
    %31 = arith.cmpf olt, %29, %30 : vector<1x128xf32>
    %cst_10 = arith.constant -1.000000e+00 : f32
    %cst_11 = arith.constant 1.000000e+00 : f32
    %32 = vector.broadcast %cst_10 : f32 to vector<1x128xf32>
    %33 = vector.broadcast %cst_11 : f32 to vector<1x128xf32>
    %34 = arith.select %31, %32, %33 : vector<1x128xi1>, vector<1x128xf32>
    %35 = vector.broadcast %34 : vector<1x128xf32> to vector<64x128xf32>
    %36 = arith.mulf %13, %35 : vector<64x128xf32>
    %cst_12 = arith.constant dense<0.000000e+00> : vector<32x128xf32>
    %37 = tpu.matmul %0, %36, %cst_12 {dimension_numbers = #tpu.dot_dimension_numbers<[1], [0], [0], [1], [0, 0, 1, 1], [], []>} : vector<32x64xf32>, vector<64x128xf32>, vector<32x128xf32> -> vector<32x128xf32>
    %38 = vector.extract_strided_slice %37 {offsets = [0, 0], sizes = [32, 1], strides = [1, 1]} : vector<32x128xf32> to vector<32x1xf32>
    %cst_13 = arith.constant -1.000000e+02 : f32
    %39 = vector.broadcast %cst_13 : f32 to vector<32x1xf32>
    %40 = arith.cmpf olt, %38, %39 : vector<32x1xf32>
    %cst_14 = arith.constant dense<true> : vector<32x1xi1>
    %41 = arith.xori %40, %cst_14 : vector<32x1xi1>
    %cst_15 = arith.constant 1.000000e+30 : f32
    %42 = vector.shape_cast %41 : vector<32x1xi1> to vector<32x1xi1>
    %43 = vector.broadcast %42 : vector<32x1xi1> to vector<32x128xi1>
    %44 = vector.broadcast %cst_15 : f32 to vector<32x128xf32>
    %45 = arith.select %43, %37, %44 : vector<32x128xi1>, vector<32x128xf32>
    %cst_16 = arith.constant dense<0x7F800000> : vector<128xf32>
    %46 = vector.multi_reduction <minimumf>, %45, %cst_16 [0] : vector<32x128xf32> to vector<128xf32>
    %47 = vector.shape_cast %46 : vector<128xf32> to vector<1x128xf32>
    %cst_17 = arith.constant -1.000000e+30 : f32
    %48 = vector.shape_cast %41 : vector<32x1xi1> to vector<32x1xi1>
    %49 = vector.broadcast %48 : vector<32x1xi1> to vector<32x128xi1>
    %50 = vector.broadcast %cst_17 : f32 to vector<32x128xf32>
    %51 = arith.select %49, %37, %50 : vector<32x128xi1>, vector<32x128xf32>
    %cst_18 = arith.constant dense<0xFF800000> : vector<128xf32>
    %52 = vector.multi_reduction <maximumf>, %51, %cst_18 [0] : vector<32x128xf32> to vector<128xf32>
    %53 = vector.shape_cast %52 : vector<128xf32> to vector<1x128xf32>
    %54 = arith.subf %53, %47 : vector<1x128xf32>
    %cst_19 = arith.constant 0.000000e+00 : f32
    %55 = vector.broadcast %cst_19 : f32 to vector<1x128xf32>
    %56 = arith.cmpf ole, %54, %55 : vector<1x128xf32>
    %cst_20 = arith.constant 1.000000e+00 : f32
    %57 = vector.broadcast %cst_20 : f32 to vector<1x128xf32>
    %58 = arith.select %56, %57, %54 : vector<1x128xi1>, vector<1x128xf32>
    %59 = vector.broadcast %47 : vector<1x128xf32> to vector<32x128xf32>
    %60 = arith.subf %37, %59 : vector<32x128xf32>
    %61 = tpu.reciprocal %58 {approx = true} : vector<1x128xf32> -> vector<1x128xf32>
    %62 = vector.broadcast %61 : vector<1x128xf32> to vector<32x128xf32>
    %63 = arith.mulf %60, %62 : vector<32x128xf32>
    %cst_21 = arith.constant 0.000000e+00 : f32
    %64 = vector.shape_cast %40 : vector<32x1xi1> to vector<32x1xi1>
    %65 = vector.broadcast %64 : vector<32x1xi1> to vector<32x128xi1>
    %66 = vector.broadcast %cst_21 : f32 to vector<32x128xf32>
    %67 = arith.select %65, %66, %63 : vector<32x128xi1>, vector<32x128xf32>
    %c0_22 = arith.constant 0 : index
    %c0_23 = arith.constant 0 : index
    %68 = vector.load %arg3[%c0_22, %c0_23] : memref<32x128xf32, #tpu.memory_space<vmem>>, vector<32x128xf32>
    tpu.vector_store %arg3[%c0_22, %c0_23], %67 {strides = array<i32>} : memref<32x128xf32, #tpu.memory_space<vmem>>, vector<32x128xf32>,
    return
  }
  func.func @transform_0(%arg0: i32) -> (i32, i32) {
    %c0_i32 = arith.constant 0 : i32
    %c0_i32_0 = arith.constant 0 : i32
    %c0_i32_1 = arith.constant 0 : i32
    return %c0_i32, %c0_i32_0 : i32, i32
  }
  func.func @transform_1(%arg0: i32) -> (i32, i32) {
    %c0_i32 = arith.constant 0 : i32
    %c0_i32_0 = arith.constant 0 : i32
    %c0_i32_1 = arith.constant 0 : i32
    return %c0_i32, %c0_i32_0 : i32, i32
  }
  func.func @transform_2(%arg0: i32) -> (i32, i32) {
    %c0_i32 = arith.constant 0 : i32
    %c0_i32_0 = arith.constant 0 : i32
    %c0_i32_1 = arith.constant 0 : i32
    return %c0_i32, %c0_i32_0 : i32, i32
  }
}

</mosaic_0001>

<bundles_post_ra>
// kernel: custom-call.2
= control target key start
LH: loop header
LB: loop body
LE: loop exit
PB: predicated region body
PF: predicated region fallthrough
CT: control target
= control target key end

     0   :  { %s4937_s0 = inlined_call_operand.vmem [shape: f32[32,32], index: 0, kind: input, shape index: {}]   ;;  %s4938_s1 = inlined_call_operand.vmem [shape: f32[32,32], index: 1, kind: input, shape index: {}]   ;;  %s4939_s2 = inlined_call_operand.vmem [shape: f32[32,32], index: 2, kind: input, shape index: {}]   ;;  %s4940_s3 = inlined_call_operand.vmem [shape: f32[32,32], index: 3, kind: input, shape index: {}]   ;;  %s4941_s4 = inlined_call_operand.vmem [shape: f32[32], index: 4, kind: output, shape index: {0}]   ;;  %s4942_s5 = inlined_call_operand.vmem [shape: f32[32], index: 5, kind: output, shape index: {1}]   ;;  %s4943_s6 = inlined_call_operand.vmem [shape: f32[32,32], index: 6, kind: output, shape index: {2}]   ;;  %s4944_s7 = inlined_call_operand.vmem [shape: f32[32,32], index: 7, kind: output, shape index: {3}]   ;;  %s4945_s8 = inlined_call_operand.vmem [shape: f32[32,32], index: 8, kind: output, shape index: {4}]   ;;  %s4946_s9 = inlined_call_operand.vmem [shape: f32[32,32], index: 9, kind: output, shape index: {5}]  }
   0x1   :  { %s20_s11 = scalar_lea.vmem %s4937_s0, 24 }
   0x2   :  { %p2563_p0 = scmp.gt.s32.totalorder %s4937_s0, %s20_s11 }
   0x3   :  { %s3990_s14 = smov (!%p2563_p0), [#allocation0]   ;;  %s3994_s17 = smov (!%p2563_p0), %s4937_s0  }
   0x4   :  { %2564 = sbr.rel (%p2563_p0) target bundleno = 17 (0x11), region = 559 }
   0x9 LB: > { %v54_v0 = vld [vmem:[%s3996_s17] sm:$0xff]  ;;  %s56_s17 = scalar_lea.vmem %s3996_s17, 8   ;;  %s3996_s17 = sphi %s3994_s17, %s56_s17   ;;  %s3992_s14 = sphi %s3990_s14, %s57_s14  }
   0xa   : > { %55 = vst [vmem:[%s3992_s14] sm:$0xff] %v54_v0  ;;  %s57_s14 = scalar_lea.vmem %s3992_s14, 8   ;;  %p51_p1 = scmp.gt.s32.totalorder %s56_s17, %s20_s11 }
   0xc   :  { %53 = sbr.rel (!%p51_p1) target bundleno = 9 (0x9), region = 565 }
  0x11 PF:  { %s76_s20 = scalar_lea.vmem %s4938_s1, 24 }
  0x12   :  { %p2583_p2 = scmp.gt.s32.totalorder %s4938_s1, %s76_s20 }
  0x13   :  { %s3998_s0 = smov (!%p2583_p2), [#allocation1]   ;;  %s4002_s25 = smov (!%p2583_p2), %s4938_s1  }
  0x14   :  { %2584 = sbr.rel (%p2583_p2) target bundleno = 33 (0x21), region = 581 }
  0x19 LB: > { %v110_v1 = vld [vmem:[%s4004_s25] sm:$0xff]  ;;  %s112_s25 = scalar_lea.vmem %s4004_s25, 8   ;;  %s4004_s25 = sphi %s4002_s25, %s112_s25   ;;  %s4000_s0 = sphi %s3998_s0, %s113_s0  }
  0x1a   : > { %111 = vst [vmem:[%s4000_s0] sm:$0xff] %v110_v1  ;;  %s113_s0 = scalar_lea.vmem %s4000_s0, 8   ;;  %p107_p3 = scmp.gt.s32.totalorder %s112_s25, %s76_s20 }
  0x1c   :  { %109 = sbr.rel (!%p107_p3) target bundleno = 25 (0x19), region = 587 }
  0x21 PF:  { %s132_s28 = scalar_lea.vmem %s4939_s2, 24 }
  0x22   :  { %p2603_p4 = scmp.gt.s32.totalorder %s4939_s2, %s132_s28 }
  0x23   :  { %s4006_s1 = smov (!%p2603_p4), [#allocation2]   ;;  %s4010_s12 = smov (!%p2603_p4), %s4939_s2  }
  0x24   :  { %2604 = sbr.rel (%p2603_p4) target bundleno = 49 (0x31), region = 603 }
  0x29 LB: > { %v166_v2 = vld [vmem:[%s4012_s12] sm:$0xff]  ;;  %s168_s12 = scalar_lea.vmem %s4012_s12, 8   ;;  %s4012_s12 = sphi %s4010_s12, %s168_s12   ;;  %s4008_s1 = sphi %s4006_s1, %s169_s1  }
  0x2a   : > { %167 = vst [vmem:[%s4008_s1] sm:$0xff] %v166_v2  ;;  %s169_s1 = scalar_lea.vmem %s4008_s1, 8   ;;  %p163_p5 = scmp.gt.s32.totalorder %s168_s12, %s132_s28 }
  0x2c   :  { %165 = sbr.rel (!%p163_p5) target bundleno = 41 (0x29), region = 609 }
  0x31 PF:  { %s188_s15 = scalar_lea.vmem %s4940_s3, 24 }
  0x32   :  { %p2623_p6 = scmp.gt.s32.totalorder %s4940_s3, %s188_s15 }
  0x33   :  { %s4014_s2 = smov (!%p2623_p6), [#allocation3]   ;;  %s4018_s20 = smov (!%p2623_p6), %s4940_s3  }
  0x34   :  { %2624 = sbr.rel (%p2623_p6) target bundleno = 65 (0x41), region = 625 }
  0x39 LB: > { %v222_v3 = vld [vmem:[%s4020_s20] sm:$0xff]  ;;  %s224_s20 = scalar_lea.vmem %s4020_s20, 8   ;;  %s4020_s20 = sphi %s4018_s20, %s224_s20   ;;  %s4016_s2 = sphi %s4014_s2, %s225_s2  }
  0x3a   : > { %223 = vst [vmem:[%s4016_s2] sm:$0xff] %v222_v3  ;;  %s225_s2 = scalar_lea.vmem %s4016_s2, 8   ;;  %p219_p7 = scmp.gt.s32.totalorder %s224_s20, %s188_s15 }
  0x3c   :  { %221 = sbr.rel (!%p219_p7) target bundleno = 57 (0x39), region = 631 }
  0x41 PF:  { %s235_s21 = smov [#allocation12]  ;;  %v236_v4 = vld [vmem:[#allocation0] sm:$0xff]  ;;  %v240_v5 = vld [vmem:[#allocation0 + $0x8] sm:$0xff]  ;;  %v244_v6 = vld [vmem:[#allocation0 + $0x10] sm:$0xff]  ;;  %s250_s3 = smov [#allocation13]  ;;  %v324_v20 = vlaneseq  ;;  %v4062_v21 = vmov 0.0  }
  0x42   :  { %237 = vst [vmem:[%s235_s21] sm:$0xff] %v236_v4  ;;  %v248_v7 = vld [vmem:[#allocation0 + $0x18] sm:$0xff]  ;;  %v251_v8 = vld [vmem:[#allocation1] sm:$0xff]  ;;  %v255_v9 = vld [vmem:[#allocation1 + $0x8] sm:$0xff]  ;;  %s265_s22 = smov [#allocation14]  ;;  %s280_s0 = smov [#allocation15] }
  0x43   :  { %2948 = vst [vmem:[%s235_s21 + $0x8] sm:$0xff] %v240_v5  ;;  %v259_v10 = vld [vmem:[#allocation1 + $0x10] sm:$0xff]  ;;  %v263_v11 = vld [vmem:[#allocation1 + $0x18] sm:$0xff]  ;;  %v266_v12 = vld [vmem:[#allocation2] sm:$0xff]  ;;  %v4151_v22 = vshrl.u32 %v324_v20, 7  ;;  %v4153_v23 = vand.u32 127, %v324_v20 }
  0x44   :  { %2949 = vst [vmem:[%s235_s21 + $0x10] sm:$0xff] %v244_v6  ;;  %v270_v13 = vld [vmem:[#allocation2 + $0x8] sm:$0xff]  ;;  %v274_v14 = vld [vmem:[#allocation2 + $0x10] sm:$0xff]  ;;  %v278_v15 = vld [vmem:[#allocation2 + $0x18] sm:$0xff]  ;;  %s4156_s23 = smov [#allocation8]  ;;  %s357_s24 = smov [#allocation11] }
  0x45   :  { %2950 = vst [vmem:[%s235_s21 + $0x18] sm:$0xff] %v248_v7  ;;  %v281_v16 = vld [vmem:[#allocation3] sm:$0xff]  ;;  %v285_v17 = vld [vmem:[#allocation3 + $0x8] sm:$0xff]  ;;  %v289_v18 = vld [vmem:[#allocation3 + $0x10] sm:$0xff]  ;;  %v329_v22 = vmov %v4151_v22  ;;  %v326_v23 = vmov %v4153_v23  ;;  %s2641_s25 = smov [#allocation12]  ;;  %vm2645_vm8 = vcmp.lt.s32.totalorder %v4153_v23, 32 }
  0x46   :  { %252 = vst [vmem:[%s250_s3] sm:$0xff] %v251_v8  ;;  %v293_v19 = vld [vmem:[#allocation3 + $0x18] sm:$0xff]  ;;  %v339_v24 = vadd.s32 8, %v329_v22  ;;  %v346_v25 = vadd.s32 16, %v329_v22  ;;  %v353_v26 = vadd.s32 24, %v329_v22  ;;  %vm333_vm0 = vcmp.eq.s32.totalorder %v329_v22, %v326_v23  ;;  %s2685_s26 = smov [#allocation13]  ;;  %s4185_s27 = smov [#allocation14] }
  0x47   :  { %2951 = vst [vmem:[%s250_s3 + $0x8] sm:$0xff] %v255_v9  ;;  %v363_v22 = vmov %v4151_v22  ;;  %s2755_s28 = smov [#allocation15] }
  0x48   :  { %2952 = vst [vmem:[%s250_s3 + $0x10] sm:$0xff] %v259_v10  ;;  %vm340_vm1 = vcmp.eq.s32.totalorder %v339_v24, %v326_v23  ;;  %vm347_vm2 = vcmp.eq.s32.totalorder %v346_v25, %v326_v23  ;;  %vm354_vm3 = vcmp.eq.s32.totalorder %v353_v26, %v326_v23  ;;  %v373_v35 = vadd.s32 8, %v363_v22 }
  0x49   :  { %2953 = vst [vmem:[%s250_s3 + $0x18] sm:$0xff] %v263_v11  ;;  %v380_v36 = vadd.s32 16, %v363_v22  ;;  %v360_v23 = vmov %v4153_v23  ;;  %v387_v37 = vadd.s32 24, %v363_v22 }
  0x4a   :  { %267 = vst [vmem:[%s265_s22] sm:$0xff] %v266_v12  ;;  %vm367_vm4 = vcmp.eq.s32.totalorder %v363_v22, %v360_v23  ;;  %vm374_vm5 = vcmp.eq.s32.totalorder %v373_v35, %v360_v23  ;;  %v2640_v22 = vmov %v4151_v22 }
  0x4b   :  { %2954 = vst [vmem:[%s265_s22 + $0x8] sm:$0xff] %v270_v13  ;;  %vm381_vm6 = vcmp.eq.s32.totalorder %v380_v36, %v360_v23  ;;  %vm388_vm7 = vcmp.eq.s32.totalorder %v387_v37, %v360_v23  ;;  %v2681_v23 = vmov %v4153_v23  ;;  %v2656_v0 = vadd.s32 8, %v2640_v22 }
  0x4c   :  { %2955 = vst [vmem:[%s265_s22 + $0x10] sm:$0xff] %v274_v14  ;;  %v2647_v46 = vld [vmem:[%s2641_s25] sm:$0xff]  ;;  %v2972_v47 = vld [vmem:[%s2641_s25 + $0x8] sm:$0xff]  ;;  %v2973_v48 = vld [vmem:[%s2641_s25 + $0x10] sm:$0xff]  ;;  %v2637_v23 = vmov %v4153_v23 }
  0x4d   :  { %2956 = vst [vmem:[%s265_s22 + $0x18] sm:$0xff] %v278_v15  ;;  %v2648_v49 = vsel %vm2645_vm8, %v2647_v46, 0.0  ;;  %v2654_v50 = vsel %vm2645_vm8, %v2972_v47, 0.0  ;;  %v2663_v51 = vsel %vm2645_vm8, %v2973_v48, 0.0  ;;  %v2974_v52 = vld [vmem:[%s2641_s25 + $0x18] sm:$0xff]  ;;  %vm2650_vm9 = vcmp.eq.s32.totalorder %v2640_v22, %v2637_v23 }
  0x4e   :  { %282 = vst [vmem:[%s280_s0] sm:$0xff] %v281_v16  ;;  %v2649_v54 = vmul.f32 %v2648_v49, %v2648_v49  ;;  %v2655_v55 = vmul.f32 %v2654_v50, %v2654_v50  ;;  %v2664_v56 = vmul.f32 %v2663_v51, %v2663_v51  ;;  %v2672_v57 = vsel %vm2645_vm8, %v2974_v52, 0.0 }
  0x4f   :  { %2957 = vst [vmem:[%s280_s0 + $0x8] sm:$0xff] %v285_v17  ;;  %v2673_v61 = vmul.f32 %v2672_v57, %v2672_v57  ;;  %vm2657_vm10 = vcmp.eq.s32.totalorder %v2656_v0, %v2637_v23  ;;  %v2665_v16 = vadd.s32 16, %v2640_v22  ;;  %v2674_v17 = vadd.s32 24, %v2640_v22 }
  0x50   :  { %2958 = vst [vmem:[%s280_s0 + $0x10] sm:$0xff] %v289_v18  ;;  %v2691_v53 = vld [vmem:[%s2685_s26] sm:$0xff]  ;;  %v2975_v58 = vld [vmem:[%s2685_s26 + $0x8] sm:$0xff]  ;;  %v2660_v60 = vadd.f32 %v2655_v55, %v2649_v54  ;;  %v2976_v62 = vld [vmem:[%s2685_s26 + $0x10] sm:$0xff]  ;;  %v2651_v10 = vsel %vm2650_vm9, 0.0, %v2649_v54  ;;  %v2658_v13 = vsel %vm2657_vm10, 0.0, %v2655_v55  ;;  %v2684_v22 = vmov %v4151_v22 }
  0x51   :  { %2959 = vst [vmem:[%s280_s0 + $0x18] sm:$0xff] %v293_v19  ;;  %v2692_v59 = vsel %vm2645_vm8, %v2691_v53, 0.0  ;;  %v2698_v63 = vsel %vm2645_vm8, %v2975_v58, 0.0  ;;  %v2977_v3 = vld [vmem:[%s2685_s26 + $0x18] sm:$0xff]  ;;  %v2704_v4 = vsel %vm2645_vm8, %v2976_v62, 0.0  ;;  %v2659_v15 = vadd.f32 %v2658_v13, %v2651_v10 }
  0x52   :  { %295 = vst [vmem:[#allocation8] sm:$0xff] %v4062_v21  ;;  %v2669_v1 = vadd.f32 %v2664_v56, %v2660_v60  ;;  %v2693_v2 = vmul.f32 %v2692_v59, %v2692_v59  ;;  %v2699_v6 = vmul.f32 %v2698_v63, %v2698_v63  ;;  %v2710_v8 = vsel %vm2645_vm8, %v2977_v3, 0.0 }
  0x53   :  { %297 = vst [vmem:[#allocation8 + $0x8] sm:$0xff] %v4062_v21  ;;  %v2705_v12 = vmul.f32 %v2704_v4, %v2704_v4  ;;  %v2711_v19 = vmul.f32 %v2710_v8, %v2710_v8  ;;  %vm2666_vm11 = vcmp.eq.s32.totalorder %v2665_v16, %v2637_v23  ;;  %vm2675_vm12 = vcmp.eq.s32.totalorder %v2674_v17, %v2637_v23 }
  0x54   :  { %299 = vst [vmem:[#allocation8 + $0x10] sm:$0xff] %v4062_v21  ;;  %v2678_v5 = vadd.f32 %v2673_v61, %v2669_v1  ;;  %v2726_v7 = vld [vmem:[%s4185_s27] sm:$0xff]  ;;  %v2978_v9 = vld [vmem:[%s4185_s27 + $0x8] sm:$0xff]  ;;  %v2716_v23 = vmov %v4153_v23  ;;  %v2980_v26 = vld [vmem:[%s4185_s27 + $0x18] sm:$0xff]  ;;  %v2719_v22 = vmov %v4151_v22 }
  0x55   :  { %301 = vst [vmem:[#allocation8 + $0x18] sm:$0xff] %v4062_v21  ;;  %v2727_v14 = vsel %vm2645_vm8, %v2726_v7, 0.0  ;;  %v2733_v20 = vsel %vm2645_vm8, %v2978_v9, 0.0  ;;  %v2754_v22 = vmov %v4151_v22  ;;  %v2751_v23 = vmov %v4153_v23 }
  0x56   :  { %302 = vst [vmem:[#allocation9] sm:$0xff] %v4062_v21  ;;  %v2695_v11 = vadd.f32 %v2693_v2, %v2678_v5  ;;  %v2728_v25 = vmul.f32 %v2727_v14, %v2727_v14  ;;  %v2772_v58 = vadd.s32 8, %v2754_v22  ;;  %vm2764_vm13 = vcmp.eq.s32.totalorder %v2754_v22, %v2751_v23 }
  0x57   :  { %304 = vst [vmem:[#allocation9 + $0x8] sm:$0xff] %v4062_v21  ;;  %v2781_v62 = vadd.s32 16, %v2754_v22  ;;  %v2790_v1 = vadd.s32 24, %v2754_v22 }
  0x58   :  { %306 = vst [vmem:[#allocation9 + $0x10] sm:$0xff] %v4062_v21  ;;  %v2701_v18 = vadd.f32 %v2699_v6, %v2695_v11  ;;  %v2983_v48 = vld [vmem:[%s2755_s28 + $0x18] sm:$0xff]  ;;  %vm2773_vm14 = vcmp.eq.s32.totalorder %v2772_v58, %v2751_v23 }
  0x59   :  { %308 = vst [vmem:[#allocation9 + $0x18] sm:$0xff] %v4062_v21  ;;  %v2788_v53 = vsel %vm2645_vm8, %v2983_v48, 0.0  ;;  %vm2782_vm15 = vcmp.eq.s32.totalorder %v2781_v62, %v2751_v23 }
  0x5a   :  { %309 = vst [vmem:[#allocation10] sm:$0xff] %v4062_v21  ;;  %v2707_v24 = vadd.f32 %v2705_v12, %v2701_v18  ;;  %v2789_v60 = vmul.f32 %v2788_v53, %v2788_v53 }
  0x5b   :  { %311 = vst [vmem:[#allocation10 + $0x8] sm:$0xff] %v4062_v21 }
  0x5c   :  { %313 = vst [vmem:[#allocation10 + $0x10] sm:$0xff] %v4062_v21  ;;  %v330_v27 = vld [vmem:[%s4156_s23] sm:$0xff]  ;;  %v2960_v28 = vld [vmem:[%s4156_s23 + $0x8] sm:$0xff]  ;;  %v2962_v29 = vld [vmem:[%s4156_s23 + $0x10] sm:$0xff] }
  0x5d   :  { %315 = vst [vmem:[#allocation10 + $0x18] sm:$0xff] %v4062_v21  ;;  %v334_v30 = vsel %vm333_vm0, 1.0, %v330_v27  ;;  %v2964_v31 = vld [vmem:[%s4156_s23 + $0x18] sm:$0xff]  ;;  %v341_v32 = vsel %vm340_vm1, 1.0, %v2960_v28  ;;  %v348_v33 = vsel %vm347_vm2, 1.0, %v2962_v29  ;;  %v2667_v27 = vsel %vm2666_vm11, 0.0, %v2664_v56 }
  0x5e   :  { %316 = vst [vmem:[#allocation11] sm:$0xff] %v4062_v21  ;;  %v355_v34 = vsel %vm354_vm3, 1.0, %v2964_v31  ;;  %v2676_v28 = vsel %vm2675_vm12, 0.0, %v2673_v61  ;;  %v2713_v31 = vadd.f32 %v2711_v19, %v2707_v24  ;;  %vm2791_vm0 = vcmp.eq.s32.totalorder %v2790_v1, %v2751_v23 }
  0x5f   :  { %318 = vst [vmem:[#allocation11 + $0x8] sm:$0xff] %v4062_v21  ;;  %v2792_v9 = vsel %vm2791_vm0, 0.0, %v2789_v60 }
  0x60   :  { %320 = vst [vmem:[#allocation11 + $0x10] sm:$0xff] %v4062_v21  ;;  %v2730_v36 = vadd.f32 %v2728_v25, %v2713_v31 }
  0x61   :  { %322 = vst [vmem:[#allocation11 + $0x18] sm:$0xff] %v4062_v21  ;;  %v2979_v21 = vld [vmem:[%s4185_s27 + $0x10] sm:$0xff] }
  0x62   :  { %335 = vst [vmem:[%s4156_s23] sm:$0xff] %v334_v30  ;;  %v2739_v29 = vsel %vm2645_vm8, %v2979_v21, 0.0  ;;  %v2668_v30 = vadd.f32 %v2667_v27, %v2659_v15 }
  0x63   :  { %2961 = vst [vmem:[%s4156_s23 + $0x8] sm:$0xff] %v341_v32  ;;  %v2734_v32 = vmul.f32 %v2733_v20, %v2733_v20  ;;  %v2740_v37 = vmul.f32 %v2739_v29, %v2739_v29 }
  0x64   :  { %2963 = vst [vmem:[%s4156_s23 + $0x10] sm:$0xff] %v348_v33  ;;  %v2761_v33 = vld [vmem:[%s2755_s28] sm:$0xff]  ;;  %v2677_v35 = vadd.f32 %v2676_v28, %v2668_v30 }
  0x65   :  { %2965 = vst [vmem:[%s4156_s23 + $0x18] sm:$0xff] %v355_v34  ;;  %v2745_v34 = vsel %vm2645_vm8, %v2980_v26, 0.0 }
  0x68   :  { %v364_v38 = vld [vmem:[%s357_s24] sm:$0xff]  ;;  %v2966_v39 = vld [vmem:[%s357_s24 + $0x8] sm:$0xff]  ;;  %v2968_v40 = vld [vmem:[%s357_s24 + $0x10] sm:$0xff] }
  0x69   :  { %v368_v41 = vsel %vm367_vm4, 1.0, %v364_v38  ;;  %v375_v42 = vsel %vm374_vm5, 1.0, %v2966_v39  ;;  %v382_v43 = vsel %vm381_vm6, 1.0, %v2968_v40  ;;  %v2970_v44 = vld [vmem:[%s357_s24 + $0x18] sm:$0xff]  ;;  %v2981_v38 = vld [vmem:[%s2755_s28 + $0x8] sm:$0xff]  ;;  %v2762_v39 = vsel %vm2645_vm8, %v2761_v33, 0.0 }
  0x6a   :  { %369 = vst [vmem:[%s357_s24] sm:$0xff] %v368_v41  ;;  %v389_v45 = vsel %vm388_vm7, 1.0, %v2970_v44  ;;  %v2694_v40 = vadd.f32 %v2693_v2, %v2677_v35  ;;  %v2736_v41 = vadd.f32 %v2734_v32, %v2730_v36  ;;  %v2770_v44 = vsel %vm2645_vm8, %v2981_v38, 0.0 }
  0x6b   :  { %2967 = vst [vmem:[%s357_s24 + $0x8] sm:$0xff] %v375_v42  ;;  %v2746_v42 = vmul.f32 %v2745_v34, %v2745_v34  ;;  %v2763_v47 = vmul.f32 %v2762_v39, %v2762_v39  ;;  %v2771_v52 = vmul.f32 %v2770_v44, %v2770_v44 }
  0x6c   :  { %2969 = vst [vmem:[%s357_s24 + $0x10] sm:$0xff] %v382_v43  ;;  %v2982_v43 = vld [vmem:[%s2755_s28 + $0x10] sm:$0xff]  ;;  %v2742_v46 = vadd.f32 %v2740_v37, %v2736_v41 }
  0x6d   :  { %2971 = vst [vmem:[%s357_s24 + $0x18] sm:$0xff] %v389_v45  ;;  %v2700_v45 = vadd.f32 %v2699_v6, %v2694_v40  ;;  %v2779_v49 = vsel %vm2645_vm8, %v2982_v43, 0.0  ;;  %v2765_v3 = vsel %vm2764_vm13, 0.0, %v2763_v47  ;;  %v2774_v5 = vsel %vm2773_vm14, 0.0, %v2771_v52 }
  0x6e   :  { %v2748_v51 = vadd.f32 %v2746_v42, %v2742_v46  ;;  %v2780_v56 = vmul.f32 %v2779_v49, %v2779_v49 }
  0x6f   :  { %v2706_v50 = vadd.f32 %v2705_v12, %v2700_v45 }
  0x70   :  { %v2767_v55 = vadd.f32 %v2763_v47, %v2748_v51  ;;  %v2783_v7 = vsel %vm2782_vm15, 0.0, %v2780_v56 }
  0x71   :  { %v2712_v54 = vadd.f32 %v2711_v19, %v2706_v50 }
  0x72   :  { %v2776_v59 = vadd.f32 %v2771_v52, %v2767_v55 }
  0x73   :  { %v2729_v57 = vadd.f32 %v2728_v25, %v2712_v54 }
  0x74   :  { %v2785_v63 = vadd.f32 %v2780_v56, %v2776_v59 }
  0x75   :  { %v2735_v61 = vadd.f32 %v2734_v32, %v2729_v57 }
  0x76   :  { %v2794_v2 = vadd.f32 %v2789_v60, %v2785_v63 }
  0x77   :  { %v2741_v0 = vadd.f32 %v2740_v37, %v2735_v61 }
  0x78   :  { %2795 = vadd.xlane.f32.xlu0 %v2794_v2 }
  0x79   :  { %v2747_v4 = vadd.f32 %v2746_v42, %v2741_v0 }
  0x7b   :  { %v2766_v6 = vadd.f32 %v2765_v3, %v2747_v4 }
  0x7d   :  { %v2775_v8 = vadd.f32 %v2774_v5, %v2766_v6 }
  0x7f   :  { %v2784_v10 = vadd.f32 %v2783_v7, %v2775_v8 }
  0x81   :  { %v2793_v11 = vadd.f32 %v2792_v9, %v2784_v10 }
  0x83   :  { %2803 = vadd.xlane.f32.xlu0 %v2793_v11 }
  0xeb   :  { %v2796_v12 = vpop.xlane.xlu0 %2795 }
  0xec   :  { %v2797_v13 = vrot.slane %v2796_v12, 4 }
  0xee   :  { %v2798_v14 = vadd.f32 %v2797_v13, %v2796_v12 }
  0xf0   :  { %v2799_v15 = vrot.slane %v2798_v14, 2 }
  0xf2   :  { %v2800_v19 = vadd.f32 %v2799_v15, %v2798_v14 }
  0xf4   :  { %v2801_v24 = vrot.slane %v2800_v19, 1 }
  0xf6   :  { %v2804_v16 = vpop.xlane.xlu0 %2803  ;;  %v2802_v27 = vadd.f32 %v2801_v24, %v2800_v19 }
  0xf7   :  { %v2805_v17 = vrot.slane %v2804_v16, 4 }
  0xf9   :  { %v2806_v18 = vadd.f32 %v2805_v17, %v2804_v16 }
  0xfb   :  { %v2807_v20 = vrot.slane %v2806_v18, 2 }
  0xfd   :  { %v2808_v21 = vadd.f32 %v2807_v20, %v2806_v18 }
  0xff   :  { %v2809_v25 = vrot.slane %v2808_v21, 1 }
 0x101   :  { %v2810_v26 = vadd.f32 %v2809_v25, %v2808_v21 }
 0x103   :  { %3271 = vpush %v2810_v26 }
 0x104   :  { %3273 = vpush %v2802_v27 }
 0x134   :  { %s3272_s29 = spop %3271 }
 0x135   :  { %s3274_s30 = spop %3273 }
 0x136   :  { %s2813_s1 = smul.f32 1e-10, %s3274_s30 }
 0x138   :  { %p2814_p8 = scmp.le.f32.partialorder %s3272_s29, %s2813_s1 }
 0x139   :  { %s4216_s10 = smov (!%p2814_p8), 0  }
 0x13a   :  { %2817 = sbr.rel (%p2814_p8) target bundleno = 1157 (0x485), region = 647 }
 0x13f LB: > { %s4221_s11 = smov 0   ;;  %s4024_s10 = sphi %s4216_s10, %s4947_s10  }
 0x140 LB: >> { %s591_s12 = smov [#allocation12]  ;;  %v595_v23 = vmov %v4153_v23  ;;  %v598_v22 = vmov %v4151_v22  ;;  %s629_s13 = smov [#allocation13]  ;;  %s4028_s11 = sphi %s4221_s11, %s590_s11  }
 0x141   : >> { %v633_v23 = vmov %v4153_v23  ;;  %v636_v22 = vmov %v4151_v22  ;;  %v599_v28 = vld [vmem:[%s591_s12] sm:$0xff]  ;;  %vm602_vm1 = vcmp.eq.s32.totalorder %v598_v22, %v595_v23  ;;  %v2984_v29 = vld [vmem:[%s591_s12 + $0x8] sm:$0xff]  ;;  %v607_v30 = vadd.s32 8, %v598_v22  ;;  %v2985_v34 = vld [vmem:[%s591_s12 + $0x10] sm:$0xff]  ;;  %s667_s14 = smov [#allocation15]  ;;  %s592_s15 = smov [#allocation16] }
 0x142   : >> { %v613_v31 = vadd.s32 16, %v598_v22  ;;  %v619_v32 = vadd.s32 24, %v598_v22  ;;  %v603_v33 = vsel %vm602_vm1, %v599_v28, 0.0  ;;  %v2986_v35 = vld [vmem:[%s591_s12 + $0x18] sm:$0xff]  ;;  %vm640_vm2 = vcmp.eq.s32.totalorder %v636_v22, %v633_v23  ;;  %v637_v38 = vld [vmem:[%s629_s13] sm:$0xff]  ;;  %v2987_v39 = vld [vmem:[%s629_s13 + $0x8] sm:$0xff] }
 0x143   : >> { %v645_v36 = vadd.s32 8, %v636_v22  ;;  %v651_v37 = vadd.s32 16, %v636_v22  ;;  %vm608_vm3 = vcmp.eq.s32.totalorder %v607_v30, %v595_v23  ;;  %v2988_v40 = vld [vmem:[%s629_s13 + $0x10] sm:$0xff]  ;;  %v657_v41 = vadd.s32 24, %v636_v22  ;;  %v2989_v44 = vld [vmem:[%s629_s13 + $0x18] sm:$0xff]  ;;  %v675_v47 = vld [vmem:[%s667_s14] sm:$0xff] }
 0x144   : >> { %vm614_vm4 = vcmp.eq.s32.totalorder %v613_v31, %v595_v23  ;;  %vm620_vm5 = vcmp.eq.s32.totalorder %v619_v32, %v595_v23  ;;  %v609_v42 = vsel %vm608_vm3, %v2984_v29, %v603_v33  ;;  %v641_v43 = vsel %vm640_vm2, %v637_v38, 0.0  ;;  %v2990_v52 = vld [vmem:[%s667_s14 + $0x8] sm:$0xff]  ;;  %v2991_v56 = vld [vmem:[%s667_s14 + $0x10] sm:$0xff]  ;;  %v2992_v60 = vld [vmem:[%s667_s14 + $0x18] sm:$0xff]  ;;  %s630_s16 = smov [#allocation17]  ;;  %s668_s17 = smov [#allocation18] }
 0x145   : >> { %vm646_vm6 = vcmp.eq.s32.totalorder %v645_v36, %v633_v23  ;;  %vm652_vm7 = vcmp.eq.s32.totalorder %v651_v37, %v633_v23  ;;  %v615_v45 = vsel %vm614_vm4, %v2985_v34, %v609_v42  ;;  %vm658_vm9 = vcmp.eq.s32.totalorder %v657_v41, %v633_v23  ;;  %s709_s2 = smov [#allocation17]  ;;  %s707_s18 = smov [#allocation16] }
 0x146   : >> { %v647_v46 = vsel %vm646_vm6, %v2987_v39, %v641_v43  ;;  %v671_v23 = vmov %v4153_v23  ;;  %v621_v48 = vsel %vm620_vm5, %v2986_v35, %v615_v45  ;;  %v674_v22 = vmov %v4151_v22  ;;  %s711_s19 = smov [#allocation18]  ;;  %s786_s20 = smov [#allocation19] }
 0x147   : >> { %v653_v49 = vsel %vm652_vm7, %v2988_v40, %v647_v46  ;;  %v622_v50 = vrot.slane %v621_v48, 4  ;;  %vm678_vm10 = vcmp.eq.s32.totalorder %v674_v22, %v671_v23  ;;  %v683_v53 = vadd.s32 8, %v674_v22  ;;  %s788_s21 = smov [#allocation20]  ;;  %s705_s3 = smov [#allocation21] }
 0x148   : >> { %v659_v51 = vsel %vm658_vm9, %v2989_v44, %v653_v49  ;;  %v679_v55 = vsel %vm678_vm10, %v675_v47, 0.0  ;;  %v689_v57 = vadd.s32 16, %v674_v22  ;;  %v695_v58 = vadd.s32 24, %v674_v22  ;;  %s706_s22 = smov [#allocation22]  ;;  %s790_s3 = smov %s705_s3 }
 0x149   : >> { %v660_v54 = vrot.slane %v659_v51, 4  ;;  %v623_v59 = vadd.f32 %v622_v50, %v621_v48  ;;  %vm684_vm11 = vcmp.eq.s32.totalorder %v683_v53, %v671_v23  ;;  %v816_v22 = vmov %v4151_v22  ;;  %s792_s22 = smov %s706_s22  ;;  %s809_s0 = smov [#allocation21] }
 0x14a   : >> { %v685_v62 = vsel %vm684_vm11, %v2990_v52, %v679_v55  ;;  %vm690_vm12 = vcmp.eq.s32.totalorder %v689_v57, %v671_v23  ;;  %vm696_vm13 = vcmp.eq.s32.totalorder %v695_v58, %v671_v23  ;;  %v832_v22 = vmov %v4151_v22  ;;  %s794_s23 = smov [#allocation21]  ;;  %s825_s24 = smov [#allocation21] }
 0x14b   : >> { %v661_v61 = vadd.f32 %v660_v54, %v659_v51  ;;  %v624_v63 = vrot.slane %v623_v59, 2  ;;  %v691_v0 = vsel %vm690_vm12, %v2991_v56, %v685_v62  ;;  %v813_v23 = vmov %v4153_v23  ;;  %s872_s25 = smov [#allocation22]  ;;  %s857_s26 = smov [#allocation22] }
 0x14c   : >> { %v697_v2 = vsel %vm696_vm13, %v2992_v60, %v691_v0  ;;  %v798_v23 = vmov %v4153_v23  ;;  %s888_s27 = smov [#allocation22]  ;;  %s904_s28 = smov [#allocation22] }
 0x14d   : >> { %v662_v1 = vrot.slane %v661_v61, 2  ;;  %v625_v3 = vadd.f32 %v624_v63, %v623_v59  ;;  %v698_v4 = vrot.slane %v697_v2, 4  ;;  %v829_v23 = vmov %v4153_v23  ;;  %s841_s29 = smov [#allocation21]  ;;  %s807_s30 = smov [#allocation23] }
 0x14e   : >> { %s822_s1 = smov [#allocation23]  ;;  %s838_s12 = smov [#allocation23] }
 0x14f   : >> { %v663_v5 = vadd.f32 %v662_v1, %v661_v61  ;;  %v626_v6 = vrot.slane %v625_v3, 1  ;;  %v699_v7 = vadd.f32 %v698_v4, %v697_v2  ;;  %s870_s13 = smov [#allocation24]  ;;  %s885_s14 = smov [#allocation24] }
 0x150   : >> { %s590_s11 = sadd.s32 1, %s4028_s11  }
 0x151   : >> { %v664_v8 = vrot.slane %v663_v5, 1  ;;  %v627_v9 = vadd.f32 %v626_v6, %v625_v3  ;;  %v700_v10 = vrot.slane %v699_v7, 2  ;;  %p587_p9 = scmp.ge.s32.totalorder %s590_s11, 63  }
 0x152   : > { %s4879_s11 = smov (%p587_p9), [#allocation14] }
 0x153   : >> { %v665_v11 = vadd.f32 %v664_v8, %v663_v5  ;;  %628 = vst [vmem:[%s592_s15] sm:$0x1] %v627_v9  ;;  %v701_v12 = vadd.f32 %v700_v10, %v699_v7  ;;  %s901_s15 = smov [#allocation24] }
 0x155   : >> { %666 = vst [vmem:[%s630_s16] sm:$0x1] %v665_v11  ;;  %v702_v13 = vrot.slane %v701_v12, 1  ;;  %s917_s16 = smov [#allocation24] }
 0x157   : >> { %v703_v14 = vadd.f32 %v702_v13, %v701_v12  ;;  %v817_v13 = vadd.s32 8, %v816_v22  ;;  %v801_v22 = vmov %v4151_v22 }
 0x159   : >> { %704 = vst [vmem:[%s668_s17] sm:$0x1] %v703_v14  ;;  %v833_v14 = vadd.s32 16, %v832_v22  ;;  %v879_v22 = vmov %v4151_v22  ;;  %s854_s17 = smov [#allocation23] }
 0x15a   : >> { %v708_v24 = vld [vmem:[%s707_s18] sm:$0xff]  ;;  %s4256_s18 = smov [#allocation13] }
 0x15b   : >> { %v762_v48 = vand.u32 2147483647, %v708_v24 }
 0x15c   : >> { %v4233_v15 = vld [vmem:[%s709_s2] sm:$0xff]  ;;  %s4254_s2 = smov [#allocation12] }
 0x15d   : >> { %v714_v16 = vmul.f32 2.0, %v4233_v15  ;;  %v763_v56 = vand.u32 2147483647, %v4233_v15 }
 0x15f   : >> { %3750 = vrcp.f32 %v714_v16  ;;  %v726_v19 = vand.u32 2147483648, %v714_v16  ;;  %vm720_vm14 = vweird.f32 %v714_v16  ;;  %v724_v21 = vand.u32 2147483647, %v714_v16 }
 0x160   : >> { %v712_v25 = vld [vmem:[%s711_s19] sm:$0xff]  ;;  %s4258_s19 = smov [#allocation14] }
 0x161   : >> { %v727_v27 = vor.u32 1.1754944e-38, %v726_v19  ;;  %v713_v28 = vsub.f32 %v712_v25, %v708_v24  ;;  %vm725_vm1 = vcmp.eq.f32.partialorder %v724_v21, 8.507059e+37  ;;  %v764_v49 = vand.u32 2147483647, %v712_v25 }
 0x163   : >> { %v765_v51 = vmin.f32 %v762_v48, %v764_v49 }
 0x165   : >> { %v3751_v17 = vpop.eup %3750  ;;  %v766_v57 = vmul.f32 1.1920929e-08, %v765_v51 }
 0x166   : >> { %v716_v18 = vmul.f32 %v3751_v17, %v714_v16  ;;  %vm721_vm15 = vweird.f32 %v3751_v17 }
 0x167   : >> { %vm722_vm0 = vmor %vm720_vm14, %vm721_vm15  ;;  %vm767_vm10 = vcmp.le.f32.partialorder %v763_v56, %v766_v57  ;;  %vm818_vm14 = vcmp.eq.s32.totalorder %v817_v13, %v813_v23  ;;  %vm803_vm15 = vcmp.eq.s32.totalorder %v801_v22, %v798_v23  ;;  %v895_v22 = vmov %v4151_v22 }
 0x168   : >> { %v717_v20 = vsub.f32 1.0, %v716_v18  ;;  %v896_v21 = vadd.s32 16, %v895_v22 }
 0x16a   : >> { %v718_v26 = vmul.f32 %v3751_v17, %v717_v20 }
 0x16c   : >> { %v719_v29 = vadd.f32 %v3751_v17, %v718_v26 }
 0x16e   : >> { %v723_v30 = vsel %vm722_vm0, %v3751_v17, %v719_v29  ;;  %vm834_vm0 = vcmp.eq.s32.totalorder %v833_v14, %v829_v23  ;;  %v876_v23 = vmov %v4153_v23  ;;  %v880_v17 = vadd.s32 8, %v879_v22 }
 0x16f   : >> { %v728_v31 = vsel %vm725_vm1, %v727_v27, %v723_v30  ;;  %v861_v23 = vmov %v4153_v23  ;;  %v864_v22 = vmov %v4151_v22 }
 0x170   : >> { %v729_v32 = vmul.f32 %v728_v31, %v713_v28  ;;  %v892_v23 = vmov %v4153_v23  ;;  %vm881_vm1 = vcmp.eq.s32.totalorder %v880_v17, %v876_v23 }
 0x172   : >> { %v731_v33 = vmul.f32 %v729_v32, %v729_v32  ;;  %vm730_vm4 = vcmp.ge.f32.partialorder %v729_v32, 0.0 }
 0x174   : >> { %v732_v34 = vadd.f32 1.0, %v731_v33 }
 0x176   : >> { %3752 = vrsqrt.f32 %v732_v34  ;;  %vm740_vm2 = vcmp.eq.f32.partialorder %v732_v34, inf  ;;  %v743_v41 = vand.u32 2147483648, %v732_v34  ;;  %vm742_vm3 = vcmp.eq.f32.partialorder %v732_v34, 0.0 }
 0x17c   : >> { %v3753_v35 = vpop.eup %3752 }
 0x17d   : >> { %v734_v36 = vmul.f32 %v3753_v35, %v732_v34 }
 0x17f   : >> { %v735_v37 = vmul.f32 %v3753_v35, %v734_v36 }
 0x181   : >> { %v736_v38 = vmul.f32 0.5, %v735_v37 }
 0x183   : >> { %v737_v39 = vsub.f32 1.5, %v736_v38 }
 0x185   : >> { %v738_v40 = vmul.f32 %v3753_v35, %v737_v39 }
 0x187   : >> { %v739_v42 = vmul.f32 %v738_v40, %v732_v34 }
 0x189   : >> { %v741_v43 = vsel %vm740_vm2, %v732_v34, %v739_v42  ;;  %vm866_vm2 = vcmp.eq.s32.totalorder %v864_v22, %v861_v23  ;;  %v911_v22 = vmov %v4151_v22 }
 0x18a   : >> { %v744_v44 = vsel %vm742_vm3, %v743_v41, %v741_v43  ;;  %vm897_vm3 = vcmp.eq.s32.totalorder %v896_v21, %v892_v23  ;;  %v848_v22 = vmov %v4151_v22  ;;  %v912_v31 = vadd.s32 24, %v911_v22 }
 0x18b   : >> { %v745_v45 = vxor.u32 2147483648, %v744_v44  ;;  %v908_v23 = vmov %v4153_v23 }
 0x18c   : >> { %v845_v23 = vmov %v4153_v23 }
 0x18d   : >> { %v746_v46 = vsel %vm730_vm4, %v744_v44, %v745_v45  ;;  %vm913_vm4 = vcmp.eq.s32.totalorder %v912_v31, %v908_v23  ;;  %v928_v45 = vld [vmem:[%s4254_s2] sm:$0xff] }
 0x18e   : >> { %v747_v47 = vadd.f32 %v746_v46, %v729_v32  ;;  %v849_v32 = vadd.s32 24, %v848_v22  ;;  %v929_v46 = vld [vmem:[%s4256_s18] sm:$0xff] }
 0x190   : >> { %3754 = vrcp.f32 %v747_v47  ;;  %v759_v53 = vand.u32 2147483648, %v747_v47  ;;  %vm753_vm5 = vweird.f32 %v747_v47  ;;  %v757_v55 = vand.u32 2147483647, %v747_v47 }
 0x192   : >> { %v760_v59 = vor.u32 1.1754944e-38, %v759_v53  ;;  %vm758_vm9 = vcmp.eq.f32.partialorder %v757_v55, 8.507059e+37 }
 0x196   : >> { %v3755_v50 = vpop.eup %3754 }
 0x197   : >> { %v749_v52 = vmul.f32 %v3755_v50, %v747_v47  ;;  %vm754_vm6 = vweird.f32 %v3755_v50  ;;  %v930_v47 = vld [vmem:[%s4258_s19] sm:$0xff] }
 0x198   : >> { %vm755_vm7 = vmor %vm753_vm5, %vm754_vm6  ;;  %vm850_vm5 = vcmp.eq.s32.totalorder %v849_v32, %v845_v23  ;;  %vm1584_vm6 = vcmp.eq.s32.totalorder %v4151_v22, 0  ;;  %v1204_v23 = vmov %v4153_v23 }
 0x199   : >> { %v750_v54 = vsub.f32 1.0, %v749_v52  ;;  %v1166_v23 = vmov %v4153_v23 }
 0x19b   : >> { %v751_v58 = vmul.f32 %v3755_v50, %v750_v54 }
 0x19d   : >> { %v752_v60 = vadd.f32 %v3755_v50, %v751_v58 }
 0x19f   : >> { %v756_v61 = vsel %vm755_vm7, %v3755_v50, %v752_v60  ;;  %vm1630_vm7 = vcmp.eq.s32.totalorder %v4151_v22, 7  ;;  %v1207_v22 = vmov %v4151_v22 }
 0x1a0   : >> { %v761_v62 = vsel %vm758_vm9, %v760_v59, %v756_v61  ;;  %v1169_v22 = vmov %v4151_v22  ;;  %vm1211_vm9 = vcmp.eq.s32.totalorder %v1207_v22, %v1204_v23 }
 0x1a1   : >> { %v768_v63 = vsel %vm767_vm10, 0.0, %v761_v62 }
 0x1a2   : >> { %v769_v0 = vmul.f32 %v768_v63, %v768_v63  ;;  %v782_v1 = vmul.f32 %v768_v63, %v4233_v15 }
 0x1a4   : >> { %v770_v2 = vadd.f32 1.0, %v769_v0  ;;  %v783_v3 = vsub.f32 %v708_v24, %v782_v1  ;;  %v785_v4 = vadd.f32 %v782_v1, %v712_v25 }
 0x1a6   : >> { %3756 = vrsqrt.f32 %v770_v2  ;;  %787 = vst [vmem:[%s786_s20] sm:$0xff] %v783_v3  ;;  %vm777_vm11 = vweird.f32 %v770_v2  ;;  %s4260_s20 = smov [#allocation15] }
 0x1a7   : >> { %789 = vst [vmem:[%s788_s21] sm:$0xff] %v785_v4  ;;  %s922_s21 = smov [#allocation24]  ;;  %v931_v48 = vld [vmem:[%s4260_s20] sm:$0xff] }
 0x1ac   : >> { %v3757_v5 = vpop.eup %3756 }
 0x1ad   : >> { %v772_v6 = vmul.f32 %v3757_v5, %v770_v2  ;;  %vm778_vm12 = vweird.f32 %v3757_v5 }
 0x1ae   : >> { %vm779_vm13 = vmor %vm777_vm11, %vm778_vm12 }
 0x1af   : >> { %v773_v7 = vmul.f32 %v3757_v5, %v772_v6 }
 0x1b1   : >> { %v774_v8 = vmul.f32 0.5, %v773_v7 }
 0x1b3   : >> { %v775_v9 = vsub.f32 1.5, %v774_v8 }
 0x1b5   : >> { %v776_v10 = vmul.f32 %v3757_v5, %v775_v9 }
 0x1b7   : >> { %v780_v11 = vsel %vm779_vm13, %v3757_v5, %v776_v10  ;;  %vm1174_vm13 = vcmp.eq.s32.totalorder %v1169_v22, %v1166_v23 }
 0x1b8   : >> { %791 = vst [vmem:[%s790_s3] sm:$0xff] %v780_v11  ;;  %v781_v12 = vmul.f32 %v780_v11, %v768_v63  ;;  %s1746_s3 = smov [#allocation24] }
 0x1ba   : >> { %793 = vst [vmem:[%s792_s22] sm:$0xff] %v781_v12  ;;  %s4263_s22 = smov [#allocation8] }
 0x1bb   : >> { %v1752_v49 = vld [vmem:[%s4263_s22] sm:$0xff] }
 0x1bf   : >> { %v810_v15 = vld [vmem:[%s809_s0] ss:$0 sm:$0xff]  ;;  %s4265_s0 = smov [#allocation9] }
 0x1c0   : >> { %v795_v16 = vld [vmem:[%s794_s23] ss:$0 sm:$0xff]  ;;  %v819_v18 = vsel %vm818_vm14, %v810_v15, 0.0  ;;  %s4270_s23 = smov [#allocation10] }
 0x1c1   : >> { %v804_v19 = vsel %vm803_vm15, %v795_v16, 0.0  ;;  %v826_v20 = vld [vmem:[%s825_s24] ss:$0 sm:$0xff]  ;;  %820 = vadd.xlane.f32.xlu1 %v819_v18  ;;  %s4272_s24 = smov [#allocation11] }
 0x1c2   : >> { %805 = vadd.xlane.f32.xlu0 %v804_v19  ;;  %v835_v24 = vsel %vm834_vm0, %v826_v20, 0.0  ;;  %v873_v25 = vld [vmem:[%s872_s25] ss:$0 sm:$0xff]  ;;  %s920_s25 = smov [#allocation23] }
 0x1c3   : >> { %836 = vadd.xlane.f32.xlu2 %v835_v24  ;;  %v858_v26 = vld [vmem:[%s857_s26] ss:$0 sm:$0xff]  ;;  %v882_v28 = vsel %vm881_vm1, %v873_v25, 0.0  ;;  %s1744_s26 = smov [#allocation23] }
 0x1c4   : >> { %v889_v27 = vld [vmem:[%s888_s27] ss:$0 sm:$0xff]  ;;  %v867_v29 = vsel %vm866_vm2, %v858_v26, 0.0  ;;  %s951_s27 = smov [#allocation24] }
 0x1c5   : >> { %v898_v30 = vsel %vm897_vm3, %v889_v27, 0.0  ;;  %v905_v33 = vld [vmem:[%s904_s28] ss:$0 sm:$0xff]  ;;  %s948_s28 = smov [#allocation23] }
 0x1c6   : >> { %v842_v34 = vld [vmem:[%s841_s29] ss:$0 sm:$0xff]  ;;  %v914_v35 = vsel %vm913_vm4, %v905_v33, 0.0  ;;  %s4282_s29 = smov [#allocation12] }
 0x1c7   : >> { %v851_v36 = vsel %vm850_vm5, %v842_v34, 0.0  ;;  %v1753_v50 = vld [vmem:[%s4265_s0] sm:$0xff] }
 0x1c8   : >> { %v1754_v52 = vld [vmem:[%s4270_s23] sm:$0xff] }
 0x1c9   : >> { %883 = vadd.xlane.f32.xlu1 %v882_v28  ;;  %v1755_v53 = vld [vmem:[%s4272_s24] sm:$0xff] }
 0x1ca   : >> { %868 = vadd.xlane.f32.xlu0 %v867_v29 }
 0x1cb   : >> { %899 = vadd.xlane.f32.xlu2 %v898_v30 }
 0x1d1   : >> { %915 = vadd.xlane.f32.xlu1 %v914_v35 }
 0x1d2   : >> { %852 = vadd.xlane.f32.xlu0 %v851_v36 }
 0x234   : >> { %v821_v37 = vpop.xlane.xlu1 %820 }
 0x235   : >> { %v806_v38 = vpop.xlane.xlu0 %805 }
 0x236   : >> { %808 = vst [vmem:[%s807_s30] sm:$0xff] %v806_v38  ;;  %v837_v39 = vpop.xlane.xlu2 %836  ;;  %s4285_s30 = smov [#allocation13] }
 0x237   : >> { %2993 = vst [vmem:[%s822_s1 + $0x8] sm:$0xff] %v821_v37  ;;  %s4288_s1 = smov [#allocation14] }
 0x238   : >> { %2994 = vst [vmem:[%s838_s12 + $0x10] sm:$0xff] %v837_v39  ;;  %s1775_s12 = smov [#allocation24] }
 0x23c   : >> { %v884_v40 = vpop.xlane.xlu1 %883 }
 0x23d   : >> { %v869_v41 = vpop.xlane.xlu0 %868 }
 0x23e   : >> { %871 = vst [vmem:[%s870_s13] sm:$0xff] %v869_v41  ;;  %v900_v42 = vpop.xlane.xlu2 %899  ;;  %s4291_s13 = smov [#allocation15] }
 0x23f   : >> { %2996 = vst [vmem:[%s885_s14 + $0x8] sm:$0xff] %v884_v40  ;;  %s1772_s14 = smov [#allocation23] }
 0x240   : >> { %2997 = vst [vmem:[%s901_s15 + $0x10] sm:$0xff] %v900_v42  ;;  %s4295_s15 = smov [#allocation8] }
 0x244   : >> { %v916_v43 = vpop.xlane.xlu1 %915 }
 0x245   : >> { %v853_v44 = vpop.xlane.xlu0 %852  ;;  %2998 = vst [vmem:[%s917_s16 + $0x18] sm:$0xff] %v916_v43  ;;  %s4298_s16 = smov [#allocation9] }
 0x246   : >> { %2995 = vst [vmem:[%s854_s17 + $0x18] sm:$0xff] %v853_v44  ;;  %s4301_s17 = smov [#allocation10] }
 0x24c   : >> { %v923_v51 = vld [vmem:[%s922_s21] sm:$0xff]  ;;  %v3000_v17 = vld [vmem:[%s951_s27 + $0x8] sm:$0xff]  ;;  %s4317_s21 = smov [#allocation13]  ;;  %s4336_s27 = smov [#allocation11] }
 0x24d   : >> { %v933_v54 = vmul.f32 %v930_v47, %v923_v51  ;;  %v936_v55 = vmul.f32 %v931_v48, %v923_v51  ;;  %v938_v56 = vmul.f32 %v928_v45, %v923_v51  ;;  %v941_v57 = vmul.f32 %v929_v46, %v923_v51  ;;  %v1747_v58 = vld [vmem:[%s1746_s3] sm:$0xff]  ;;  %v2999_v18 = vld [vmem:[%s948_s28 + $0x8] sm:$0xff]  ;;  %s4320_s3 = smov [#allocation14]  ;;  %s1019_s28 = smov [#allocation24] }
 0x24e   : >> { %v921_v59 = vld [vmem:[%s920_s25] sm:$0xff]  ;;  %v1757_v0 = vmul.f32 %v1754_v52, %v1747_v58  ;;  %v1760_v1 = vmul.f32 %v1755_v53, %v1747_v58  ;;  %v1762_v2 = vmul.f32 %v1752_v49, %v1747_v58  ;;  %v1765_v3 = vmul.f32 %v1753_v50, %v1747_v58  ;;  %v3158_v31 = vld [vmem:[%s1775_s12 + $0x8] sm:$0xff]  ;;  %s4330_s25 = smov [#allocation9]  ;;  %s4352_s12 = smov [#allocation15] }
 0x24f   : >> { %v932_v60 = vmul.f32 %v928_v45, %v921_v59  ;;  %v935_v61 = vmul.f32 %v929_v46, %v921_v59  ;;  %v939_v62 = vmul.f32 %v930_v47, %v921_v59  ;;  %v942_v63 = vmul.f32 %v931_v48, %v921_v59  ;;  %v1745_v4 = vld [vmem:[%s1744_s26] sm:$0xff]  ;;  %v3157_v34 = vld [vmem:[%s1772_s14 + $0x8] sm:$0xff]  ;;  %s4333_s26 = smov [#allocation10]  ;;  %s4357_s14 = smov [#allocation13] }
 0x250   : >> { %v1756_v9 = vmul.f32 %v1752_v49, %v1745_v4  ;;  %v1759_v10 = vmul.f32 %v1753_v50, %v1745_v4  ;;  %v1763_v11 = vmul.f32 %v1754_v52, %v1745_v4  ;;  %v1766_v12 = vmul.f32 %v1755_v53, %v1745_v4 }
 0x251   : >> { %v934_v5 = vsub.f32 %v932_v60, %v933_v54  ;;  %v937_v6 = vsub.f32 %v935_v61, %v936_v55  ;;  %v940_v7 = vadd.f32 %v939_v62, %v938_v56  ;;  %v943_v8 = vadd.f32 %v942_v63, %v941_v57 }
 0x252   : >> { %v1758_v13 = vsub.f32 %v1756_v9, %v1757_v0  ;;  %v1761_v14 = vsub.f32 %v1759_v10, %v1760_v1  ;;  %v1764_v15 = vadd.f32 %v1763_v11, %v1762_v2  ;;  %v1767_v16 = vadd.f32 %v1766_v12, %v1765_v3 }
 0x253   : >> { %944 = vst [vmem:[%s4254_s2] sm:$0xff] %v934_v5  ;;  %s4304_s2 = smov [#allocation11] }
 0x254   : >> { %945 = vst [vmem:[%s4256_s18] sm:$0xff] %v937_v6  ;;  %s985_s18 = smov [#allocation24] }
 0x255   : >> { %946 = vst [vmem:[%s4258_s19] sm:$0xff] %v940_v7  ;;  %s982_s19 = smov [#allocation23]  ;;  %v3010_v55 = vld [vmem:[%s985_s18 + $0x10] sm:$0xff]  ;;  %s4368_s18 = smov [#allocation11] }
 0x256   : >> { %947 = vst [vmem:[%s4260_s20] sm:$0xff] %v943_v8  ;;  %s4314_s20 = smov [#allocation12]  ;;  %v3009_v56 = vld [vmem:[%s982_s19 + $0x10] sm:$0xff]  ;;  %s4382_s19 = smov [#allocation21] }
 0x257   : >> { %1768 = vst [vmem:[%s4263_s22] sm:$0xff] %v1758_v13  ;;  %s1809_s22 = smov [#allocation24] }
 0x258   : >> { %1769 = vst [vmem:[%s4265_s0] sm:$0xff] %v1761_v14  ;;  %s4323_s0 = smov [#allocation15]  ;;  %v3168_v3 = vld [vmem:[%s1809_s22 + $0x10] sm:$0xff]  ;;  %s4392_s22 = smov [#allocation9] }
 0x259   : >> { %1770 = vst [vmem:[%s4270_s23] sm:$0xff] %v1764_v15  ;;  %s1806_s23 = smov [#allocation23] }
 0x25a   : >> { %v3001_v19 = vld [vmem:[%s4282_s29 + $0x8] sm:$0xff]  ;;  %1771 = vst [vmem:[%s4272_s24] sm:$0xff] %v1767_v16  ;;  %s4327_s24 = smov [#allocation8]  ;;  %v3167_v6 = vld [vmem:[%s1806_s23 + $0x10] sm:$0xff]  ;;  %s4417_s23 = smov [#allocation12] }
 0x25b   : >> { %v3002_v20 = vld [vmem:[%s4285_s30 + $0x8] sm:$0xff]  ;;  %v966_v21 = vmul.f32 %v3001_v19, %v2999_v18  ;;  %v972_v24 = vmul.f32 %v3001_v19, %v3000_v17 }
 0x25c   : >> { %v3003_v25 = vld [vmem:[%s4288_s1 + $0x8] sm:$0xff]  ;;  %v969_v26 = vmul.f32 %v3002_v20, %v2999_v18  ;;  %v975_v27 = vmul.f32 %v3002_v20, %v3000_v17 }
 0x25d   : >> { %v3004_v28 = vld [vmem:[%s4291_s13 + $0x8] sm:$0xff]  ;;  %v967_v29 = vmul.f32 %v3003_v25, %v3000_v17  ;;  %v973_v30 = vmul.f32 %v3003_v25, %v2999_v18 }
 0x25e   : >> { %v970_v32 = vmul.f32 %v3004_v28, %v3000_v17  ;;  %v976_v33 = vmul.f32 %v3004_v28, %v2999_v18  ;;  %v3159_v35 = vld [vmem:[%s4295_s15 + $0x8] sm:$0xff] }
 0x25f   : >> { %v968_v36 = vsub.f32 %v966_v21, %v967_v29  ;;  %v974_v37 = vadd.f32 %v973_v30, %v972_v24  ;;  %v3160_v38 = vld [vmem:[%s4298_s16 + $0x8] sm:$0xff]  ;;  %v1790_v39 = vmul.f32 %v3159_v35, %v3157_v34  ;;  %v1796_v40 = vmul.f32 %v3159_v35, %v3158_v31  ;;  %v3020_v29 = vld [vmem:[%s1019_s28 + $0x18] sm:$0xff]  ;;  %s1080_s28 = smov [#allocation13] }
 0x260   : >> { %v971_v41 = vsub.f32 %v969_v26, %v970_v32  ;;  %v977_v42 = vadd.f32 %v976_v33, %v975_v27  ;;  %v3161_v43 = vld [vmem:[%s4301_s17 + $0x8] sm:$0xff]  ;;  %v1793_v44 = vmul.f32 %v3160_v38, %v3157_v34  ;;  %v1799_v45 = vmul.f32 %v3160_v38, %v3158_v31 }
 0x261   : >> { %3005 = vst [vmem:[%s4282_s29 + $0x8] sm:$0xff] %v968_v36  ;;  %v3162_v46 = vld [vmem:[%s4304_s2 + $0x8] sm:$0xff]  ;;  %v1791_v47 = vmul.f32 %v3161_v43, %v3158_v31  ;;  %v1797_v48 = vmul.f32 %v3161_v43, %v3157_v34  ;;  %s1016_s29 = smov [#allocation23] }
 0x262   : >> { %3006 = vst [vmem:[%s4285_s30 + $0x8] sm:$0xff] %v971_v41  ;;  %v1794_v49 = vmul.f32 %v3162_v46, %v3158_v31  ;;  %v1800_v50 = vmul.f32 %v3162_v46, %v3157_v34  ;;  %s4346_s30 = smov [#allocation12]  ;;  %v3019_v30 = vld [vmem:[%s1016_s29 + $0x18] sm:$0xff]  ;;  %s1082_s29 = smov [#allocation14] }
 0x263   : >> { %3007 = vst [vmem:[%s4288_s1 + $0x8] sm:$0xff] %v974_v37  ;;  %v1792_v51 = vsub.f32 %v1790_v39, %v1791_v47  ;;  %v1798_v52 = vadd.f32 %v1797_v48, %v1796_v40  ;;  %s4349_s1 = smov [#allocation14] }
 0x264   : >> { %3008 = vst [vmem:[%s4291_s13 + $0x8] sm:$0xff] %v977_v42  ;;  %v1795_v53 = vsub.f32 %v1793_v44, %v1794_v49  ;;  %v1801_v54 = vadd.f32 %v1800_v50, %v1799_v45  ;;  %s1843_s13 = smov [#allocation24] }
 0x265   : >> { %3163 = vst [vmem:[%s4295_s15 + $0x8] sm:$0xff] %v1792_v51  ;;  %s1840_s15 = smov [#allocation23]  ;;  %v3178_v41 = vld [vmem:[%s1843_s13 + $0x18] sm:$0xff]  ;;  %s1110_s13 = smov [#allocation14] }
 0x266   : >> { %3164 = vst [vmem:[%s4298_s16 + $0x8] sm:$0xff] %v1795_v53  ;;  %s4359_s16 = smov [#allocation8]  ;;  %v3177_v44 = vld [vmem:[%s1840_s15 + $0x18] sm:$0xff]  ;;  %s1134_s15 = smov [#allocation12] }
 0x267   : >> { %3165 = vst [vmem:[%s4301_s17 + $0x8] sm:$0xff] %v1798_v52  ;;  %s4362_s17 = smov [#allocation9] }
 0x268   : >> { %v3011_v57 = vld [vmem:[%s4314_s20 + $0x10] sm:$0xff]  ;;  %3166 = vst [vmem:[%s4304_s2 + $0x8] sm:$0xff] %v1801_v54  ;;  %s4365_s2 = smov [#allocation10] }
 0x269   : >> { %v3012_v58 = vld [vmem:[%s4317_s21 + $0x10] sm:$0xff]  ;;  %v1000_v59 = vmul.f32 %v3011_v57, %v3009_v56  ;;  %v1006_v60 = vmul.f32 %v3011_v57, %v3010_v55 }
 0x26a   : >> { %v3013_v61 = vld [vmem:[%s4320_s3 + $0x10] sm:$0xff]  ;;  %v1003_v62 = vmul.f32 %v3012_v58, %v3009_v56  ;;  %v1009_v63 = vmul.f32 %v3012_v58, %v3010_v55 }
 0x26b   : >> { %v3014_v0 = vld [vmem:[%s4323_s0 + $0x10] sm:$0xff]  ;;  %v1001_v1 = vmul.f32 %v3013_v61, %v3010_v55  ;;  %v1007_v2 = vmul.f32 %v3013_v61, %v3009_v56 }
 0x26c   : >> { %v1004_v4 = vmul.f32 %v3014_v0, %v3010_v55  ;;  %v1010_v5 = vmul.f32 %v3014_v0, %v3009_v56  ;;  %v3169_v7 = vld [vmem:[%s4327_s24 + $0x10] sm:$0xff] }
 0x26d   : >> { %v1002_v8 = vsub.f32 %v1000_v59, %v1001_v1  ;;  %v1008_v9 = vadd.f32 %v1007_v2, %v1006_v60  ;;  %v3170_v10 = vld [vmem:[%s4330_s25 + $0x10] sm:$0xff]  ;;  %v1824_v11 = vmul.f32 %v3169_v7, %v3167_v6  ;;  %v1830_v12 = vmul.f32 %v3169_v7, %v3168_v3 }
 0x26e   : >> { %v1005_v13 = vsub.f32 %v1003_v62, %v1004_v4  ;;  %v1011_v14 = vadd.f32 %v1010_v5, %v1009_v63  ;;  %v3171_v15 = vld [vmem:[%s4333_s26 + $0x10] sm:$0xff]  ;;  %v1827_v16 = vmul.f32 %v3170_v10, %v3167_v6  ;;  %v1833_v17 = vmul.f32 %v3170_v10, %v3168_v3 }
 0x26f   : >> { %3015 = vst [vmem:[%s4314_s20 + $0x10] sm:$0xff] %v1002_v8  ;;  %v3172_v18 = vld [vmem:[%s4336_s27 + $0x10] sm:$0xff]  ;;  %v1825_v19 = vmul.f32 %v3171_v15, %v3168_v3  ;;  %v1831_v20 = vmul.f32 %v3171_v15, %v3167_v6  ;;  %s4384_s20 = smov [#allocation8] }
 0x270   : >> { %3017 = vst [vmem:[%s4320_s3 + $0x10] sm:$0xff] %v1008_v9  ;;  %v1828_v21 = vmul.f32 %v3172_v18, %v3168_v3  ;;  %v1834_v24 = vmul.f32 %v3172_v18, %v3167_v6  ;;  %s4389_s3 = smov [#allocation10] }
 0x271   : >> { %3018 = vst [vmem:[%s4323_s0 + $0x10] sm:$0xff] %v1011_v14  ;;  %v1826_v25 = vsub.f32 %v1824_v11, %v1825_v19  ;;  %v1832_v26 = vadd.f32 %v1831_v20, %v1830_v12  ;;  %s4394_s0 = smov [#allocation11] }
 0x272   : >> { %v1829_v27 = vsub.f32 %v1827_v16, %v1828_v21  ;;  %v1835_v28 = vadd.f32 %v1834_v24, %v1833_v17  ;;  %3016 = vst [vmem:[%s4317_s21 + $0x10] sm:$0xff] %v1005_v13  ;;  %s4386_s21 = smov [#allocation22] }
 0x273   : >> { %3173 = vst [vmem:[%s4327_s24 + $0x10] sm:$0xff] %v1826_v25  ;;  %s4424_s24 = smov [#allocation13] }
 0x274   : >> { %3174 = vst [vmem:[%s4330_s25 + $0x10] sm:$0xff] %v1829_v27  ;;  %s4431_s25 = smov [#allocation14]  ;;  %v4439_v27 = vld [vmem:[%s4382_s19] ss:$0 sm:$0xff]  ;;  %s4537_s19 = smov [#allocation13] }
 0x275   : >> { %3175 = vst [vmem:[%s4333_s26 + $0x10] sm:$0xff] %v1832_v26  ;;  %s4449_s26 = smov [#allocation15] }
 0x276   : >> { %v3021_v31 = vld [vmem:[%s4346_s30 + $0x18] sm:$0xff]  ;;  %3176 = vst [vmem:[%s4336_s27 + $0x10] sm:$0xff] %v1835_v28  ;;  %v4442_v28 = vld [vmem:[%s4386_s21] ss:$0 sm:$0xff]  ;;  %s1078_s27 = smov [#allocation12]  ;;  %s4546_s21 = smov [#allocation14] }
 0x277   : >> { %v3023_v32 = vld [vmem:[%s4349_s1 + $0x18] sm:$0xff]  ;;  %v1034_v33 = vmul.f32 %v3021_v31, %v3019_v30  ;;  %v1040_v34 = vmul.f32 %v3021_v31, %v3020_v29 }
 0x278   : >> { %v3024_v35 = vld [vmem:[%s4352_s12 + $0x18] sm:$0xff]  ;;  %v1035_v36 = vmul.f32 %v3023_v32, %v3020_v29  ;;  %v1041_v37 = vmul.f32 %v3023_v32, %v3019_v30 }
 0x279   : >> { %v1038_v38 = vmul.f32 %v3024_v35, %v3020_v29  ;;  %v1044_v39 = vmul.f32 %v3024_v35, %v3019_v30  ;;  %v3022_v40 = vld [vmem:[%s4357_s14 + $0x18] sm:$0xff] }
 0x27a   : >> { %v1036_v42 = vsub.f32 %v1034_v33, %v1035_v36  ;;  %v1042_v43 = vadd.f32 %v1041_v37, %v1040_v34  ;;  %v3179_v45 = vld [vmem:[%s4359_s16 + $0x18] sm:$0xff]  ;;  %v1037_v46 = vmul.f32 %v3022_v40, %v3019_v30  ;;  %v1043_v47 = vmul.f32 %v3022_v40, %v3020_v29 }
 0x27b   : >> { %v3180_v48 = vld [vmem:[%s4362_s17 + $0x18] sm:$0xff]  ;;  %v1858_v49 = vmul.f32 %v3179_v45, %v3177_v44  ;;  %v1864_v50 = vmul.f32 %v3179_v45, %v3178_v41 }
 0x27c   : >> { %3025 = vst [vmem:[%s4346_s30 + $0x18] sm:$0xff] %v1036_v42  ;;  %v3181_v51 = vld [vmem:[%s4365_s2 + $0x18] sm:$0xff]  ;;  %v1861_v52 = vmul.f32 %v3180_v48, %v3177_v44  ;;  %v1867_v53 = vmul.f32 %v3180_v48, %v3178_v41  ;;  %v1039_v54 = vsub.f32 %v1037_v46, %v1038_v38  ;;  %v1045_v55 = vadd.f32 %v1044_v39, %v1043_v47  ;;  %s1084_s30 = smov [#allocation15] }
 0x27d   : >> { %v3182_v56 = vld [vmem:[%s4368_s18 + $0x18] sm:$0xff]  ;;  %v1859_v57 = vmul.f32 %v3181_v51, %v3178_v41  ;;  %v1865_v58 = vmul.f32 %v3181_v51, %v3177_v44  ;;  %3027 = vst [vmem:[%s4349_s1 + $0x18] sm:$0xff] %v1042_v43  ;;  %s1106_s1 = smov [#allocation12] }
 0x27e   : >> { %v1862_v59 = vmul.f32 %v3182_v56, %v3178_v41  ;;  %v1868_v60 = vmul.f32 %v3182_v56, %v3177_v44  ;;  %3026 = vst [vmem:[%s4357_s14 + $0x18] sm:$0xff] %v1039_v54  ;;  %s1112_s14 = smov [#allocation15] }
 0x27f   : >> { %v1860_v61 = vsub.f32 %v1858_v49, %v1859_v57  ;;  %v1866_v62 = vadd.f32 %v1865_v58, %v1864_v50  ;;  %3028 = vst [vmem:[%s4352_s12 + $0x18] sm:$0xff] %v1045_v55  ;;  %s1108_s12 = smov [#allocation13] }
 0x280   : >> { %v1863_v63 = vsub.f32 %v1861_v52, %v1862_v59  ;;  %v1869_v0 = vadd.f32 %v1868_v60, %v1867_v53 }
 0x281   : >> { %3183 = vst [vmem:[%s4359_s16 + $0x18] sm:$0xff] %v1860_v61  ;;  %s1136_s16 = smov [#allocation13] }
 0x282   : >> { %3184 = vst [vmem:[%s4362_s17 + $0x18] sm:$0xff] %v1863_v63  ;;  %s1138_s17 = smov [#allocation14] }
 0x283   : >> { %3185 = vst [vmem:[%s4365_s2 + $0x18] sm:$0xff] %v1866_v62  ;;  %v1058_v35 = vld [vmem:[%s4417_s23] sm:$0xff]  ;;  %s1140_s2 = smov [#allocation15] }
 0x284   : >> { %3186 = vst [vmem:[%s4368_s18 + $0x18] sm:$0xff] %v1869_v0  ;;  %v1060_v40 = vld [vmem:[%s4431_s25] sm:$0xff]  ;;  %v1062_v51 = vmul.f32 %v1058_v35, %v4439_v27  ;;  %v1065_v56 = vmul.f32 %v1058_v35, %v4442_v28  ;;  %s1163_s18 = smov [#allocation19] }
 0x285   : >> { %v1059_v39 = vld [vmem:[%s4424_s24] sm:$0xff]  ;;  %v1068_v61 = vmul.f32 %v1060_v40, %v4439_v27  ;;  %v1071_v0 = vmul.f32 %v1060_v40, %v4442_v28 }
 0x286   : >> { %v1061_v48 = vld [vmem:[%s4449_s26] sm:$0xff]  ;;  %v1063_v52 = vmul.f32 %v1059_v39, %v4442_v28  ;;  %v1066_v57 = vmul.f32 %v1059_v39, %v4439_v27 }
 0x287   : >> { %v1069_v62 = vmul.f32 %v1061_v48, %v4442_v28 }
 0x288   : >> { %v1876_v1 = vld [vmem:[%s4384_s20] ss:$0 sm:$0xff]  ;;  %v3188_v3 = vld [vmem:[%s4384_s20 + $0x7] ss:$0 sm:$0xff]  ;;  %v3189_v5 = vld [vmem:[%s4384_s20 + $0x7] sm:$0xfe] }
 0x289   : >> { %v3187_v2 = vld [vmem:[%s4384_s20 - $0x1] sm:$0xfe]  ;;  %v3190_v6 = vld [vmem:[%s4384_s20 + $0xf] ss:$0 sm:$0xff]  ;;  %v3192_v7 = vld [vmem:[%s4384_s20 + $0xf] sm:$0xfe]  ;;  %v1894_v8 = vsel %vm1584_vm6, %v3188_v3, %v3189_v5  ;;  %v1064_v3 = vsub.f32 %v1062_v51, %v1063_v52  ;;  %v1070_v5 = vsub.f32 %v1068_v61, %v1069_v62 }
 0x28a   : >> { %v1883_v4 = vsel %vm1584_vm6, %v1876_v1, %v3187_v2  ;;  %v1905_v9 = vsel %vm1584_vm6, %v3190_v6, %v3192_v7  ;;  %v3193_v10 = vld [vmem:[%s4384_s20 + $0x17] ss:$0 sm:$0xff]  ;;  %v3195_v11 = vld [vmem:[%s4384_s20 + $0x17] sm:$0xfe]  ;;  %v3196_v12 = vld [vmem:[%s4384_s20 + $0x1f] ss:$0 sm:$0xff]  ;;  %v1072_v1 = vmul.f32 %v1061_v48, %v4439_v27 }
 0x28b   : >> { %1886 = vst [vmem:[%s4384_s20] sm:$0xff] %v1883_v4  ;;  %v1916_v13 = vsel %vm1584_vm6, %v3193_v10, %v3195_v11  ;;  %v1920_v14 = vld [vmem:[%s4389_s3] ss:$0 sm:$0xff]  ;;  %v3199_v15 = vld [vmem:[%s4389_s3 + $0x19] sm:$0x7f]  ;;  %v3200_v17 = vld [vmem:[%s4389_s3 + $0x18] ss:$0 sm:$0xff]  ;;  %v1067_v4 = vadd.f32 %v1066_v57, %v1065_v56 }
 0x28c   : >> { %3191 = vst [vmem:[%s4384_s20 + $0x8] sm:$0xff] %v1894_v8  ;;  %v1929_v16 = vsel %vm1630_vm7, %v3196_v12, %v3199_v15  ;;  %v3202_v18 = vld [vmem:[%s4389_s3 + $0x11] sm:$0x7f]  ;;  %v3203_v20 = vld [vmem:[%s4389_s3 + $0x10] ss:$0 sm:$0xff]  ;;  %v1073_v6 = vadd.f32 %v1072_v1, %v1071_v0  ;;  %v1231_v61 = vadd.s32 24, %v1207_v22 }
 0x28d   : >> { %3194 = vst [vmem:[%s4384_s20 + $0x10] sm:$0xff] %v1905_v9  ;;  %v1938_v19 = vsel %vm1630_vm7, %v3200_v17, %v3202_v18  ;;  %v3205_v21 = vld [vmem:[%s4389_s3 + $0x9] sm:$0x7f]  ;;  %v3206_v25 = vld [vmem:[%s4389_s3 + $0x8] ss:$0 sm:$0xff]  ;;  %v1181_v62 = vadd.s32 8, %v1169_v22 }
 0x28e   : >> { %3197 = vst [vmem:[%s4384_s20 + $0x18] sm:$0xff] %v1916_v13  ;;  %v1947_v24 = vsel %vm1630_vm7, %v3203_v20, %v3205_v21  ;;  %v3208_v26 = vld [vmem:[%s4389_s3 + $0x1] sm:$0x7f]  ;;  %v1960_v30 = vld [vmem:[%s4392_s22] ss:$0 sm:$0xff]  ;;  %vm1232_vm12 = vcmp.eq.s32.totalorder %v1231_v61, %v1204_v23 }
 0x28f   : >> { %3198 = vst [vmem:[%s4384_s20 + $0x1] sm:$0x1] %v1920_v14  ;;  %v1955_v29 = vsel %vm1630_vm7, %v3206_v25, %v3208_v26  ;;  %v3209_v31 = vld [vmem:[%s4392_s22 - $0x1] sm:$0xfe]  ;;  %v3210_v33 = vld [vmem:[%s4392_s22 + $0x7] ss:$0 sm:$0xff]  ;;  %vm1182_vm14 = vcmp.eq.s32.totalorder %v1181_v62, %v1166_v23 }
 0x290   : >> { %3201 = vst [vmem:[%s4389_s3 + $0x18] sm:$0xff] %v1929_v16  ;;  %v1967_v32 = vsel %vm1584_vm6, %v1960_v30, %v3209_v31  ;;  %v3211_v34 = vld [vmem:[%s4392_s22 + $0x7] sm:$0xfe]  ;;  %v3212_v37 = vld [vmem:[%s4392_s22 + $0xf] ss:$0 sm:$0xff]  ;;  %s4541_s20 = smov [#allocation12] }
 0x291   : >> { %3204 = vst [vmem:[%s4389_s3 + $0x10] sm:$0xff] %v1938_v19  ;;  %v1978_v36 = vsel %vm1584_vm6, %v3210_v33, %v3211_v34  ;;  %v3214_v38 = vld [vmem:[%s4392_s22 + $0xf] sm:$0xfe]  ;;  %v3215_v42 = vld [vmem:[%s4392_s22 + $0x17] ss:$0 sm:$0xff] }
 0x292   : >> { %3207 = vst [vmem:[%s4389_s3 + $0x8] sm:$0xff] %v1947_v24  ;;  %v1989_v41 = vsel %vm1584_vm6, %v3212_v37, %v3214_v38  ;;  %v3217_v43 = vld [vmem:[%s4392_s22 + $0x17] sm:$0xfe]  ;;  %v3218_v44 = vld [vmem:[%s4392_s22 + $0x1f] ss:$0 sm:$0xff] }
 0x293   : >> { %1957 = vst [vmem:[%s4389_s3] sm:$0xff] %v1955_v29  ;;  %v2000_v45 = vsel %vm1584_vm6, %v3215_v42, %v3217_v43  ;;  %v3221_v46 = vld [vmem:[%s4394_s0 + $0x19] sm:$0x7f]  ;;  %v3222_v47 = vld [vmem:[%s4394_s0 + $0x18] ss:$0 sm:$0xff]  ;;  %v3224_v49 = vld [vmem:[%s4394_s0 + $0x11] sm:$0x7f] }
 0x294   : >> { %1970 = vst [vmem:[%s4392_s22] sm:$0xff] %v1967_v32  ;;  %v3225_v50 = vld [vmem:[%s4394_s0 + $0x10] ss:$0 sm:$0xff]  ;;  %v2013_v53 = vsel %vm1630_vm7, %v3218_v44, %v3221_v46  ;;  %v3227_v54 = vld [vmem:[%s4394_s0 + $0x9] sm:$0x7f]  ;;  %v3228_v55 = vld [vmem:[%s4394_s0 + $0x8] ss:$0 sm:$0xff]  ;;  %v2022_v59 = vsel %vm1630_vm7, %v3222_v47, %v3224_v49 }
 0x295   : >> { %3213 = vst [vmem:[%s4392_s22 + $0x8] sm:$0xff] %v1978_v36  ;;  %v2004_v58 = vld [vmem:[%s4394_s0] ss:$0 sm:$0xff]  ;;  %v3230_v60 = vld [vmem:[%s4394_s0 + $0x1] sm:$0x7f]  ;;  %v2031_v63 = vsel %vm1630_vm7, %v3225_v50, %v3227_v54  ;;  %s4564_s3 = smov [#allocation15] }
 0x296   : >> { %3216 = vst [vmem:[%s4392_s22 + $0x10] sm:$0xff] %v1989_v41  ;;  %v2039_v2 = vsel %vm1630_vm7, %v3228_v55, %v3230_v60  ;;  %v1224_v60 = vadd.s32 16, %v1207_v22 }
 0x297   : >> { %3219 = vst [vmem:[%s4392_s22 + $0x18] sm:$0xff] %v2000_v45 }
 0x298   : >> { %3220 = vst [vmem:[%s4392_s22 + $0x1] sm:$0x1] %v2004_v58  ;;  %vm1225_vm11 = vcmp.eq.s32.totalorder %v1224_v60, %v1204_v23  ;;  %s1270_s22 = smov [#allocation20] }
 0x299   : >> { %3223 = vst [vmem:[%s4394_s0 + $0x18] sm:$0xff] %v2013_v53 }
 0x29a   : >> { %3226 = vst [vmem:[%s4394_s0 + $0x10] sm:$0xff] %v2022_v59  ;;  %v1217_v59 = vadd.s32 8, %v1207_v22  ;;  %v1241_v22 = vmov %v4151_v22 }
 0x29b   : >> { %3229 = vst [vmem:[%s4394_s0 + $0x8] sm:$0xff] %v2031_v63  ;;  %v1197_v63 = vadd.s32 24, %v1169_v22 }
 0x29c   : >> { %2041 = vst [vmem:[%s4394_s0] sm:$0xff] %v2039_v2  ;;  %vm1218_vm10 = vcmp.eq.s32.totalorder %v1217_v59, %v1204_v23  ;;  %v1238_v23 = vmov %v4153_v23  ;;  %s4574_s0 = smov [#allocation13] }
 0x29d   : >> { %1074 = vst [vmem:[%s4417_s23] sm:$0xff] %v1064_v3  ;;  %v1251_v3 = vadd.s32 8, %v1241_v22  ;;  %vm1198_vm0 = vcmp.eq.s32.totalorder %v1197_v63, %v1166_v23  ;;  %vm1245_vm1 = vcmp.eq.s32.totalorder %v1241_v22, %v1238_v23  ;;  %s4063_s23 = smov 127  }
 0x29e   : >> { %1075 = vst [vmem:[%s4424_s24] sm:$0xff] %v1067_v4  ;;  %s4064_s24 = smov 1  }
 0x29f   : >> { %1076 = vst [vmem:[%s4431_s25] sm:$0xff] %v1070_v5  ;;  %vm1252_vm2 = vcmp.eq.s32.totalorder %v1251_v3, %v1238_v23  ;;  %s4586_s25 = smov [#allocation12] }
 0x2a0   : >> { %1077 = vst [vmem:[%s4449_s26] sm:$0xff] %v1073_v6  ;;  %s4597_s26 = smov [#allocation14] }
 0x2a4   : >> { %v3029_v7 = vld [vmem:[%s1078_s27 + $0x8] sm:$0xff] }
 0x2a5   : >> { %v3030_v8 = vld [vmem:[%s1080_s28 + $0x8] sm:$0xff]  ;;  %v1090_v9 = vmul.f32 %v3029_v7, %v4439_v27  ;;  %v1093_v10 = vmul.f32 %v3029_v7, %v4442_v28 }
 0x2a6   : >> { %v1091_v11 = vmul.f32 %v3030_v8, %v4442_v28  ;;  %v1094_v12 = vmul.f32 %v3030_v8, %v4439_v27  ;;  %v3031_v13 = vld [vmem:[%s1082_s29 + $0x8] sm:$0xff] }
 0x2a7   : >> { %v3032_v14 = vld [vmem:[%s1084_s30 + $0x8] sm:$0xff]  ;;  %v1096_v15 = vmul.f32 %v3031_v13, %v4439_v27  ;;  %v1099_v16 = vmul.f32 %v3031_v13, %v4442_v28 }
 0x2a8   : >> { %v1092_v17 = vsub.f32 %v1090_v9, %v1091_v11  ;;  %v1095_v18 = vadd.f32 %v1094_v12, %v1093_v10  ;;  %v1097_v19 = vmul.f32 %v3032_v14, %v4442_v28  ;;  %v1100_v20 = vmul.f32 %v3032_v14, %v4439_v27 }
 0x2a9   : >> { %v1258_v12 = vadd.s32 16, %v1241_v22 }
 0x2aa   : >> { %3033 = vst [vmem:[%s1078_s27 + $0x8] sm:$0xff] %v1092_v17  ;;  %v1098_v21 = vsub.f32 %v1096_v15, %v1097_v19  ;;  %v1101_v24 = vadd.f32 %v1100_v20, %v1099_v16  ;;  %v1265_v15 = vadd.s32 24, %v1241_v22  ;;  %s4599_s27 = smov [#allocation13] }
 0x2ab   : >> { %3034 = vst [vmem:[%s1080_s28 + $0x8] sm:$0xff] %v1095_v18  ;;  %vm1259_vm3 = vcmp.eq.s32.totalorder %v1258_v12, %v1238_v23  ;;  %s4609_s28 = smov [#allocation12] }
 0x2ac   : >> { %3035 = vst [vmem:[%s1082_s29 + $0x8] sm:$0xff] %v1098_v21  ;;  %vm1266_vm4 = vcmp.eq.s32.totalorder %v1265_v15, %v1238_v23  ;;  %s4616_s29 = smov [#allocation14] }
 0x2ad   : >> { %3036 = vst [vmem:[%s1084_s30 + $0x8] sm:$0xff] %v1101_v24  ;;  %s4624_s30 = smov [#allocation12] }
 0x2b1   : >> { %v3037_v25 = vld [vmem:[%s1106_s1 + $0x10] sm:$0xff] }
 0x2b2   : >> { %v3038_v26 = vld [vmem:[%s1108_s12 + $0x10] sm:$0xff]  ;;  %v1118_v29 = vmul.f32 %v3037_v25, %v4439_v27  ;;  %v1121_v30 = vmul.f32 %v3037_v25, %v4442_v28 }
 0x2b3   : >> { %v1119_v31 = vmul.f32 %v3038_v26, %v4442_v28  ;;  %v1122_v32 = vmul.f32 %v3038_v26, %v4439_v27  ;;  %v3039_v33 = vld [vmem:[%s1110_s13 + $0x10] sm:$0xff] }
 0x2b4   : >> { %v3040_v34 = vld [vmem:[%s1112_s14 + $0x10] sm:$0xff]  ;;  %v1124_v35 = vmul.f32 %v3039_v33, %v4439_v27  ;;  %v1127_v36 = vmul.f32 %v3039_v33, %v4442_v28 }
 0x2b5   : >> { %v1120_v37 = vsub.f32 %v1118_v29, %v1119_v31  ;;  %v1123_v38 = vadd.f32 %v1122_v32, %v1121_v30  ;;  %v1125_v39 = vmul.f32 %v3040_v34, %v4442_v28  ;;  %v1128_v40 = vmul.f32 %v3040_v34, %v4439_v27  ;;  %v1277_v32 = vld [vmem:[%s1270_s22] ss:$0 sm:$0xff]  ;;  %s2042_s22 = sadd.s32 (%p587_p9), 1, %s4024_s10  }
 0x2b6   : > { %p583_p10 = scmp.ge.s32.totalorder (%p587_p9), %s2042_s22, 15  ;;  %s4947_s10 = smov (%p587_p9), %s2042_s22 }
 0x2b7   : >> { %3041 = vst [vmem:[%s1106_s1 + $0x10] sm:$0xff] %v1120_v37  ;;  %v1126_v41 = vsub.f32 %v1124_v35, %v1125_v39  ;;  %v1129_v42 = vadd.f32 %v1128_v40, %v1127_v36  ;;  %s4631_s1 = smov [#allocation15] }
 0x2b8   : >> { %3042 = vst [vmem:[%s1108_s12 + $0x10] sm:$0xff] %v1123_v38  ;;  %s4636_s12 = smov [#allocation13] }
 0x2b9   : >> { %3043 = vst [vmem:[%s1110_s13 + $0x10] sm:$0xff] %v1126_v41  ;;  %s4640_s13 = smov [#allocation12] }
 0x2ba   : >> { %3044 = vst [vmem:[%s1112_s14 + $0x10] sm:$0xff] %v1129_v42  ;;  %s4648_s14 = smov [#allocation15] }
 0x2be   : >> { %v3045_v43 = vld [vmem:[%s1134_s15 + $0x18] sm:$0xff] }
 0x2bf   : >> { %v3046_v44 = vld [vmem:[%s1136_s16 + $0x18] sm:$0xff]  ;;  %v1149_v45 = vmul.f32 %v3045_v43, %v4442_v28  ;;  %v1146_v46 = vmul.f32 %v3045_v43, %v4439_v27 }
 0x2c0   : >> { %v1147_v47 = vmul.f32 %v3046_v44, %v4442_v28  ;;  %v1150_v48 = vmul.f32 %v3046_v44, %v4439_v27  ;;  %v3047_v49 = vld [vmem:[%s1138_s17 + $0x18] sm:$0xff] }
 0x2c1   : >> { %v3048_v50 = vld [vmem:[%s1140_s2 + $0x18] sm:$0xff]  ;;  %v1152_v51 = vmul.f32 %v3047_v49, %v4439_v27  ;;  %v1155_v52 = vmul.f32 %v3047_v49, %v4442_v28 }
 0x2c2   : >> { %v1151_v53 = vadd.f32 %v1150_v48, %v1149_v45  ;;  %v1148_v54 = vsub.f32 %v1146_v46, %v1147_v47  ;;  %v1153_v55 = vmul.f32 %v3048_v50, %v4442_v28  ;;  %v1156_v56 = vmul.f32 %v3048_v50, %v4439_v27  ;;  %v1170_v28 = vld [vmem:[%s1163_s18] ss:$0 sm:$0xff]  ;;  %s4677_s18 = smov [#allocation15] }
 0x2c3   : >> { %v1189_v27 = vadd.s32 16, %v1169_v22  ;;  %v1276_v22 = vmov %v4151_v22 }
 0x2c4   : >> { %3050 = vst [vmem:[%s1136_s16 + $0x18] sm:$0xff] %v1151_v53  ;;  %v1154_v57 = vsub.f32 %v1152_v51, %v1153_v55  ;;  %v1157_v58 = vadd.f32 %v1156_v56, %v1155_v52  ;;  %v1288_v20 = vadd.s32 8, %v1276_v22  ;;  %v1296_v25 = vadd.s32 16, %v1276_v22  ;;  %s4654_s16 = smov [#allocation14] }
 0x2c5   : >> { %3049 = vst [vmem:[%s1134_s15 + $0x18] sm:$0xff] %v1148_v54  ;;  %vm1190_vm15 = vcmp.eq.s32.totalorder %v1189_v27, %v1166_v23  ;;  %v1273_v23 = vmov %v4153_v23  ;;  %v1304_v30 = vadd.s32 24, %v1276_v22  ;;  %s4652_s15 = smov [#allocation15] }
 0x2c6   : >> { %3051 = vst [vmem:[%s1138_s17 + $0x18] sm:$0xff] %v1154_v57  ;;  %vm1281_vm5 = vcmp.eq.s32.totalorder %v1276_v22, %v1273_v23  ;;  %s4663_s17 = smov [#allocation13]  ;;  %v447_v22 = vmov (%p587_p9), %v4151_v22 }
 0x2c7   : >> { %3052 = vst [vmem:[%s1140_s2 + $0x18] sm:$0xff] %v1157_v58  ;;  %s4669_s2 = smov [#allocation14]  ;;  %v398_v22 = vmov (%p587_p9), %v4151_v22 }
 0x2cb   : >> { %v1208_v0 = vld [vmem:[%s4537_s19] sm:$0xff]  ;;  %v3059_v1 = vld [vmem:[%s4537_s19 + $0x8] sm:$0xff]  ;;  %v3061_v2 = vld [vmem:[%s4537_s19 + $0x10] sm:$0xff] }
 0x2cc   : >> { %v1212_v4 = vsel %vm1211_vm9, 0.0, %v1208_v0  ;;  %v1219_v5 = vsel %vm1218_vm10, 0.0, %v3059_v1  ;;  %v1226_v6 = vsel %vm1225_vm11, 0.0, %v3061_v2  ;;  %v3063_v7 = vld [vmem:[%s4537_s19 + $0x18] sm:$0xff]  ;;  %v1171_v8 = vld [vmem:[%s4541_s20] sm:$0xff]  ;;  %v3053_v9 = vld [vmem:[%s4541_s20 + $0x8] sm:$0xff]  ;;  %vm1289_vm9 = vcmp.eq.s32.totalorder %v1288_v20, %v1273_v23 }
 0x2cd   : >> { %1213 = vst [vmem:[%s4537_s19] sm:$0xff] %v1212_v4  ;;  %v1233_v10 = vsel %vm1232_vm12, 0.0, %v3063_v7  ;;  %v3055_v11 = vld [vmem:[%s4541_s20 + $0x10] sm:$0xff]  ;;  %v1175_v13 = vsel %vm1174_vm13, %v1170_v28, %v1171_v8  ;;  %v3057_v14 = vld [vmem:[%s4541_s20 + $0x18] sm:$0xff]  ;;  %v1183_v16 = vsel %vm1182_vm14, %v1170_v28, %v3053_v9  ;;  %v1242_v17 = vld [vmem:[%s4546_s21] sm:$0xff]  ;;  %vm1297_vm10 = vcmp.eq.s32.totalorder %v1296_v25, %v1273_v23 }
 0x2ce   : >> { %3060 = vst [vmem:[%s4537_s19 + $0x8] sm:$0xff] %v1219_v5  ;;  %v1191_v18 = vsel %vm1190_vm15, %v1170_v28, %v3055_v11  ;;  %v3065_v19 = vld [vmem:[%s4546_s21 + $0x8] sm:$0xff]  ;;  %v1199_v21 = vsel %vm1198_vm0, %v1170_v28, %v3057_v14  ;;  %v3067_v24 = vld [vmem:[%s4546_s21 + $0x10] sm:$0xff]  ;;  %v1246_v26 = vsel %vm1245_vm1, 0.0, %v1242_v17  ;;  %v3069_v29 = vld [vmem:[%s4546_s21 + $0x18] sm:$0xff]  ;;  %vm1305_vm11 = vcmp.eq.s32.totalorder %v1304_v30, %v1273_v23 }
 0x2cf   : >> { %3062 = vst [vmem:[%s4537_s19 + $0x10] sm:$0xff] %v1226_v6  ;;  %v1253_v31 = vsel %vm1252_vm2, 0.0, %v3065_v19  ;;  %v1278_v33 = vld [vmem:[%s4564_s3] sm:$0xff]  ;;  %v1260_v34 = vsel %vm1259_vm3, 0.0, %v3067_v24  ;;  %v3071_v35 = vld [vmem:[%s4564_s3 + $0x8] sm:$0xff]  ;;  %v1267_v36 = vsel %vm1266_vm4, 0.0, %v3069_v29 }
 0x2d0   : >> { %3064 = vst [vmem:[%s4537_s19 + $0x18] sm:$0xff] %v1233_v10  ;;  %v3073_v37 = vld [vmem:[%s4564_s3 + $0x10] sm:$0xff]  ;;  %v1282_v38 = vsel %vm1281_vm5, %v1277_v32, %v1278_v33  ;;  %v3075_v39 = vld [vmem:[%s4564_s3 + $0x18] sm:$0xff]  ;;  %v1290_v41 = vsel %vm1289_vm9, %v1277_v32, %v3071_v35  ;;  %vm1336_vm12 = vcmp.eq.s32.totalorder %v4153_v23, 31  ;;  %vm1319_vm13 = vcmp.eq.s32.totalorder %v4153_v23, 0  ;;  %s4748_s19 = smov [#allocation13] }
 0x2d1   : >> { %1176 = vst [vmem:[%s4541_s20] sm:$0xff] %v1175_v13  ;;  %v1298_v42 = vsel %vm1297_vm10, %v1277_v32, %v3073_v37  ;;  %v1306_v43 = vsel %vm1305_vm11, %v1277_v32, %v3075_v39  ;;  %vm1323_vm14 = vcmp.eq.s32.totalorder %v4153_v23, 1  ;;  %v444_v23 = vmov (%p587_p9), %v4153_v23 }
 0x2d2   : >> { %3054 = vst [vmem:[%s4541_s20 + $0x8] sm:$0xff] %v1183_v16  ;;  %v395_v23 = vmov (%p587_p9), %v4153_v23 }
 0x2d3   : >> { %3056 = vst [vmem:[%s4541_s20 + $0x10] sm:$0xff] %v1191_v18 }
 0x2d4   : >> { %3058 = vst [vmem:[%s4541_s20 + $0x18] sm:$0xff] %v1199_v21  ;;  %s4796_s20 = smov [#allocation12] }
 0x2d5   : >> { %1247 = vst [vmem:[%s4546_s21] sm:$0xff] %v1246_v26 }
 0x2d6   : >> { %3066 = vst [vmem:[%s4546_s21 + $0x8] sm:$0xff] %v1253_v31 }
 0x2d7   : >> { %v1331_v40 = vld [vmem:[%s4574_s0] sm:$0xff]  ;;  %3068 = vst [vmem:[%s4546_s21 + $0x10] sm:$0xff] %v1260_v34  ;;  %v3077_v46 = vld [vmem:[%s4599_s27 + $0x8] sm:$0xff]  ;;  %v3081_v51 = vld [vmem:[%s4636_s12 + $0x10] sm:$0xff] }
 0x2d8   : >> { %1332 = vrot.lane.b32.xlu1 %v1331_v40, %s4063_s23  ;;  %1311 = vrot.lane.b32.xlu2 %v1331_v40, %s4064_s24  ;;  %3070 = vst [vmem:[%s4546_s21 + $0x18] sm:$0xff] %v1267_v36  ;;  %v3085_v56 = vld [vmem:[%s4663_s17 + $0x18] sm:$0xff]  ;;  %s4798_s21 = smov [#allocation15] }
 0x2d9   : >> { %1283 = vst [vmem:[%s4564_s3] sm:$0xff] %v1282_v38 }
 0x2da   : >> { %3072 = vst [vmem:[%s4564_s3 + $0x8] sm:$0xff] %v1290_v41 }
 0x2db   : >> { %v4592_v44 = vld [vmem:[%s4586_s25] sm:$0xff]  ;;  %3074 = vst [vmem:[%s4564_s3 + $0x10] sm:$0xff] %v1298_v42  ;;  %v4612_v47 = vld [vmem:[%s4609_s28 + $0x8] sm:$0xff]  ;;  %v4627_v49 = vld [vmem:[%s4624_s30 + $0x10] sm:$0xff] }
 0x2dc   : >> { %1315 = vrot.lane.b32.xlu0 %v4592_v44, %s4064_s24  ;;  %3076 = vst [vmem:[%s4564_s3 + $0x18] sm:$0xff] %v1306_v43  ;;  %v4643_v52 = vld [vmem:[%s4640_s13 + $0x18] sm:$0xff]  ;;  %s1577_s3 = smov [#allocation14] }
 0x2df   : >> { %v4603_v45 = vld [vmem:[%s4597_s26] sm:$0xff]  ;;  %v4619_v48 = vld [vmem:[%s4616_s29 + $0x8] sm:$0xff]  ;;  %v4658_v55 = vld [vmem:[%s4654_s16 + $0x10] sm:$0xff] }
 0x2e0   : >> { %1449 = vrot.lane.b32.xlu1 %v4603_v45, %s4064_s24  ;;  %1343 = vrot.lane.b32.xlu2 %v3077_v46, %s4064_s24  ;;  %v4672_v57 = vld [vmem:[%s4669_s2 + $0x18] sm:$0xff] }
 0x2e3   : >> { %v1465_v50 = vld [vmem:[%s4631_s1] sm:$0xff]  ;;  %v3095_v53 = vld [vmem:[%s4648_s14 + $0x8] sm:$0xff]  ;;  %v3099_v54 = vld [vmem:[%s4652_s15 + $0x10] sm:$0xff] }
 0x2e4   : >> { %1347 = vrot.lane.b32.xlu0 %v4612_v47, %s4064_s24  ;;  %v3103_v58 = vld [vmem:[%s4677_s18 + $0x18] sm:$0xff] }
 0x2e8   : >> { %1481 = vrot.lane.b32.xlu1 %v4619_v48, %s4064_s24  ;;  %1364 = vrot.lane.b32.xlu2 %v3077_v46, %s4063_s23 }
 0x2ec   : >> { %1379 = vrot.lane.b32.xlu0 %v4627_v49, %s4064_s24 }
 0x2f0   : >> { %1466 = vrot.lane.b32.xlu1 %v1465_v50, %s4063_s23  ;;  %1445 = vrot.lane.b32.xlu2 %v1465_v50, %s4064_s24 }
 0x2f4   : >> { %1375 = vrot.lane.b32.xlu0 %v3081_v51, %s4064_s24 }
 0x2f8   : >> { %1396 = vrot.lane.b32.xlu1 %v3081_v51, %s4063_s23  ;;  %1411 = vrot.lane.b32.xlu2 %v4643_v52, %s4064_s24 }
 0x2fc   : >> { %1477 = vrot.lane.b32.xlu0 %v3095_v53, %s4064_s24 }
 0x300   : >> { %1509 = vrot.lane.b32.xlu1 %v3099_v54, %s4064_s24  ;;  %1513 = vrot.lane.b32.xlu2 %v4658_v55, %s4064_s24 }
 0x304   : >> { %1407 = vrot.lane.b32.xlu0 %v3085_v56, %s4064_s24 }
 0x308   : >> { %1530 = vrot.lane.b32.xlu1 %v3099_v54, %s4063_s23  ;;  %1498 = vrot.lane.b32.xlu2 %v3095_v53, %s4063_s23 }
 0x30c   : >> { %1545 = vrot.lane.b32.xlu0 %v4672_v57, %s4064_s24 }
 0x310   : >> { %1428 = vrot.lane.b32.xlu2 %v3085_v56, %s4063_s23 }
 0x314   : >> { %1541 = vrot.lane.b32.xlu0 %v3103_v58, %s4064_s24  ;;  %s518_s24 = smov (%p587_p9), [#allocation15] }
 0x318   : >> { %1562 = vrot.lane.b32.xlu2 %v3103_v58, %s4063_s23  ;;  %s448_s23 = smov (%p587_p9), [#allocation13] }
 0x332   : >> { %v1312_v59 = vpop.permute.xlu2 %1311 }
 0x33a   : >> { %v1344_v60 = vpop.permute.xlu2 %1343 }
 0x342   : >> { %v1365_v61 = vpop.permute.xlu2 %1364 }
 0x343   : >> { %v1369_v63 = vsel %vm1336_vm12, %v4612_v47, %v1365_v61 }
 0x34a   : >> { %v1333_v62 = vpop.permute.xlu1 %1332  ;;  %v1446_v27 = vpop.permute.xlu2 %1445 }
 0x34b   : >> { %v1337_v28 = vsel %vm1336_vm12, %v4592_v44, %v1333_v62 }
 0x34c   : >> { %1435 = vst [vmem:[%s4574_s0] sm:$0xff] %v1337_v28  ;;  %s399_s0 = smov (%p587_p9), [#allocation12] }
 0x34d   : >> { %3090 = vst [vmem:[%s4599_s27 + $0x8] sm:$0xff] %v1369_v63 }
 0x34e   : >> { %v1316_v0 = vpop.permute.xlu0 %1315 }
 0x34f   : >> { %v1320_v1 = vsel %vm1319_vm13, %v4592_v44, %v1316_v0 }
 0x350   : >> { %v1324_v2 = vsel %vm1323_vm14, %v1312_v59, %v1320_v1 }
 0x351   : >> { %v1330_v3 = vsel %vm2645_vm8, %v1324_v2, 0.0 }
 0x352   : >> { %v1450_v4 = vpop.permute.xlu1 %1449  ;;  %v1412_v5 = vpop.permute.xlu2 %1411  ;;  %1434 = vst [vmem:[%s4586_s25] sm:$0xff] %v1330_v3 }
 0x353   : >> { %v1454_v6 = vsel %vm1319_vm13, %v4603_v45, %v1450_v4  ;;  %v1416_v46 = vsel %vm1319_vm13, %v4643_v52, %v1412_v5 }
 0x354   : >> { %v1458_v7 = vsel %vm1323_vm14, %v1446_v27, %v1454_v6 }
 0x355   : >> { %v1464_v8 = vsel %vm2645_vm8, %v1458_v7, 0.0 }
 0x356   : >> { %v1348_v9 = vpop.permute.xlu0 %1347  ;;  %1568 = vst [vmem:[%s4597_s26] sm:$0xff] %v1464_v8 }
 0x357   : >> { %v1352_v10 = vsel %vm1319_vm13, %v4612_v47, %v1348_v9 }
 0x358   : >> { %v1356_v11 = vsel %vm1323_vm14, %v1344_v60, %v1352_v10 }
 0x359   : >> { %v1362_v12 = vsel %vm2645_vm8, %v1356_v11, 0.0 }
 0x35a   : >> { %v1482_v13 = vpop.permute.xlu1 %1481  ;;  %v1514_v14 = vpop.permute.xlu2 %1513  ;;  %3089 = vst [vmem:[%s4609_s28 + $0x8] sm:$0xff] %v1362_v12 }
 0x35b   : >> { %v1486_v32 = vsel %vm1319_vm13, %v4619_v48, %v1482_v13  ;;  %v1518_v37 = vsel %vm1319_vm13, %v4658_v55, %v1514_v14 }
 0x35e   : >> { %v1380_v15 = vpop.permute.xlu0 %1379 }
 0x35f   : >> { %v1384_v20 = vsel %vm1319_vm13, %v4627_v49, %v1380_v15 }
 0x362   : >> { %v1467_v16 = vpop.permute.xlu1 %1466  ;;  %v1499_v17 = vpop.permute.xlu2 %1498 }
 0x363   : >> { %v1471_v18 = vsel %vm1336_vm12, %v4603_v45, %v1467_v16  ;;  %v1503_v19 = vsel %vm1336_vm12, %v4619_v48, %v1499_v17 }
 0x364   : >> { %1569 = vst [vmem:[%s4631_s1] sm:$0xff] %v1471_v18 }
 0x365   : >> { %3108 = vst [vmem:[%s4648_s14 + $0x8] sm:$0xff] %v1503_v19 }
 0x366   : >> { %v1376_v21 = vpop.permute.xlu0 %1375 }
 0x367   : >> { %v1388_v24 = vsel %vm1323_vm14, %v1376_v21, %v1384_v20 }
 0x368   : >> { %v1394_v25 = vsel %vm2645_vm8, %v1388_v24, 0.0 }
 0x369   : >> { %3091 = vst [vmem:[%s4624_s30 + $0x10] sm:$0xff] %v1394_v25 }
 0x36a   : >> { %v1397_v26 = vpop.permute.xlu1 %1396  ;;  %v1429_v29 = vpop.permute.xlu2 %1428 }
 0x36b   : >> { %v1401_v30 = vsel %vm1336_vm12, %v4627_v49, %v1397_v26  ;;  %v1433_v31 = vsel %vm1336_vm12, %v4643_v52, %v1429_v29 }
 0x36c   : >> { %3092 = vst [vmem:[%s4636_s12 + $0x10] sm:$0xff] %v1401_v30 }
 0x36d   : >> { %3094 = vst [vmem:[%s4663_s17 + $0x18] sm:$0xff] %v1433_v31 }
 0x36e   : >> { %v1478_v33 = vpop.permute.xlu0 %1477 }
 0x36f   : >> { %v1490_v34 = vsel %vm1323_vm14, %v1478_v33, %v1486_v32 }
 0x370   : >> { %v1496_v35 = vsel %vm2645_vm8, %v1490_v34, 0.0 }
 0x371   : >> { %3107 = vst [vmem:[%s4616_s29 + $0x8] sm:$0xff] %v1496_v35 }
 0x372   : >> { %v1510_v36 = vpop.permute.xlu1 %1509  ;;  %v1563_v59 = vpop.permute.xlu2 %1562 }
 0x373   : >> { %v1522_v45 = vsel %vm1323_vm14, %v1510_v36, %v1518_v37  ;;  %v1567_v62 = vsel %vm1336_vm12, %v4672_v57, %v1563_v59 }
 0x374   : >> { %v1662_v38 = vld [vmem:[%s4748_s19] ss:$0 sm:$0xff]  ;;  %v3136_v40 = vld [vmem:[%s4748_s19 + $0x7] ss:$0 sm:$0xff]  ;;  %v3137_v42 = vld [vmem:[%s4748_s19 + $0x7] sm:$0xfe] }
 0x375   : >> { %v3135_v39 = vld [vmem:[%s4748_s19 - $0x1] sm:$0xfe]  ;;  %v3138_v43 = vld [vmem:[%s4748_s19 + $0xf] ss:$0 sm:$0xff]  ;;  %v3140_v44 = vld [vmem:[%s4748_s19 + $0xf] sm:$0xfe]  ;;  %v1680_v47 = vsel %vm1584_vm6, %v3136_v40, %v3137_v42 }
 0x376   : >> { %v1669_v41 = vsel %vm1584_vm6, %v1662_v38, %v3135_v39  ;;  %v1691_v48 = vsel %vm1584_vm6, %v3138_v43, %v3140_v44  ;;  %v3141_v49 = vld [vmem:[%s4748_s19 + $0x17] ss:$0 sm:$0xff]  ;;  %v3143_v50 = vld [vmem:[%s4748_s19 + $0x17] sm:$0xfe]  ;;  %v3144_v51 = vld [vmem:[%s4748_s19 + $0x1f] ss:$0 sm:$0xff]  ;;  %v1408_v53 = vpop.permute.xlu0 %1407 }
 0x377   : >> { %1672 = vst [vmem:[%s4748_s19] sm:$0xff] %v1669_v41  ;;  %v1702_v54 = vsel %vm1584_vm6, %v3141_v49, %v3143_v50  ;;  %v1420_v52 = vsel %vm1323_vm14, %v1408_v53, %v1416_v46  ;;  %v1528_v56 = vsel %vm2645_vm8, %v1522_v45, 0.0 }
 0x378   : >> { %3139 = vst [vmem:[%s4748_s19 + $0x8] sm:$0xff] %v1680_v47  ;;  %v1426_v58 = vsel %vm2645_vm8, %v1420_v52, 0.0 }
 0x379   : >> { %3142 = vst [vmem:[%s4748_s19 + $0x10] sm:$0xff] %v1691_v48 }
 0x37a   : >> { %3145 = vst [vmem:[%s4748_s19 + $0x18] sm:$0xff] %v1702_v54  ;;  %v1531_v60 = vpop.permute.xlu1 %1530 }
 0x37b   : >> { %3093 = vst [vmem:[%s4640_s13 + $0x18] sm:$0xff] %v1426_v58  ;;  %v1535_v61 = vsel %vm1336_vm12, %v4658_v55, %v1531_v60 }
 0x37c   : >> { %3109 = vst [vmem:[%s4654_s16 + $0x10] sm:$0xff] %v1528_v56 }
 0x37d   : >> { %3110 = vst [vmem:[%s4652_s15 + $0x10] sm:$0xff] %v1535_v61  ;;  %v417_v61 = vadd.s32 (%p587_p9), 8, %v398_v22 }
 0x37e   : >> { %3112 = vst [vmem:[%s4677_s18 + $0x18] sm:$0xff] %v1567_v62  ;;  %v1546_v55 = vpop.permute.xlu0 %1545 }
 0x37f   : >> { %v1550_v18 = vsel %vm1319_vm13, %v4672_v57, %v1546_v55 }
 0x382   : >> { %v1578_v27 = vld [vmem:[%s4796_s20] ss:$0 sm:$0xff]  ;;  %v3114_v63 = vld [vmem:[%s4796_s20 + $0x7] ss:$0 sm:$0xff]  ;;  %v3115_v1 = vld [vmem:[%s4796_s20 + $0x7] sm:$0xfe] }
 0x383   : >> { %v3113_v28 = vld [vmem:[%s4796_s20 - $0x1] sm:$0xfe]  ;;  %v3116_v2 = vld [vmem:[%s4796_s20 + $0xf] ss:$0 sm:$0xff]  ;;  %v3118_v3 = vld [vmem:[%s4796_s20 + $0xf] sm:$0xfe]  ;;  %v1596_v4 = vsel %vm1584_vm6, %v3114_v63, %v3115_v1 }
 0x384   : >> { %v1585_v0 = vsel %vm1584_vm6, %v1578_v27, %v3113_v28  ;;  %v1607_v5 = vsel %vm1584_vm6, %v3116_v2, %v3118_v3  ;;  %v3119_v6 = vld [vmem:[%s4796_s20 + $0x17] ss:$0 sm:$0xff]  ;;  %v3121_v7 = vld [vmem:[%s4796_s20 + $0x17] sm:$0xfe]  ;;  %v3122_v8 = vld [vmem:[%s4796_s20 + $0x1f] ss:$0 sm:$0xff] }
 0x385   : >> { %1588 = vst [vmem:[%s4796_s20] sm:$0xff] %v1585_v0  ;;  %v1618_v9 = vsel %vm1584_vm6, %v3119_v6, %v3121_v7  ;;  %v1706_v10 = vld [vmem:[%s4798_s21] ss:$0 sm:$0xff]  ;;  %v3147_v11 = vld [vmem:[%s4798_s21 + $0x19] sm:$0x7f]  ;;  %v3148_v13 = vld [vmem:[%s4798_s21 + $0x18] ss:$0 sm:$0xff]  ;;  %vm410_vm6 = vcmp.eq.s32.totalorder (%p587_p9), %v398_v22, %v395_v23 }
 0x386   : >> { %3117 = vst [vmem:[%s4796_s20 + $0x8] sm:$0xff] %v1596_v4  ;;  %v1715_v12 = vsel %vm1630_vm7, %v3144_v51, %v3147_v11  ;;  %v3150_v14 = vld [vmem:[%s4798_s21 + $0x11] sm:$0x7f]  ;;  %v3151_v16 = vld [vmem:[%s4798_s21 + $0x10] ss:$0 sm:$0xff]  ;;  %v1542_v19 = vpop.permute.xlu0 %1541  ;;  %v437_v11 = vadd.s32 (%p587_p9), 24, %v398_v22 }
 0x387   : >> { %3120 = vst [vmem:[%s4796_s20 + $0x10] sm:$0xff] %v1607_v5  ;;  %v1724_v15 = vsel %vm1630_vm7, %v3148_v13, %v3150_v14  ;;  %v3153_v17 = vld [vmem:[%s4798_s21 + $0x9] sm:$0x7f]  ;;  %v3154_v21 = vld [vmem:[%s4798_s21 + $0x8] ss:$0 sm:$0xff]  ;;  %v1554_v25 = vsel %vm1323_vm14, %v1542_v19, %v1550_v18 }
 0x388   : >> { %3123 = vst [vmem:[%s4796_s20 + $0x18] sm:$0xff] %v1618_v9  ;;  %v1733_v20 = vsel %vm1630_vm7, %v3151_v16, %v3153_v17  ;;  %v3156_v24 = vld [vmem:[%s4798_s21 + $0x1] sm:$0x7f]  ;;  %v1560_v29 = vsel %vm2645_vm8, %v1554_v25, 0.0  ;;  %vm438_vm0 = vcmp.eq.s32.totalorder (%p587_p9), %v437_v11, %v395_v23 }
 0x389   : >> { %3146 = vst [vmem:[%s4748_s19 + $0x1] sm:$0x1] %v1706_v10  ;;  %v1741_v26 = vsel %vm1630_vm7, %v3154_v21, %v3156_v24  ;;  %v427_v10 = vadd.s32 (%p587_p9), 16, %v398_v22  ;;  %v482_v22 = vmov (%p587_p9), %v4151_v22 }
 0x38a   : >> { %3149 = vst [vmem:[%s4798_s21 + $0x18] sm:$0xff] %v1715_v12  ;;  %v517_v22 = vmov (%p587_p9), %v4151_v22 }
 0x38b   : >> { %3152 = vst [vmem:[%s4798_s21 + $0x10] sm:$0xff] %v1724_v15  ;;  %vm428_vm15 = vcmp.eq.s32.totalorder (%p587_p9), %v427_v10, %v395_v23 }
 0x38c   : >> { %3155 = vst [vmem:[%s4798_s21 + $0x8] sm:$0xff] %v1733_v20 }
 0x38d   : >> { %1743 = vst [vmem:[%s4798_s21] sm:$0xff] %v1741_v26 }
 0x38e   : >> { %3111 = vst [vmem:[%s4669_s2 + $0x18] sm:$0xff] %v1560_v29 }
 0x390   : > { %v454_v48 = vld [vmem:[%s448_s23] sm:$0xff] (%p587_p9)  ;;  %v3234_v54 = vld [vmem:[%s448_s23 + $0x8] sm:$0xff] (%p587_p9)  ;;  %v3235_v59 = vld [vmem:[%s448_s23 + $0x10] sm:$0xff] (%p587_p9) }
 0x391   : > { %v455_v52 = vsel (%p587_p9), %vm2645_vm8, %v454_v48, 0.0  ;;  %v461_v60 = vsel (%p587_p9), %vm2645_vm8, %v3234_v54, 0.0  ;;  %v3236_v27 = vld [vmem:[%s448_s23 + $0x18] sm:$0xff] (%p587_p9)  ;;  %v467_v28 = vsel (%p587_p9), %vm2645_vm8, %v3235_v59, 0.0  ;;  %v538_v54 = vadd.s32 (%p587_p9), 8, %v517_v22 }
 0x392   : > { %v456_v55 = vmul.f32 (%p587_p9), %v455_v52, %v455_v52  ;;  %v462_v0 = vmul.f32 (%p587_p9), %v461_v60, %v461_v60  ;;  %v473_v2 = vsel (%p587_p9), %vm2645_vm8, %v3236_v27, 0.0  ;;  %v468_v6 = vmul.f32 (%p587_p9), %v467_v28, %v467_v28 }
 0x393   : > { %v474_v13 = vmul.f32 (%p587_p9), %v473_v2, %v473_v2  ;;  %v548_v59 = vadd.s32 (%p587_p9), 16, %v517_v22 }
 0x394   : > { %v524_v29 = vld [vmem:[%s518_s24] sm:$0xff] (%p587_p9) }
 0x395   : >> { %v1622_v57 = vld [vmem:[%s1577_s3] ss:$0 sm:$0xff]  ;;  %v3125_v30 = vld [vmem:[%s1577_s3 + $0x19] sm:$0x7f]  ;;  %v3126_v31 = vld [vmem:[%s1577_s3 + $0x18] ss:$0 sm:$0xff] }
 0x396   : >> { %3124 = vst [vmem:[%s4796_s20 + $0x1] sm:$0x1] %v1622_v57  ;;  %v1631_v32 = vsel %vm1630_vm7, %v3122_v8, %v3125_v30  ;;  %v3128_v33 = vld [vmem:[%s1577_s3 + $0x11] sm:$0x7f]  ;;  %v3129_v34 = vld [vmem:[%s1577_s3 + $0x10] ss:$0 sm:$0xff] }
 0x397   : >> { %3127 = vst [vmem:[%s1577_s3 + $0x18] sm:$0xff] %v1631_v32  ;;  %v1640_v35 = vsel %vm1630_vm7, %v3126_v31, %v3128_v33  ;;  %v3131_v36 = vld [vmem:[%s1577_s3 + $0x9] sm:$0x7f]  ;;  %v3132_v37 = vld [vmem:[%s1577_s3 + $0x8] ss:$0 sm:$0xff] }
 0x398   : >> { %3130 = vst [vmem:[%s1577_s3 + $0x10] sm:$0xff] %v1640_v35  ;;  %v1649_v38 = vsel %vm1630_vm7, %v3129_v34, %v3131_v36  ;;  %v3134_v39 = vld [vmem:[%s1577_s3 + $0x1] sm:$0x7f]  ;;  %v3240_v33 = vld [vmem:[%s518_s24 + $0x8] sm:$0xff] (%p587_p9)  ;;  %v525_v34 = vsel (%p587_p9), %vm2645_vm8, %v524_v29, 0.0 }
 0x399   : >> { %3133 = vst [vmem:[%s1577_s3 + $0x8] sm:$0xff] %v1649_v38  ;;  %v1657_v40 = vsel %vm1630_vm7, %v3132_v37, %v3134_v39  ;;  %vm418_vm7 = vcmp.eq.s32.totalorder (%p587_p9), %v417_v61, %v395_v23  ;;  %v479_v23 = vmov (%p587_p9), %v4153_v23  ;;  %v3241_v38 = vld [vmem:[%s518_s24 + $0x10] sm:$0xff] (%p587_p9)  ;;  %v535_v39 = vsel (%p587_p9), %vm2645_vm8, %v3240_v33, 0.0 }
 0x39a   : >> { %1659 = vst [vmem:[%s1577_s3] sm:$0xff] %v1657_v40  ;;  %589 = sbr.rel (!%p587_p9) target bundleno = 320 (0x140), region = 642  ;;  %v514_v23 = vmov (%p587_p9), %v4153_v23 }
 0x39b   : > { %vm529_vm1 = vcmp.eq.s32.totalorder (%p587_p9), %v517_v22, %v514_v23  ;;  %vm539_vm2 = vcmp.eq.s32.totalorder (%p587_p9), %v538_v54, %v514_v23  ;;  %vm549_vm3 = vcmp.eq.s32.totalorder (%p587_p9), %v548_v59, %v514_v23 }
 0x39d   : > { %v405_v41 = vld [vmem:[%s399_s0] sm:$0xff] (%p587_p9)  ;;  %v3231_v42 = vld [vmem:[%s399_s0 + $0x8] sm:$0xff] (%p587_p9)  ;;  %v3232_v43 = vld [vmem:[%s399_s0 + $0x10] sm:$0xff] (%p587_p9) }
 0x39e   : > { %v406_v44 = vsel (%p587_p9), %vm2645_vm8, %v405_v41, 0.0  ;;  %v414_v45 = vsel (%p587_p9), %vm2645_vm8, %v3231_v42, 0.0  ;;  %v424_v46 = vsel (%p587_p9), %vm2645_vm8, %v3232_v43, 0.0  ;;  %v3233_v47 = vld [vmem:[%s399_s0 + $0x18] sm:$0xff] (%p587_p9)  ;;  %v526_v42 = vmul.f32 (%p587_p9), %v525_v34, %v525_v34 }
 0x39f   : > { %v407_v49 = vmul.f32 %v406_v44, %v406_v44  ;;  %v415_v50 = vmul.f32 %v414_v45, %v414_v45  ;;  %v425_v51 = vmul.f32 %v424_v46, %v424_v46  ;;  %v434_v53 = vsel %vm2645_vm8, %v3233_v47, 0.0  ;;  %v3242_v43 = vld [vmem:[%s518_s24 + $0x18] sm:$0xff] }
 0x3a0   : > { %v435_v58 = vmul.f32 %v434_v53, %v434_v53  ;;  %v545_v44 = vsel %vm2645_vm8, %v3241_v38, 0.0  ;;  %v536_v47 = vmul.f32 %v535_v39, %v535_v39  ;;  %v555_v48 = vsel %vm2645_vm8, %v3242_v43, 0.0 }
 0x3a1   : > { %v421_v56 = vadd.f32 %v415_v50, %v407_v49  ;;  %v489_v1 = vld [vmem:[%s4879_s11] sm:$0xff]  ;;  %v3237_v3 = vld [vmem:[%s4879_s11 + $0x8] sm:$0xff]  ;;  %v411_v4 = vsel %vm410_vm6, 0.0, %v407_v49  ;;  %v419_v7 = vsel %vm418_vm7, 0.0, %v415_v50  ;;  %v3238_v15 = vld [vmem:[%s4879_s11 + $0x10] sm:$0xff]  ;;  %v429_v19 = vsel %vm428_vm15, 0.0, %v425_v51 }
 0x3a2   : > { %v490_v8 = vsel %vm2645_vm8, %v489_v1, 0.0  ;;  %v420_v9 = vadd.f32 %v419_v7, %v411_v4  ;;  %v496_v14 = vsel %vm2645_vm8, %v3237_v3, 0.0  ;;  %v3239_v18 = vld [vmem:[%s4879_s11 + $0x18] sm:$0xff]  ;;  %v439_v20 = vsel %vm438_vm0, 0.0, %v435_v58 }
 0x3a3   : > { %v431_v62 = vadd.f32 %v425_v51, %v421_v56  ;;  %v491_v17 = vmul.f32 %v490_v8, %v490_v8  ;;  %v502_v21 = vsel %vm2645_vm8, %v3238_v15, 0.0  ;;  %v497_v26 = vmul.f32 %v496_v14, %v496_v14 }
 0x3a4   : > { %v430_v24 = vadd.f32 %v429_v19, %v420_v9  ;;  %v508_v57 = vsel %vm2645_vm8, %v3239_v18, 0.0  ;;  %v503_v32 = vmul.f32 %v502_v21, %v502_v21  ;;  %v546_v51 = vmul.f32 %v545_v44, %v545_v44 }
 0x3a5   : > { %v441_v63 = vadd.f32 %v435_v58, %v431_v62  ;;  %v509_v37 = vmul.f32 %v508_v57, %v508_v57  ;;  %v556_v56 = vmul.f32 %v555_v48, %v555_v48  ;;  %v558_v62 = vadd.s32 24, %v517_v22 }
 0x3a6   : > { %v440_v30 = vadd.f32 %v439_v20, %v430_v24  ;;  %v530_v27 = vsel %vm529_vm1, 0.0, %v526_v42  ;;  %v550_v1 = vsel %vm549_vm3, 0.0, %v546_v51 }
 0x3a7   : > { %v458_v5 = vadd.f32 %v456_v55, %v441_v63  ;;  %v540_v63 = vsel %vm539_vm2, 0.0, %v536_v47  ;;  %vm559_vm4 = vcmp.eq.s32.totalorder %v558_v62, %v514_v23 }
 0x3a8   : > { %v457_v35 = vadd.f32 %v456_v55, %v440_v30  ;;  %v560_v3 = vsel %vm559_vm4, 0.0, %v556_v56 }
 0x3a9   : > { %v464_v12 = vadd.f32 %v462_v0, %v458_v5 }
 0x3aa   : > { %v463_v40 = vadd.f32 %v462_v0, %v457_v35 }
 0x3ab   : > { %v470_v16 = vadd.f32 %v468_v6, %v464_v12 }
 0x3ac   : > { %v469_v45 = vadd.f32 %v468_v6, %v463_v40 }
 0x3ad   : > { %v476_v25 = vadd.f32 %v474_v13, %v470_v16 }
 0x3ae   : > { %v475_v49 = vadd.f32 %v474_v13, %v469_v45 }
 0x3af   : > { %v493_v31 = vadd.f32 %v491_v17, %v476_v25 }
 0x3b0   : > { %v492_v53 = vadd.f32 %v491_v17, %v475_v49 }
 0x3b1   : > { %v499_v36 = vadd.f32 %v497_v26, %v493_v31 }
 0x3b2   : > { %v498_v58 = vadd.f32 %v497_v26, %v492_v53 }
 0x3b3   : > { %v505_v41 = vadd.f32 %v503_v32, %v499_v36 }
 0x3b4   : > { %v504_v61 = vadd.f32 %v503_v32, %v498_v58 }
 0x3b5   : > { %v511_v46 = vadd.f32 %v509_v37, %v505_v41 }
 0x3b6   : > { %v510_v28 = vadd.f32 %v509_v37, %v504_v61 }
 0x3b7   : > { %v532_v50 = vadd.f32 %v526_v42, %v511_v46 }
 0x3b8   : > { %v531_v0 = vadd.f32 %v530_v27, %v510_v28 }
 0x3b9   : > { %v542_v52 = vadd.f32 %v536_v47, %v532_v50 }
 0x3ba   : > { %v541_v2 = vadd.f32 %v540_v63, %v531_v0 }
 0x3bb   : > { %v552_v60 = vadd.f32 %v546_v51, %v542_v52 }
 0x3bc   : > { %v551_v4 = vadd.f32 %v550_v1, %v541_v2 }
 0x3bd   : > { %v562_v55 = vadd.f32 %v556_v56, %v552_v60 }
 0x3be   : > { %v561_v5 = vadd.f32 %v560_v3, %v551_v4 }
 0x3bf   : > { %563 = vadd.xlane.f32.xlu0 %v562_v55 }
 0x3c7   : > { %571 = vadd.xlane.f32.xlu0 %v561_v5 }
 0x432   : > { %v564_v6 = vpop.xlane.xlu0 %563 }
 0x433   : > { %v565_v7 = vrot.slane %v564_v6, 4 }
 0x435   : > { %v566_v8 = vadd.f32 %v565_v7, %v564_v6 }
 0x437   : > { %v567_v9 = vrot.slane %v566_v8, 2 }
 0x439   : > { %v568_v13 = vadd.f32 %v567_v9, %v566_v8 }
 0x43a   : > { %v572_v10 = vpop.xlane.xlu0 %571 }
 0x43b   : > { %v573_v11 = vrot.slane %v572_v10, 4  ;;  %v569_v16 = vrot.slane %v568_v13, 1 }
 0x43d   : > { %v574_v12 = vadd.f32 %v573_v11, %v572_v10  ;;  %v570_v19 = vadd.f32 %v569_v16, %v568_v13 }
 0x43f   : > { %v575_v14 = vrot.slane %v574_v12, 2 }
 0x441   : > { %v576_v15 = vadd.f32 %v575_v14, %v574_v12 }
 0x443   : > { %v577_v17 = vrot.slane %v576_v15, 1 }
 0x445   : > { %v578_v18 = vadd.f32 %v577_v17, %v576_v15 }
 0x447   : > { %3275 = vpush %v578_v18 }
 0x448   : > { %3277 = vpush %v570_v19 }
 0x478   : > { %s3276_s25 = spop %3275 }
 0x479   : > { %s3278_s26 = spop %3277 }
 0x47a   : > { %s581_s27 = smul.f32 1e-10, %s3278_s26 }
 0x47c   : > { %p582_p11 = scmp.le.f32.partialorder %s3276_s25, %s581_s27 }
 0x47e   : > { %p584_p12 = por %p583_p10, %p582_p11 }
 0x480   :  { %2044 = sbr.rel (!%p584_p12) target bundleno = 319 (0x13f), region = 653 }
 0x485 PF:  { %s2045_s28 = smov [#allocation12]  ;;  %v2049_v23 = vmov %v4153_v23  ;;  %v2052_v22 = vmov %v4151_v22  ;;  %s2083_s10 = smov [#allocation15] }
 0x486   :  { %v2087_v23 = vmov %v4153_v23  ;;  %v2090_v22 = vmov %v4151_v22  ;;  %v2053_v20 = vld [vmem:[%s2045_s28] sm:$0xff]  ;;  %vm2056_vm5 = vcmp.eq.s32.totalorder %v2052_v22, %v2049_v23  ;;  %v3243_v21 = vld [vmem:[%s2045_s28 + $0x8] sm:$0xff]  ;;  %v2061_v24 = vadd.s32 8, %v2052_v22  ;;  %v3244_v57 = vld [vmem:[%s2045_s28 + $0x10] sm:$0xff]  ;;  %s2046_s29 = smov [#allocation4]  ;;  %s2084_s30 = smov [#allocation6] }
 0x487   :  { %v2067_v25 = vadd.s32 16, %v2052_v22  ;;  %v2073_v26 = vadd.s32 24, %v2052_v22  ;;  %v2057_v29 = vsel %vm2056_vm5, %v2053_v20, 0.0  ;;  %v3245_v30 = vld [vmem:[%s2045_s28 + $0x18] sm:$0xff]  ;;  %vm2094_vm8 = vcmp.eq.s32.totalorder %v2090_v22, %v2087_v23  ;;  %v2091_v33 = vld [vmem:[%s2083_s10] sm:$0xff]  ;;  %v3246_v34 = vld [vmem:[%s2083_s10 + $0x8] sm:$0xff]  ;;  %s4030_s17 = smov %s4943_s6  }
 0x488   :  { %v2099_v31 = vadd.s32 8, %v2090_v22  ;;  %v2105_v32 = vadd.s32 16, %v2090_v22  ;;  %vm2062_vm9 = vcmp.eq.s32.totalorder %v2061_v24, %v2049_v23  ;;  %v3247_v35 = vld [vmem:[%s2083_s10 + $0x10] sm:$0xff]  ;;  %v2111_v36 = vadd.s32 24, %v2090_v22  ;;  %v3248_v39 = vld [vmem:[%s2083_s10 + $0x18] sm:$0xff]  ;;  %s4034_s2 = smov [#allocation8]  }
 0x489   :  { %vm2068_vm10 = vcmp.eq.s32.totalorder %v2067_v25, %v2049_v23  ;;  %vm2074_vm11 = vcmp.eq.s32.totalorder %v2073_v26, %v2049_v23  ;;  %v2063_v37 = vsel %vm2062_vm9, %v3243_v21, %v2057_v29  ;;  %v2095_v38 = vsel %vm2094_vm8, %v2091_v33, 0.0 }
 0x48a   :  { %vm2100_vm12 = vcmp.eq.s32.totalorder %v2099_v31, %v2087_v23  ;;  %vm2106_vm13 = vcmp.eq.s32.totalorder %v2105_v32, %v2087_v23  ;;  %v2069_v40 = vsel %vm2068_vm10, %v3244_v57, %v2063_v37  ;;  %vm2112_vm14 = vcmp.eq.s32.totalorder %v2111_v36, %v2087_v23 }
 0x48b   :  { %v2101_v41 = vsel %vm2100_vm12, %v3246_v34, %v2095_v38  ;;  %v2075_v42 = vsel %vm2074_vm11, %v3245_v30, %v2069_v40 }
 0x48c   :  { %v2107_v43 = vsel %vm2106_vm13, %v3247_v35, %v2101_v41  ;;  %v2076_v44 = vrot.slane %v2075_v42, 4 }
 0x48d   :  { %v2113_v45 = vsel %vm2112_vm14, %v3248_v39, %v2107_v43 }
 0x48e   :  { %v2114_v46 = vrot.slane %v2113_v45, 4  ;;  %v2077_v47 = vadd.f32 %v2076_v44, %v2075_v42 }
 0x490   :  { %v2115_v48 = vadd.f32 %v2114_v46, %v2113_v45  ;;  %v2078_v49 = vrot.slane %v2077_v47, 2 }
 0x492   :  { %v2116_v50 = vrot.slane %v2115_v48, 2  ;;  %v2079_v51 = vadd.f32 %v2078_v49, %v2077_v47 }
 0x494   :  { %v2117_v53 = vadd.f32 %v2116_v50, %v2115_v48  ;;  %v2080_v22 = vrot.slane %v2079_v51, 1 }
 0x496   :  { %v2118_v54 = vrot.slane %v2117_v53, 1  ;;  %v2081_v52 = vadd.f32 %v2080_v22, %v2079_v51 }
 0x498   :  { %v2119_v56 = vadd.f32 %v2118_v54, %v2117_v53  ;;  %2082 = vst [vmem:[%s2046_s29] sm:$0x1] %v2081_v52 }
 0x49a   :  { %2120 = vst [vmem:[%s2084_s30] sm:$0x1] %v2119_v56 }
 0x49f   :  { %v2123_v23 = vld [vmem:[#allocation4] sm:$0x1] }
 0x4a0   :  { %2126 = vst [vmem:[#allocation5] sm:$0x1] %v2123_v23 }
 0x4a1   :  { %v2129_v58 = vld [vmem:[#allocation6] sm:$0x1] }
 0x4a2   :  { %2132 = vst [vmem:[#allocation7] sm:$0x1] %v2129_v58 }
 0x4a7   :  { %v2189_v59 = vld [vmem:[#allocation5] sm:$0x1] }
 0x4a8   :  { %2190 = vst [vmem:[%s4941_s4] sm:$0x1] %v2189_v59 }
 0x4a9   :  { %v2247_v60 = vld [vmem:[#allocation7] sm:$0x1] }
 0x4aa   :  { %2248 = vst [vmem:[%s4942_s5] sm:$0x1] %v2247_v60 }
 0x4ab LB: > { %v2292_v61 = vld [vmem:[%s4036_s2] sm:$0xff]  ;;  %s2294_s2 = scalar_lea.vmem %s4036_s2, 8   ;;  %s4036_s2 = sphi %s4034_s2, %s2294_s2   ;;  %s4032_s17 = sphi %s4030_s17, %s2295_s17  }
 0x4ac   : > { %2293 = vst [vmem:[%s4032_s17] sm:$0xff] %v2292_v61  ;;  %s2295_s17 = scalar_lea.vmem %s4032_s17, 8   ;;  %p2289_p13 = scmp.gt.s32.totalorder %s2294_s2, [#allocation8 + $0x18] }
 0x4ad   :  { %s4038_s5 = smov (%p2289_p13), %s4944_s7   ;;  %s4042_s19 = smov (%p2289_p13), [#allocation9]  }
 0x4ae   :  { %2291 = sbr.rel (!%p2289_p13) target bundleno = 1195 (0x4ab), region = 719 }
 0x4b3 LB: > { %v2348_v62 = vld [vmem:[%s4044_s19] sm:$0xff]  ;;  %s2350_s19 = scalar_lea.vmem %s4044_s19, 8   ;;  %s4044_s19 = sphi %s4042_s19, %s2350_s19   ;;  %s4040_s5 = sphi %s4038_s5, %s2351_s5  }
 0x4b4   : > { %2349 = vst [vmem:[%s4040_s5] sm:$0xff] %v2348_v62  ;;  %s2351_s5 = scalar_lea.vmem %s4040_s5, 8   ;;  %p2345_p0 = scmp.gt.s32.totalorder %s2350_s19, [#allocation9 + $0x18] }
 0x4b5   :  { %s4046_s21 = smov (%p2345_p0), %s4945_s8   ;;  %s4050_s3 = smov (%p2345_p0), [#allocation10]  }
 0x4b6   :  { %2347 = sbr.rel (!%p2345_p0) target bundleno = 1203 (0x4b3), region = 741 }
 0x4bb LB: > { %v2404_v55 = vld [vmem:[%s4052_s3] sm:$0xff]  ;;  %s2406_s3 = scalar_lea.vmem %s4052_s3, 8   ;;  %s4052_s3 = sphi %s4050_s3, %s2406_s3   ;;  %s4048_s21 = sphi %s4046_s21, %s2407_s21  }
 0x4bc   : > { %2405 = vst [vmem:[%s4048_s21] sm:$0xff] %v2404_v55  ;;  %s2407_s21 = scalar_lea.vmem %s4048_s21, 8   ;;  %p2401_p1 = scmp.gt.s32.totalorder %s2406_s3, [#allocation10 + $0x18] }
 0x4bd   :  { %s4054_s0 = smov (%p2401_p1), %s4946_s9   ;;  %s4058_s23 = smov (%p2401_p1), [#allocation11]  }
 0x4be   :  { %2403 = sbr.rel (!%p2401_p1) target bundleno = 1211 (0x4bb), region = 763 }
 0x4c3 LB: > { %v2460_v27 = vld [vmem:[%s4060_s23] sm:$0xff]  ;;  %s2462_s23 = scalar_lea.vmem %s4060_s23, 8   ;;  %s4060_s23 = sphi %s4058_s23, %s2462_s23   ;;  %s4056_s0 = sphi %s4054_s0, %s2463_s0  }
 0x4c4   : > { %2461 = vst [vmem:[%s4056_s0] sm:$0xff] %v2460_v27  ;;  %s2463_s0 = scalar_lea.vmem %s4056_s0, 8   ;;  %p2457_p2 = scmp.gt.s32.totalorder %s2462_s23, [#allocation11 + $0x18] }
 0x4c6   :  { %2459 = sbr.rel (!%p2457_p2) target bundleno = 1219 (0x4c3), region = 785 }

// kernel: theia_dinov2_forward.2
= control target key start
LH: loop header
LB: loop body
LE: loop exit
PB: predicated region body
PF: predicated region fallthrough
CT: control target
= control target key end

     0   :  { %11 = vsyncpa [#allocation3], 0  ;;  %s986_s0 = inlined_call_operand.vmem [shape: bf16[32,256], index: 0, kind: input, shape index: {}]   ;;  %s987_s1 = inlined_call_operand.hbm [shape: bf16[256,128], index: 1, kind: input, shape index: {}]   ;;  %s988_s2 = inlined_call_operand.hbm [shape: bf16[128,128], index: 2, kind: input, shape index: {}]   ;;  %s989_s3 = inlined_call_operand.hbm [shape: f32[8,128], index: 3, kind: input, shape index: {}]   ;;  %s990_s4 = inlined_call_operand.vmem [shape: f32[32,128], index: 4, kind: output, shape index: {0}]   ;;  %s991_s5 = inlined_call_operand.vmem [shape: f32[128,128], index: 5, kind: output, shape index: {1}]  }
   0x1   :  { %12 = vsyncpa [#allocation5], 0  ;;  %s32_s20 = sshll.u32 %s988_s2, 4  ;;  %s836_s21 = smov [#allocation4]   ;;  %s33_s20 = int_to_ptr.hbm [resolvable:$true] %s32_s20 }
   0x2   :  { %s34_s22 = sshll.u32 %s836_s21, 4  ;;  %s19_s25 = sshll.u32 %s987_s1, 4  ;;  %s35_s22 = int_to_ptr.vmem [resolvable:$true] %s34_s22  ;;  %s20_s25 = int_to_ptr.hbm [resolvable:$true] %s19_s25 }
   0x3   :  { %s837_s26 = smov 64   ;;  %s838_s27 = smov 4  }
   0x4   :  { %40 = dma.hbm_to_vmem [thread:$0]  %s33_s20, 1024, %s35_s22, [#allocation5], %s837_s26, %s837_s26, %s838_s27  }
   0x5   :  { %s839_s28 = smov [#allocation2]   ;;  %s46_s7 = sshll.u32 %s989_s3, 4  ;;  %s47_s7 = int_to_ptr.hbm [resolvable:$true] %s46_s7 }
   0x6   :  { %s21_s29 = sshll.u32 %s839_s28, 4  ;;  %s840_s2 = smov [#allocation6]   ;;  %s22_s29 = int_to_ptr.vmem [resolvable:$true] %s21_s29 }
   0x7   :  { %27 = dma.hbm_to_vmem [thread:$0]  %s20_s25, 2048, %s22_s29, [#allocation3], %s837_s26, %s837_s26, %s838_s27  }
   0x8   :  { %s48_s8 = sshll.u32 %s840_s2, 4  ;;  %s49_s8 = int_to_ptr.vmem [resolvable:$true] %s48_s8 }
   0x9   :  { %51 = dma.hbm_to_vmem [thread:$0]  %s47_s7, 128, %s49_s8, [#allocation5]  }
   0xa   :  { %832 = dma.done.wait [#allocation3], 2048  }
   0xb   :  { %833 = vsyncadd [#allocation3], 4294965248 }
   0xc   :  { %834 = dma.done.wait [#allocation5], 1152  }
   0xd   :  { %835 = vsyncadd [#allocation5], 4294966144  ;;  %v717_v0 = vld [vmem:[#allocation2 + $0x38] sm:$0xff]  ;;  %v716_v2 = vld [vmem:[#allocation2 + $0x30] sm:$0xff]  ;;  %vm438_vm0 = vcmask 261120  }
   0xe   :  { %v725_v1 = vld [vmem:[#allocation2 + $0x78] sm:$0xff]  ;;  %218 = vmatpush.bf16.msra.mxu0 %v717_v0  ;;  %v724_v3 = vld [vmem:[#allocation2 + $0x70] sm:$0xff]  ;;  %v715_v4 = vld [vmem:[#allocation2 + $0x28] sm:$0xff] }
   0xf   :  { %237 = vmatpush.bf16.msra.mxu1 %v725_v1  ;;  %v723_v5 = vld [vmem:[#allocation2 + $0x68] sm:$0xff]  ;;  %v714_v6 = vld [vmem:[#allocation2 + $0x20] sm:$0xff]  ;;  %v713_v8 = vld [vmem:[#allocation2 + $0x18] sm:$0xff] }
  0x10   :  { %v722_v7 = vld [vmem:[#allocation2 + $0x60] sm:$0xff]  ;;  %v721_v9 = vld [vmem:[#allocation2 + $0x58] sm:$0xff]  ;;  %v712_v10 = vld [vmem:[#allocation2 + $0x10] sm:$0xff] }
  0x11   :  { %v720_v11 = vld [vmem:[#allocation2 + $0x50] sm:$0xff]  ;;  %v711_v12 = vld [vmem:[#allocation2 + $0x8] sm:$0xff]  ;;  %v710_v14 = vld [vmem:[#allocation2] sm:$0xff] }
  0x12   :  { %219 = vmatpush.bf16.msra.mxu0 %v716_v2  ;;  %v719_v13 = vld [vmem:[#allocation2 + $0x48] sm:$0xff]  ;;  %v718_v15 = vld [vmem:[#allocation2 + $0x40] sm:$0xff]  ;;  %v588_v22 = vld [vmem:[%s986_s0 + $0x10] sm:$0xf] }
  0x13   :  { %238 = vmatpush.bf16.msra.mxu1 %v724_v3  ;;  %v580_v16 = vld [vmem:[%s986_s0] sm:$0xf]  ;;  %v707_v17 = vld [vmem:[%s986_s0 + $0x4] sm:$0xf0]  ;;  %v706_v18 = vld [vmem:[%s986_s0 + $0x4] sm:$0xf] }
  0x14   :  { %v582_v19 = vld [vmem:[%s986_s0 + $0x8] sm:$0xf0]  ;;  %v581_v20 = vor.u32 %v707_v17, %v580_v16  ;;  %v709_v23 = vld [vmem:[%s986_s0 + $0x14] sm:$0xf0]  ;;  %v708_v24 = vld [vmem:[%s986_s0 + $0x14] sm:$0xf] }
  0x15   :  { %v585_v21 = vor.u32 %v706_v18, %v582_v19  ;;  %v590_v25 = vld [vmem:[%s986_s0 + $0x18] sm:$0xf0]  ;;  %v589_v26 = vor.u32 %v709_v23, %v588_v22  ;;  %v732_v29 = vld [vmem:[#allocation4 + $0x30] sm:$0xff]  ;;  %v731_v30 = vld [vmem:[#allocation4 + $0x28] sm:$0xff] }
  0x16   :  { %220 = vmatpush.bf16.msra.mxu0 %v715_v4  ;;  %v593_v27 = vor.u32 %v708_v24, %v590_v25  ;;  %v733_v28 = vld [vmem:[#allocation4 + $0x38] sm:$0xff]  ;;  %v730_v31 = vld [vmem:[#allocation4 + $0x20] sm:$0xff]  ;;  %v728_v33 = vld [vmem:[#allocation4 + $0x10] sm:$0xff] }
  0x17   :  { %239 = vmatpush.bf16.msra.mxu1 %v723_v5  ;;  %359 = vmatpush.bf16.msra.mxu2 %v733_v28  ;;  %v729_v32 = vld [vmem:[#allocation4 + $0x18] sm:$0xff]  ;;  %v904_v34 = vld [vmem:[#allocation6] sm:$0xff]  ;;  %v727_v36 = vld [vmem:[#allocation4 + $0x8] sm:$0xff] }
  0x18   :  { %v101_v35 = vperm.slane %v904_v34, 0  ;;  %v726_v40 = vld [vmem:[#allocation4] sm:$0xff] }
  0x1a   :  { %221 = vmatpush.bf16.msra.mxu0 %v714_v6 }
  0x1b   :  { %240 = vmatpush.bf16.msra.mxu1 %v722_v7  ;;  %360 = vmatpush.bf16.msra.mxu2 %v732_v29 }
  0x1e   :  { %222 = vmatpush.bf16.msra.mxu0 %v713_v8 }
  0x1f   :  { %241 = vmatpush.bf16.msra.mxu1 %v721_v9  ;;  %361 = vmatpush.bf16.msra.mxu2 %v731_v30  ;;  %v310_v30 = vperm.slane %v904_v34, 1 }
  0x22   :  { %223 = vmatpush.bf16.msra.mxu0 %v712_v10 }
  0x23   :  { %242 = vmatpush.bf16.msra.mxu1 %v720_v11  ;;  %362 = vmatpush.bf16.msra.mxu2 %v730_v31 }
  0x26   :  { %224 = vmatpush.bf16.msra.mxu0 %v711_v12 }
  0x27   :  { %243 = vmatpush.bf16.msra.mxu1 %v719_v13  ;;  %363 = vmatpush.bf16.msra.mxu2 %v729_v32 }
  0x2a   :  { %225 = vmatpush.bf16.msra.mxu0 %v710_v14 }
  0x2b   :  { %244 = vmatpush.bf16.msra.mxu1 %v718_v15  ;;  %364 = vmatpush.bf16.msra.mxu2 %v728_v33 }
  0x2d   :  { %226 = vmatmul.bf16.vlgmr.msra.gmra.mxu0 %v581_v20 }
  0x2e   :  { %245 = vmatmul.bf16.vlgmr.msra.gmra.mxu1 %v585_v21 }
  0x2f   :  { %365 = vmatpush.bf16.msra.mxu2 %v727_v36 }
  0x33   :  { %366 = vmatpush.bf16.msra.mxu2 %v726_v40 }
  0x3d   :  { %231 = vmatmul.bf16.gmra.mxu0 %v589_v26 }
  0x3e   :  { %250 = vmatmul.bf16.gmra.mxu1 %v593_v27 }
  0xaa   :  { %v227_v37 = vpop.f32.mrf.mxu0 }
  0xab   :  { %v246_v38 = vpop.f32.mrf.mxu1  ;;  %v228_v39 = vadd.f32 %v227_v37, %v101_v35 }
  0xad   :  { %v247_v41 = vadd.f32 %v246_v38, %v228_v39  ;;  %v383_v39 = vperm.slane %v904_v34, 2 }
  0xaf   :  { %v256_v42 = vmul.f32 %v247_v41, %v247_v41 }
  0xb1   :  { %v260_v43 = vmul.f32 %v256_v42, %v247_v41 }
  0xb2   :  { %v229_v44 = vpop.f32.mrf.mxu0 }
  0xb3   :  { %v248_v45 = vpop.f32.mrf.mxu1  ;;  %v264_v46 = vmul.f32 0.044715, %v260_v43  ;;  %v230_v47 = vadd.f32 %v229_v44, %v101_v35 }
  0xb5   :  { %v268_v48 = vadd.f32 %v264_v46, %v247_v41  ;;  %v249_v49 = vadd.f32 %v248_v45, %v230_v47 }
  0xb7   :  { %v257_v50 = vmul.f32 %v249_v49, %v249_v49  ;;  %v272_v51 = vmul.f32 0.7978846, %v268_v48 }
  0xb9   :  { %v261_v52 = vmul.f32 %v257_v50, %v249_v49  ;;  %752 = vtanh.f32 %v272_v51 }
  0xba   :  { %v232_v53 = vpop.f32.mrf.mxu0 }
  0xbb   :  { %v251_v54 = vpop.f32.mrf.mxu1  ;;  %v265_v55 = vmul.f32 0.044715, %v261_v52  ;;  %v233_v56 = vadd.f32 %v232_v53, %v101_v35 }
  0xbd   :  { %v269_v57 = vadd.f32 %v265_v55, %v249_v49  ;;  %v252_v58 = vadd.f32 %v251_v54, %v233_v56 }
  0xbf   :  { %v258_v59 = vmul.f32 %v252_v58, %v252_v58  ;;  %v273_v60 = vmul.f32 0.7978846, %v269_v57  ;;  %v753_v61 = vpop.eup %752 }
  0xc0   :  { %v280_v3 = vadd.f32 1.0, %v753_v61 }
  0xc1   :  { %v262_v62 = vmul.f32 %v258_v59, %v252_v58  ;;  %754 = vtanh.f32 %v273_v60 }
  0xc2   :  { %v234_v63 = vpop.f32.mrf.mxu0  ;;  %v284_v10 = vmul.f32 0.5, %v280_v3 }
  0xc3   :  { %v266_v0 = vmul.f32 0.044715, %v262_v62  ;;  %v235_v1 = vadd.f32 %v234_v63, %v101_v35  ;;  %v253_v2 = vpop.f32.mrf.mxu1  ;;  %v378_v35 = vperm.slane %v904_v34, 3 }
  0xc4   :  { %v288_v14 = vmul.f32 %v284_v10, %v247_v41 }
  0xc5   :  { %v270_v4 = vadd.f32 %v266_v0, %v252_v58  ;;  %v254_v5 = vadd.f32 %v253_v2, %v235_v1 }
  0xc7   :  { %v755_v6 = vpop.eup %754  ;;  %v259_v7 = vmul.f32 %v254_v5, %v254_v5  ;;  %v274_v8 = vmul.f32 0.7978846, %v270_v4 }
  0xc8   :  { %v281_v9 = vadd.f32 1.0, %v755_v6 }
  0xc9   :  { %v263_v11 = vmul.f32 %v259_v7, %v254_v5  ;;  %756 = vtanh.f32 %v274_v8 }
  0xca   :  { %v285_v12 = vmul.f32 0.5, %v281_v9 }
  0xcb   :  { %v267_v13 = vmul.f32 0.044715, %v263_v11 }
  0xcc   :  { %v289_v15 = vmul.f32 %v285_v12, %v249_v49 }
  0xcd   :  { %v271_v16 = vadd.f32 %v267_v13, %v254_v5 }
  0xce   :  { %v292_v17 = vpack.c.bf16 %v289_v15, %v288_v14 }
  0xcf   :  { %v275_v18 = vmul.f32 0.7978846, %v271_v16  ;;  %v757_v19 = vpop.eup %756 }
  0xd0   :  { %367 = vmatmul.bf16.vlgmr.msra.gmra.mxu2 %v292_v17  ;;  %v282_v20 = vadd.f32 1.0, %v757_v19 }
  0xd1   :  { %758 = vtanh.f32 %v275_v18 }
  0xd2   :  { %v286_v23 = vmul.f32 0.5, %v282_v20 }
  0xd4   :  { %v290_v25 = vmul.f32 %v286_v23, %v252_v58 }
  0xd7   :  { %v759_v21 = vpop.eup %758 }
  0xd8   :  { %v283_v22 = vadd.f32 1.0, %v759_v21 }
  0xda   :  { %v287_v24 = vmul.f32 0.5, %v283_v22 }
  0xdc   :  { %v291_v26 = vmul.f32 %v287_v24, %v254_v5 }
  0xde   :  { %v293_v27 = vpack.c.bf16 %v291_v26, %v290_v25 }
  0xe0   :  { %372 = vmatmul.bf16.gmra.mxu2 %v293_v27 }
 0x153   :  { %v368_v28 = vpop.f32.mrf.mxu2 }
 0x154   :  { %v369_v33 = vadd.f32 %v368_v28, %v310_v30 }
 0x156   :  { %v379_v38 = vmul.f32 %v378_v35, %v369_v33 }
 0x158   :  { %v384_v43 = vadd.f32 %v383_v39, %v379_v38 }
 0x15b   :  { %v370_v29 = vpop.f32.mrf.mxu2 }
 0x15c   :  { %v371_v31 = vadd.f32 %v370_v29, %v310_v30 }
 0x15e   :  { %v380_v37 = vmul.f32 %v378_v35, %v371_v31 }
 0x160   :  { %v385_v41 = vadd.f32 %v383_v39, %v380_v37 }
 0x162   :  { %v388_v46 = vadd.f32 %v385_v41, %v384_v43 }
 0x163   :  { %v373_v32 = vpop.f32.mrf.mxu2 }
 0x164   :  { %v374_v36 = vadd.f32 %v373_v32, %v310_v30 }
 0x166   :  { %v381_v40 = vmul.f32 %v378_v35, %v374_v36 }
 0x168   :  { %v386_v44 = vadd.f32 %v383_v39, %v381_v40 }
 0x16a   :  { %v389_v48 = vadd.f32 %v388_v46, %v386_v44 }
 0x16b   :  { %v375_v42 = vpop.f32.mrf.mxu2 }
 0x16c   :  { %v376_v45 = vadd.f32 %v375_v42, %v310_v30 }
 0x16e   :  { %v382_v47 = vmul.f32 %v378_v35, %v376_v45 }
 0x170   :  { %v387_v49 = vadd.f32 %v383_v39, %v382_v47 }
 0x172   :  { %v390_v50 = vadd.f32 %v389_v48, %v387_v49 }
 0x174   :  { %v391_v51 = vrot.slane %v390_v50, 4 }
 0x176   :  { %v392_v52 = vadd.f32 %v391_v51, %v390_v50 }
 0x178   :  { %v393_v53 = vrot.slane %v392_v52, 2 }
 0x17a   :  { %v394_v54 = vadd.f32 %v393_v53, %v392_v52 }
 0x17c   :  { %v395_v55 = vrot.slane %v394_v54, 1 }
 0x17e   :  { %v396_v56 = vadd.f32 %v395_v55, %v394_v54 }
 0x180   :  { %v397_v57 = vmul.f32 0.03125, %v396_v56 }
 0x182   :  { %v401_v58 = vsub.f32 %v387_v49, %v397_v57  ;;  %v398_v34 = vsub.f32 %v384_v43, %v397_v57  ;;  %v400_v59 = vsub.f32 %v386_v44, %v397_v57  ;;  %v399_v60 = vsub.f32 %v385_v41, %v397_v57 }
 0x184   :  { %405 = vst [vmem:[%s990_s4 + $0x18] sm:$0xff] %v401_v58  ;;  %499 = vmatpush.msrb.mxu0 %v401_v58  ;;  %734 = vmatpush.msrb.mxu1 %v401_v58 }
 0x185   :  { %735 = vmatpush.msrb.mxu2 %v401_v58  ;;  %736 = vmatpush.msra.mxu3 %v401_v58  ;;  %402 = vst [vmem:[%s990_s4] sm:$0xff] %v398_v34 }
 0x186   :  { %406 = vxpose.xlu0.b32.start [1/4] (short) %v398_v34, 128  ;;  %404 = vst [vmem:[%s990_s4 + $0x10] sm:$0xff] %v400_v59  ;;  %500 = vmatpush.msrb.mxu0 %v400_v59 }
 0x187   :  { %737 = vmatpush.msrb.mxu1 %v400_v59  ;;  %738 = vmatpush.msrb.mxu2 %v400_v59  ;;  %403 = vst [vmem:[%s990_s4 + $0x8] sm:$0xff] %v399_v60 }
 0x188   :  { %739 = vmatpush.msra.mxu3 %v400_v59  ;;  %501 = vmatpush.msrb.mxu0 %v399_v60 }
 0x189   :  { %740 = vmatpush.msrb.mxu1 %v399_v60  ;;  %741 = vmatpush.msrb.mxu2 %v399_v60 }
 0x18a   :  { %742 = vmatpush.msra.mxu3 %v399_v60  ;;  %502 = vmatpush.msrb.mxu0 %v398_v34 }
 0x18b   :  { %743 = vmatpush.msrb.mxu1 %v398_v34  ;;  %744 = vmatpush.msrb.mxu2 %v398_v34 }
 0x18c   :  { %745 = vmatpush.msra.mxu3 %v398_v34 }
 0x18e   :  { %407 = vxpose.xlu0.b32.cont [2/4] (short) %v399_v60, 128 }
 0x196   :  { %408 = vxpose.xlu0.b32.cont [3/4] (short) %v400_v59, 128 }
 0x19e   :  { %409 = vxpose.xlu0.b32.end [4/4] (short) %v401_v58, 128 }
 0x22a   :  { %v422_v61 = vpop.trf.xlu0 }
 0x22b   :  { %690 = vmatmul.msk.f32.vlgmr.msrb.gmra.mxu0 %vm438_vm0, %v422_v61 }
 0x232   :  { %v423_v62 = vpop.trf.xlu0 }
 0x233   :  { %691 = vmatmul.msk.f32.vlgmr.msrb.gmra.mxu1 %vm438_vm0, %v423_v62 }
 0x23a   :  { %v424_v63 = vpop.trf.xlu0 }
 0x23b   :  { %692 = vmatmul.msk.f32.gmra.mxu1 %vm438_vm0, %v424_v63 }
 0x242   :  { %v425_v0 = vpop.trf.xlu0 }
 0x243   :  { %693 = vmatmul.msk.f32.gmra.mxu1 %vm438_vm0, %v425_v0 }
 0x24a   :  { %v426_v1 = vpop.trf.xlu0 }
 0x24b   :  { %694 = vmatmul.msk.f32.vlgmr.msrb.gmra.mxu2 %vm438_vm0, %v426_v1 }
 0x252   :  { %v427_v2 = vpop.trf.xlu0 }
 0x253   :  { %695 = vmatmul.msk.f32.gmra.mxu2 %vm438_vm0, %v427_v2 }
 0x25a   :  { %v428_v3 = vpop.trf.xlu0 }
 0x25b   :  { %696 = vmatmul.msk.f32.vlgmr.msra.gmra.mxu3 %vm438_vm0, %v428_v3 }
 0x262   :  { %v429_v4 = vpop.trf.xlu0 }
 0x263   :  { %697 = vmatmul.msk.f32.gmra.mxu3 %vm438_vm0, %v429_v4 }
 0x26a   :  { %v430_v5 = vpop.trf.xlu0 }
 0x26b   :  { %698 = vmatmul.msk.f32.gmra.mxu3 %vm438_vm0, %v430_v5 }
 0x272   :  { %v431_v6 = vpop.trf.xlu0 }
 0x273   :  { %699 = vmatmul.msk.f32.gmra.mxu3 %vm438_vm0, %v431_v6 }
 0x27a   :  { %v432_v7 = vpop.trf.xlu0 }
 0x27b   :  { %700 = vmatmul.msk.f32.gmra.mxu3 %vm438_vm0, %v432_v7 }
 0x282   :  { %v433_v8 = vpop.trf.xlu0 }
 0x283   :  { %701 = vmatmul.msk.f32.gmra.mxu3 %vm438_vm0, %v433_v8 }
 0x28a   :  { %v434_v9 = vpop.trf.xlu0 }
 0x28b   :  { %702 = vmatmul.msk.f32.gmra.mxu3 %vm438_vm0, %v434_v9 }
 0x292   :  { %v435_v10 = vpop.trf.xlu0 }
 0x293   :  { %703 = vmatmul.msk.f32.gmra.mxu3 %vm438_vm0, %v435_v10 }
 0x29a   :  { %v436_v11 = vpop.trf.xlu0 }
 0x29b   :  { %704 = vmatmul.msk.f32.gmra.mxu3 %vm438_vm0, %v436_v11 }
 0x2a2   :  { %v437_v12 = vpop.trf.xlu0 }
 0x2a3   :  { %705 = vmatmul.msk.f32.gmra.mxu3 %vm438_vm0, %v437_v12 }
 0x2a8   :  { %v504_v13 = vpop.f32.mrf.mxu0 }
 0x2a9   :  { %552 = vst [vmem:[%s991_s5] sm:$0xff] %v504_v13 }
 0x2b0   :  { %v507_v14 = vpop.f32.mrf.mxu1 }
 0x2b1   :  { %553 = vst [vmem:[%s991_s5 + $0x8] sm:$0xff] %v507_v14 }
 0x2b8   :  { %v510_v15 = vpop.f32.mrf.mxu1 }
 0x2b9   :  { %554 = vst [vmem:[%s991_s5 + $0x10] sm:$0xff] %v510_v15 }
 0x2c0   :  { %v513_v16 = vpop.f32.mrf.mxu1 }
 0x2c1   :  { %555 = vst [vmem:[%s991_s5 + $0x18] sm:$0xff] %v513_v16 }
 0x2ce   :  { %v516_v17 = vpop.f32.mrf.mxu2 }
 0x2cf   :  { %556 = vst [vmem:[%s991_s5 + $0x20] sm:$0xff] %v516_v17 }
 0x2d6   :  { %v519_v18 = vpop.f32.mrf.mxu2 }
 0x2d7   :  { %557 = vst [vmem:[%s991_s5 + $0x28] sm:$0xff] %v519_v18 }
 0x2de   :  { %v522_v19 = vpop.f32.mrf.mxu3 }
 0x2df   :  { %558 = vst [vmem:[%s991_s5 + $0x30] sm:$0xff] %v522_v19 }
 0x2e6   :  { %v525_v20 = vpop.f32.mrf.mxu3 }
 0x2e7   :  { %559 = vst [vmem:[%s991_s5 + $0x38] sm:$0xff] %v525_v20 }
 0x2ee   :  { %v528_v21 = vpop.f32.mrf.mxu3 }
 0x2ef   :  { %560 = vst [vmem:[%s991_s5 + $0x40] sm:$0xff] %v528_v21 }
 0x2f6   :  { %v531_v22 = vpop.f32.mrf.mxu3 }
 0x2f7   :  { %561 = vst [vmem:[%s991_s5 + $0x48] sm:$0xff] %v531_v22 }
 0x2fe   :  { %v534_v23 = vpop.f32.mrf.mxu3 }
 0x2ff   :  { %562 = vst [vmem:[%s991_s5 + $0x50] sm:$0xff] %v534_v23 }
 0x306   :  { %v537_v24 = vpop.f32.mrf.mxu3 }
 0x307   :  { %563 = vst [vmem:[%s991_s5 + $0x58] sm:$0xff] %v537_v24 }
 0x30e   :  { %v540_v25 = vpop.f32.mrf.mxu3 }
 0x30f   :  { %564 = vst [vmem:[%s991_s5 + $0x60] sm:$0xff] %v540_v25 }
 0x316   :  { %v543_v26 = vpop.f32.mrf.mxu3 }
 0x317   :  { %565 = vst [vmem:[%s991_s5 + $0x68] sm:$0xff] %v543_v26 }
 0x31e   :  { %v546_v27 = vpop.f32.mrf.mxu3 }
 0x31f   :  { %566 = vst [vmem:[%s991_s5 + $0x70] sm:$0xff] %v546_v27 }
 0x326   :  { %v549_v28 = vpop.f32.mrf.mxu3 }
 0x327   :  { %567 = vst [vmem:[%s991_s5 + $0x78] sm:$0xff] %v549_v28 }
 0x328   :  { %576 = vsyncpa [#allocation3], 1 }
 0x329   :  { %577 = vsyncpa [#allocation5], 1 }

// kernel: theia_dinov2_forward.3
= control target key start
LH: loop header
LB: loop body
LE: loop exit
PB: predicated region body
PF: predicated region fallthrough
CT: control target
= control target key end

     0   :  { %v23_v0 = vlaneseq  ;;  %v423_v15 = vmov 1.0   ;;  %s649_s1 = inlined_call_operand.vmem [shape: f32[64,64], index: 1, kind: input, shape index: {}]   ;;  %s650_s0 = inlined_call_operand.vmem [shape: f32[32,128], index: 0, kind: input, shape index: {}]   ;;  %s651_s2 = inlined_call_operand.vmem [shape: f32[32,128], index: 2, kind: output, shape index: {}]  }
   0x1   :  { %v15_v19 = vld [vmem:[%s649_s1] sm:$0xff]  ;;  %v18_v20 = vld [vmem:[%s649_s1 + $0x18] sm:$0xff]  ;;  %v21_v21 = vld [vmem:[%s649_s1 + $0x30] sm:$0xff] }
   0x2   :  { %v441_v1 = vshrl.u32 %v23_v0, 7  ;;  %v33_v2 = vand.u32 127, %v23_v0  ;;  %v16_v22 = vld [vmem:[%s649_s1 + $0x8] sm:$0xff]  ;;  %v19_v23 = vld [vmem:[%s649_s1 + $0x20] sm:$0xff]  ;;  %v22_v24 = vld [vmem:[%s649_s1 + $0x38] sm:$0xff] }
   0x3   :  { %v17_v25 = vld [vmem:[%s649_s1 + $0x10] sm:$0xff]  ;;  %v20_v26 = vld [vmem:[%s649_s1 + $0x28] sm:$0xff] }
   0x4   :  { %v444_v3 = vadd.s32 56, %v441_v1  ;;  %v447_v4 = vadd.s32 48, %v441_v1  ;;  %v450_v5 = vadd.s32 40, %v441_v1  ;;  %vm50_vm0 = vcmp.lt.s32.totalorder %v33_v2, 3 }
   0x5   :  { %v453_v6 = vadd.s32 32, %v441_v1  ;;  %v456_v7 = vadd.s32 24, %v441_v1  ;;  %v462_v11 = vadd.s32 16, %v441_v1  ;;  %v466_v13 = vadd.s32 8, %v441_v1 }
   0x6   :  { %v41_v8 = vadd.s32 %v33_v2, %v444_v3  ;;  %v40_v9 = vadd.s32 %v33_v2, %v447_v4  ;;  %v39_v10 = vadd.s32 %v33_v2, %v450_v5  ;;  %v34_v18 = vadd.s32 %v33_v2, %v441_v1 }
   0x7   :  { %v38_v12 = vadd.s32 %v33_v2, %v453_v6  ;;  %v37_v14 = vadd.s32 %v33_v2, %v456_v7  ;;  %v36_v16 = vadd.s32 %v33_v2, %v462_v11  ;;  %v35_v17 = vadd.s32 %v33_v2, %v466_v13 }
   0x8   :  { %vm49_vm1 = vcmp.eq.s32.totalorder %v41_v8, 63  ;;  %vm48_vm2 = vcmp.eq.s32.totalorder %v40_v9, 63  ;;  %vm47_vm3 = vcmp.eq.s32.totalorder %v39_v10, 63  ;;  %vm42_vm14 = vcmp.eq.s32.totalorder %v34_v18, 63 }
   0x9   :  { %vm58_vm4 = vmand %vm49_vm1, %vm50_vm0  ;;  %vm46_vm6 = vcmp.eq.s32.totalorder %v38_v12, 63  ;;  %vm45_vm8 = vcmp.eq.s32.totalorder %v37_v14, 63  ;;  %vm44_vm10 = vcmp.eq.s32.totalorder %v36_v16, 63  ;;  %vm43_vm12 = vcmp.eq.s32.totalorder %v35_v17, 63 }
   0xa   :  { %371 = vmatpush.msk.msra.mxu0 %vm58_vm4, %v423_v15  ;;  %391 = vmatpush.msk.msra.mxu2 %vm58_vm4, %v423_v15  ;;  %vm57_vm5 = vmand %vm48_vm2, %vm50_vm0  ;;  %vm67_vm2 = vcmask 523264  }
   0xb   :  { %392 = vmatpush.msk.msra.mxu3 %vm58_vm4, %v423_v15  ;;  %vm56_vm7 = vmand %vm47_vm3, %vm50_vm0 }
   0xc   :  { %372 = vmatpush.msk.msra.mxu0 %vm57_vm5, %v423_v15  ;;  %393 = vmatpush.msk.msra.mxu2 %vm57_vm5, %v423_v15  ;;  %vm55_vm9 = vmand %vm46_vm6, %vm50_vm0 }
   0xd   :  { %394 = vmatpush.msk.msra.mxu3 %vm57_vm5, %v423_v15  ;;  %vm54_vm11 = vmand %vm45_vm8, %vm50_vm0 }
   0xe   :  { %373 = vmatpush.msk.msra.mxu0 %vm56_vm7, %v423_v15  ;;  %395 = vmatpush.msk.msra.mxu2 %vm56_vm7, %v423_v15  ;;  %vm53_vm13 = vmand %vm44_vm10, %vm50_vm0 }
   0xf   :  { %396 = vmatpush.msk.msra.mxu3 %vm56_vm7, %v423_v15  ;;  %vm52_vm15 = vmand %vm43_vm12, %vm50_vm0 }
  0x10   :  { %374 = vmatpush.msk.msra.mxu0 %vm55_vm9, %v423_v15  ;;  %397 = vmatpush.msk.msra.mxu2 %vm55_vm9, %v423_v15  ;;  %vm51_vm1 = vmand %vm42_vm14, %vm50_vm0 }
  0x11   :  { %398 = vmatpush.msk.msra.mxu3 %vm55_vm9, %v423_v15 }
  0x12   :  { %375 = vmatpush.msk.msra.mxu0 %vm54_vm11, %v423_v15  ;;  %399 = vmatpush.msk.msra.mxu2 %vm54_vm11, %v423_v15 }
  0x13   :  { %400 = vmatpush.msk.msra.mxu3 %vm54_vm11, %v423_v15 }
  0x14   :  { %376 = vmatpush.msk.msra.mxu0 %vm53_vm13, %v423_v15  ;;  %401 = vmatpush.msk.msra.mxu2 %vm53_vm13, %v423_v15 }
  0x15   :  { %402 = vmatpush.msk.msra.mxu3 %vm53_vm13, %v423_v15 }
  0x16   :  { %377 = vmatpush.msk.msra.mxu0 %vm52_vm15, %v423_v15  ;;  %403 = vmatpush.msk.msra.mxu2 %vm52_vm15, %v423_v15 }
  0x17   :  { %404 = vmatpush.msk.msra.mxu3 %vm52_vm15, %v423_v15 }
  0x18   :  { %378 = vmatpush.msk.msra.mxu0 %vm51_vm1, %v423_v15  ;;  %405 = vmatpush.msk.msra.mxu2 %vm51_vm1, %v423_v15 }
  0x19   :  { %406 = vmatpush.msk.msra.mxu3 %vm51_vm1, %v423_v15  ;;  %379 = vmatmul.msk.f32.vlgmr.msra.gmra.mxu0 %vm67_vm2, %v15_v19 }
  0x1a   :  { %382 = vmatmul.msk.f32.vlgmr.msra.gmra.mxu2 %vm67_vm2, %v18_v20  ;;  %385 = vmatmul.msk.f32.vlgmr.msra.gmra.mxu3 %vm67_vm2, %v21_v21 }
  0x21   :  { %380 = vmatmul.msk.f32.gmra.mxu0 %vm67_vm2, %v16_v22 }
  0x22   :  { %383 = vmatmul.msk.f32.gmra.mxu2 %vm67_vm2, %v19_v23  ;;  %386 = vmatmul.msk.f32.gmra.mxu3 %vm67_vm2, %v22_v24 }
  0x29   :  { %381 = vmatmul.msk.f32.gmra.mxu0 %vm67_vm2, %v17_v25 }
  0x2a   :  { %384 = vmatmul.msk.f32.gmra.mxu2 %vm67_vm2, %v20_v26 }
  0x96   :  { %v536_v27 = vpop.f32.mrf.mxu0 }
  0x97   :  { %v133_v38 = vand.u32 2147483647, %v536_v27 }
  0x9d   :  { %v538_v28 = vpop.f32.mrf.mxu2  ;;  %v542_v30 = vpop.f32.mrf.mxu3 }
  0x9e   :  { %v540_v29 = vpop.f32.mrf.mxu0  ;;  %v139_v35 = vand.u32 2147483647, %v542_v30  ;;  %v136_v40 = vand.u32 2147483647, %v538_v28 }
  0x9f   :  { %v134_v41 = vand.u32 2147483647, %v540_v29 }
  0xa5   :  { %v544_v31 = vpop.f32.mrf.mxu2  ;;  %v548_v33 = vpop.f32.mrf.mxu3 }
  0xa6   :  { %v546_v32 = vpop.f32.mrf.mxu0  ;;  %v137_v36 = vand.u32 2147483647, %v544_v31  ;;  %v140_v37 = vand.u32 2147483647, %v548_v33 }
  0xa7   :  { %v135_v34 = vand.u32 2147483647, %v546_v32 }
  0xa8   :  { %v141_v44 = vmax.f32 %v133_v38, %v137_v36  ;;  %v144_v45 = vmax.f32 %v136_v40, %v140_v37 }
  0xa9   :  { %v143_v42 = vmax.f32 %v135_v34, %v139_v35 }
  0xab   :  { %v146_v47 = vmax.f32 %v143_v42, %v144_v45 }
  0xad   :  { %v555_v39 = vpop.f32.mrf.mxu2 }
  0xae   :  { %v138_v43 = vand.u32 2147483647, %v555_v39 }
  0xb0   :  { %v142_v46 = vmax.f32 %v134_v41, %v138_v43 }
  0xb2   :  { %v145_v48 = vmax.f32 %v141_v44, %v142_v46 }
  0xb4   :  { %v147_v49 = vmax.f32 %v145_v48, %v146_v47 }
  0xb6   :  { %v148_v50 = vrot.slane %v147_v49, 4 }
  0xb8   :  { %v149_v51 = vmax.f32 %v147_v49, %v148_v50 }
  0xba   :  { %v150_v52 = vrot.slane %v149_v51, 2 }
  0xbc   :  { %v151_v53 = vmax.f32 %v149_v51, %v150_v52 }
  0xbe   :  { %v152_v54 = vrot.slane %v151_v53, 1 }
  0xc0   :  { %v153_v55 = vmax.f32 %v151_v53, %v152_v54 }
  0xc2   :  { %vm154_vm0 = vcmp.ge.f32.partialorder %v133_v38, %v153_v55  ;;  %vm155_vm3 = vcmp.ge.f32.partialorder %v134_v41, %v153_v55  ;;  %vm156_vm4 = vcmp.ge.f32.partialorder %v135_v34, %v153_v55  ;;  %vm157_vm5 = vcmp.ge.f32.partialorder %v136_v40, %v153_v55 }
  0xc3   :  { %vm158_vm6 = vcmp.ge.f32.partialorder %v137_v36, %v153_v55  ;;  %vm159_vm7 = vcmp.ge.f32.partialorder %v138_v43, %v153_v55  ;;  %vm160_vm8 = vcmp.ge.f32.partialorder %v139_v35, %v153_v55  ;;  %vm161_vm9 = vcmp.ge.f32.partialorder %v140_v37, %v153_v55 }
  0xc4   :  { %v162_v56 = vsel %vm154_vm0, %v441_v1, 64  ;;  %v163_v57 = vsel %vm155_vm3, %v466_v13, 64  ;;  %v164_v58 = vsel %vm156_vm4, %v462_v11, 64  ;;  %v165_v59 = vsel %vm157_vm5, %v456_v7, 64 }
  0xc5   :  { %v166_v60 = vsel %vm158_vm6, %v453_v6, 64  ;;  %v167_v61 = vsel %vm159_vm7, %v450_v5, 64  ;;  %v168_v62 = vsel %vm160_vm8, %v447_v4, 64  ;;  %v169_v63 = vsel %vm161_vm9, %v444_v3, 64 }
  0xc6   :  { %vm170_vm10 = vcmp.lt.s32.totalorder %v162_v56, %v166_v60  ;;  %vm172_vm11 = vcmp.lt.s32.totalorder %v163_v57, %v167_v61  ;;  %vm174_vm12 = vcmp.lt.s32.totalorder %v164_v58, %v168_v62  ;;  %vm176_vm13 = vcmp.lt.s32.totalorder %v165_v59, %v169_v63 }
  0xc7   :  { %v171_v0 = vsel %vm170_vm10, %v162_v56, %v166_v60  ;;  %v173_v2 = vsel %vm172_vm11, %v163_v57, %v167_v61  ;;  %v175_v8 = vsel %vm174_vm12, %v164_v58, %v168_v62  ;;  %v177_v9 = vsel %vm176_vm13, %v165_v59, %v169_v63 }
  0xc8   :  { %vm178_vm14 = vcmp.lt.s32.totalorder %v171_v0, %v173_v2  ;;  %vm180_vm15 = vcmp.lt.s32.totalorder %v175_v8, %v177_v9 }
  0xc9   :  { %v179_v10 = vsel %vm178_vm14, %v171_v0, %v173_v2  ;;  %v181_v12 = vsel %vm180_vm15, %v175_v8, %v177_v9  ;;  %vm425_vm15 = vmmov 1  }
  0xca   :  { %vm182_vm1 = vcmp.lt.s32.totalorder %v179_v10, %v181_v12 }
  0xcb   :  { %v183_v14 = vsel %vm182_vm1, %v179_v10, %v181_v12 }
  0xcc   :  { %v184_v16 = vrot.slane %v183_v14, 4 }
  0xce   :  { %vm185_vm0 = vcmp.lt.s32.totalorder %v183_v14, %v184_v16 }
  0xcf   :  { %v186_v17 = vsel %vm185_vm0, %v183_v14, %v184_v16 }
  0xd0   :  { %v187_v18 = vrot.slane %v186_v17, 2 }
  0xd2   :  { %vm188_vm3 = vcmp.lt.s32.totalorder %v186_v17, %v187_v18 }
  0xd3   :  { %v189_v19 = vsel %vm188_vm3, %v186_v17, %v187_v18 }
  0xd4   :  { %v190_v20 = vrot.slane %v189_v19, 1 }
  0xd6   :  { %vm191_vm4 = vcmp.lt.s32.totalorder %v189_v19, %v190_v20 }
  0xd7   :  { %v192_v21 = vsel %vm191_vm4, %v189_v19, %v190_v20 }
  0xd8   :  { %vm193_vm5 = vcmp.eq.s32.totalorder %v441_v1, %v192_v21  ;;  %vm194_vm6 = vcmp.eq.s32.totalorder %v466_v13, %v192_v21  ;;  %vm195_vm7 = vcmp.eq.s32.totalorder %v462_v11, %v192_v21  ;;  %vm196_vm8 = vcmp.eq.s32.totalorder %v456_v7, %v192_v21 }
  0xd9   :  { %v201_v22 = vsel %vm193_vm5, %v536_v27, 0.0  ;;  %v202_v23 = vsel %vm194_vm6, %v540_v29, 0.0  ;;  %v203_v25 = vsel %vm195_vm7, %v546_v32, 0.0  ;;  %vm197_vm9 = vcmp.eq.s32.totalorder %v453_v6, %v192_v21 }
  0xda   :  { %v209_v24 = vadd.f32 %v202_v23, %v201_v22  ;;  %v204_v34 = vsel %vm196_vm8, %v538_v28, 0.0  ;;  %vm198_vm10 = vcmp.eq.s32.totalorder %v450_v5, %v192_v21  ;;  %v205_v13 = vsel %vm197_vm9, %v544_v31, 0.0 }
  0xdb   :  { %vm199_vm11 = vcmp.eq.s32.totalorder %v447_v4, %v192_v21  ;;  %v206_v35 = vsel %vm198_vm10, %v555_v39, 0.0  ;;  %vm200_vm12 = vcmp.eq.s32.totalorder %v444_v3, %v192_v21 }
  0xdc   :  { %v210_v26 = vadd.f32 %v209_v24, %v203_v25  ;;  %v207_v36 = vsel %vm199_vm11, %v542_v30, 0.0  ;;  %v208_v6 = vsel %vm200_vm12, %v548_v33, 0.0 }
  0xde   :  { %v211_v1 = vadd.f32 %v210_v26, %v204_v34 }
  0xe0   :  { %v212_v11 = vadd.f32 %v211_v1, %v205_v13 }
  0xe2   :  { %v213_v7 = vadd.f32 %v212_v11, %v206_v35 }
  0xe4   :  { %v214_v37 = vadd.f32 %v213_v7, %v207_v36 }
  0xe6   :  { %v215_v38 = vadd.f32 %v214_v37, %v208_v6 }
  0xe8   :  { %v216_v40 = vrot.slane %v215_v38, 4 }
  0xea   :  { %v217_v41 = vadd.f32 %v216_v40, %v215_v38 }
  0xec   :  { %v218_v5 = vrot.slane %v217_v41, 2 }
  0xee   :  { %v219_v42 = vadd.f32 %v218_v5, %v217_v41 }
  0xf0   :  { %v220_v43 = vrot.slane %v219_v42, 1 }
  0xf2   :  { %v221_v44 = vadd.f32 %v220_v43, %v219_v42 }
  0xf4   :  { %vm222_vm13 = vcmp.lt.f32.partialorder %v221_v44, 0.0 }
  0xf5   :  { %v223_v4 = vsel %vm222_vm13, -1.0, %v423_v15 }
  0xf6   :  { %v231_v45 = vmul.f32 %v223_v4, %v548_v33  ;;  %v230_v3 = vmul.f32 %v223_v4, %v542_v30  ;;  %v229_v46 = vmul.f32 %v223_v4, %v555_v39  ;;  %v228_v47 = vmul.f32 %v223_v4, %v544_v31  ;;  %v11_v31 = vld [vmem:[%s650_s0] sm:$0xff] }
  0xf7   :  { %v227_v48 = vmul.f32 %v223_v4, %v538_v28  ;;  %v226_v15 = vmul.f32 %v223_v4, %v546_v32  ;;  %v225_v30 = vmul.f32 %v223_v4, %v540_v29  ;;  %v224_v33 = vmul.f32 %v223_v4, %v536_v27  ;;  %v14_v28 = vld [vmem:[%s650_s0 + $0x18] sm:$0xff]  ;;  %v12_v29 = vld [vmem:[%s650_s0 + $0x8] sm:$0xff]  ;;  %v13_v27 = vld [vmem:[%s650_s0 + $0x10] sm:$0xff] }
  0xf8   :  { %252 = vmatpush.msra.mxu1 %v231_v45  ;;  %407 = vmatpush.msrb.mxu3 %v231_v45  ;;  %v424_v32 = vmov 0  }
  0xf9   :  { %420 = vset.pattern.permute.xlu2 %v424_v32  ;;  %418 = vset.pattern.permute.xlu0 %v424_v32 }
  0xfa   :  { %253 = vmatpush.msra.mxu1 %v230_v3  ;;  %408 = vmatpush.msrb.mxu3 %v230_v3 }
  0xfb   :  { %419 = vset.pattern.permute.xlu1 %v424_v32 }
  0xfc   :  { %254 = vmatpush.msra.mxu1 %v229_v46  ;;  %409 = vmatpush.msrb.mxu3 %v229_v46 }
  0xfe   :  { %255 = vmatpush.msra.mxu1 %v228_v47  ;;  %410 = vmatpush.msrb.mxu3 %v228_v47 }
 0x100   :  { %256 = vmatpush.msra.mxu1 %v227_v48  ;;  %411 = vmatpush.msrb.mxu3 %v227_v48 }
 0x102   :  { %257 = vmatpush.msra.mxu1 %v226_v15  ;;  %412 = vmatpush.msrb.mxu3 %v226_v15 }
 0x104   :  { %258 = vmatpush.msra.mxu1 %v225_v30  ;;  %413 = vmatpush.msrb.mxu3 %v225_v30 }
 0x106   :  { %259 = vmatpush.msra.mxu1 %v224_v33  ;;  %414 = vmatpush.msrb.mxu3 %v224_v33 }
 0x107   :  { %387 = vmatmul.msk.f32.vlgmr.msra.gmra.mxu1 %vm67_vm2, %v11_v31  ;;  %390 = vmatmul.msk.f32.vlgmr.msrb.gmra.mxu3 %vm67_vm2, %v14_v28 }
 0x10f   :  { %388 = vmatmul.msk.f32.gmra.mxu1 %vm67_vm2, %v12_v29 }
 0x117   :  { %389 = vmatmul.msk.f32.gmra.mxu1 %vm67_vm2, %v13_v27 }
 0x184   :  { %v609_v39 = vpop.f32.mrf.mxu1 }
 0x185   :  { %vm273_vm14 = vcmp.lt.f32.partialorder %v609_v39, -100.0 }
 0x186   :  { %v339_v49 = vsel %vm273_vm14, 1, %v424_v32  ;;  %vm277_vm1 = vmxor %vm273_vm14, %vm425_vm15 }
 0x187   :  { %344 = vperm.xlu2 %420, %v339_v49   ;;  %v281_v50 = vsel %vm277_vm1, 1, %v424_v32 }
 0x188   :  { %286 = vperm.xlu0 %418, %v281_v50  }
 0x18a   :  { %v619_v55 = vpop.f32.mrf.mxu3 }
 0x18b   :  { %vm276_vm5 = vcmp.lt.f32.partialorder %v619_v55, -100.0 }
 0x18c   :  { %v613_v51 = vpop.f32.mrf.mxu1  ;;  %vm280_vm6 = vmxor %vm276_vm5, %vm425_vm15  ;;  %v342_v59 = vsel %vm276_vm5, 1, %v424_v32 }
 0x18d   :  { %vm274_vm0 = vcmp.lt.f32.partialorder %v613_v51, -100.0  ;;  %v284_v58 = vsel %vm280_vm6, 1, %v424_v32 }
 0x18e   :  { %v340_v52 = vsel %vm274_vm0, 1, %v424_v32  ;;  %vm278_vm2 = vmxor %vm274_vm0, %vm425_vm15 }
 0x18f   :  { %347 = vperm.xlu2 %420, %v340_v52   ;;  %v282_v53 = vsel %vm278_vm2, 1, %v424_v32 }
 0x190   :  { %289 = vperm.xlu0 %418, %v282_v53  }
 0x194   :  { %v617_v54 = vpop.f32.mrf.mxu1 }
 0x195   :  { %vm275_vm3 = vcmp.lt.f32.partialorder %v617_v54, -100.0 }
 0x196   :  { %v341_v56 = vsel %vm275_vm3, 1, %v424_v32  ;;  %vm279_vm4 = vmxor %vm275_vm3, %vm425_vm15 }
 0x197   :  { %v283_v57 = vsel %vm279_vm4, 1, %v424_v32 }
 0x198   :  { %350 = vperm.xlu0 %418, %v341_v56   ;;  %292 = vperm.xlu1 %419, %v283_v57  }
 0x1a0   :  { %295 = vperm.xlu1 %419, %v284_v58  }
 0x1a8   :  { %353 = vperm.xlu1 %419, %v342_v59  }
 0x1e1   :  { %v345_v6 = vpop.permute.xlu2 %344 }
 0x1e2   :  { %vm355_vm12 = vcmp.eq.s32.totalorder %v345_v6, 1 }
 0x1e9   :  { %v348_v41 = vpop.permute.xlu2 %347 }
 0x1ea   :  { %vm356_vm13 = vcmp.eq.s32.totalorder %v348_v41, 1 }
 0x1fa   :  { %v287_v60 = vpop.permute.xlu0 %286 }
 0x1fb   :  { %vm297_vm7 = vcmp.eq.s32.totalorder %v287_v60, 1 }
 0x1fc   :  { %v301_v63 = vsel %vm297_vm7, %v609_v39, 1e+30  ;;  %v314_v9 = vsel %vm297_vm7, %v609_v39, -1e+30 }
 0x202   :  { %v290_v62 = vpop.permute.xlu0 %289 }
 0x203   :  { %vm298_vm8 = vcmp.eq.s32.totalorder %v290_v62, 1 }
 0x204   :  { %v302_v0 = vsel %vm298_vm8, %v613_v51, 1e+30  ;;  %v315_v2 = vsel %vm298_vm8, %v613_v51, -1e+30 }
 0x205   :  { %v305_v17 = vmin.f32 %v301_v63, %v302_v0  ;;  %v318_v18 = vmax.f32 %v314_v9, %v315_v2 }
 0x20a   :  { %v293_v61 = vpop.permute.xlu1 %292  ;;  %v351_v5 = vpop.permute.xlu0 %350 }
 0x20b   :  { %vm299_vm9 = vcmp.eq.s32.totalorder %v293_v61, 1  ;;  %vm357_vm14 = vcmp.eq.s32.totalorder %v351_v5, 1 }
 0x20c   :  { %v303_v10 = vsel %vm299_vm9, %v617_v54, 1e+30  ;;  %v316_v12 = vsel %vm299_vm9, %v617_v54, -1e+30 }
 0x212   :  { %v296_v8 = vpop.permute.xlu1 %295 }
 0x213   :  { %vm300_vm10 = vcmp.eq.s32.totalorder %v296_v8, 1 }
 0x214   :  { %v304_v14 = vsel %vm300_vm10, %v619_v55, 1e+30  ;;  %v317_v16 = vsel %vm300_vm10, %v619_v55, -1e+30 }
 0x215   :  { %v306_v19 = vmin.f32 %v303_v10, %v304_v14  ;;  %v319_v20 = vmax.f32 %v316_v12, %v317_v16 }
 0x217   :  { %v307_v21 = vmin.f32 %v305_v17, %v306_v19  ;;  %v320_v22 = vmax.f32 %v318_v18, %v319_v20 }
 0x219   :  { %v308_v23 = vrot.slane %v307_v21, 4  ;;  %v321_v24 = vrot.slane %v320_v22, 4 }
 0x21a   :  { %v354_v3 = vpop.permute.xlu1 %353 }
 0x21b   :  { %v309_v25 = vmin.f32 %v307_v21, %v308_v23  ;;  %v322_v26 = vmax.f32 %v320_v22, %v321_v24  ;;  %vm358_vm15 = vcmp.eq.s32.totalorder %v354_v3, 1 }
 0x21d   :  { %v310_v34 = vrot.slane %v309_v25, 2  ;;  %v323_v1 = vrot.slane %v322_v26, 2 }
 0x21f   :  { %v311_v13 = vmin.f32 %v309_v25, %v310_v34  ;;  %v324_v11 = vmax.f32 %v322_v26, %v323_v1 }
 0x221   :  { %v312_v35 = vrot.slane %v311_v13, 1  ;;  %v325_v7 = vrot.slane %v324_v11, 1 }
 0x223   :  { %v313_v36 = vmin.f32 %v311_v13, %v312_v35  ;;  %v326_v37 = vmax.f32 %v324_v11, %v325_v7 }
 0x225   :  { %v327_v38 = vsub.f32 %v326_v37, %v313_v36  ;;  %v330_v42 = vsub.f32 %v609_v39, %v313_v36  ;;  %v331_v43 = vsub.f32 %v613_v51, %v313_v36  ;;  %v332_v44 = vsub.f32 %v617_v54, %v313_v36 }
 0x226   :  { %v333_v4 = vsub.f32 %v619_v55, %v313_v36 }
 0x227   :  { %vm328_vm11 = vcmp.le.f32.partialorder %v327_v38, 0.0 }
 0x228   :  { %v329_v40 = vsel %vm328_vm11, 1.0, %v327_v38 }
 0x229   :  { %421 = vrcp.f32 %v329_v40 }
 0x22f   :  { %v422_v45 = vpop.eup %421 }
 0x230   :  { %v335_v46 = vmul.f32 %v422_v45, %v330_v42  ;;  %v336_v47 = vmul.f32 %v422_v45, %v331_v43  ;;  %v337_v48 = vmul.f32 %v422_v45, %v332_v44  ;;  %v338_v15 = vmul.f32 %v422_v45, %v333_v4 }
 0x232   :  { %v359_v30 = vsel %vm355_vm12, 0.0, %v335_v46  ;;  %v360_v33 = vsel %vm356_vm13, 0.0, %v336_v47  ;;  %v361_v31 = vsel %vm357_vm14, 0.0, %v337_v48  ;;  %v362_v28 = vsel %vm358_vm15, 0.0, %v338_v15 }
 0x233   :  { %363 = vst [vmem:[%s651_s2] sm:$0xff] %v359_v30 }
 0x234   :  { %364 = vst [vmem:[%s651_s2 + $0x8] sm:$0xff] %v360_v33 }
 0x235   :  { %365 = vst [vmem:[%s651_s2 + $0x10] sm:$0xff] %v361_v31 }
 0x236   :  { %366 = vst [vmem:[%s651_s2 + $0x18] sm:$0xff] %v362_v28 }

</bundles_post_ra>
